<compile_context>
chip_gen: v7x
topology: tpu7x:2x2x1
jax: 0.10.0
libtpu: 0.0.40
codegen_flags: <defaults>
</compile_context>

<pallas_src>
import jax
import jax.numpy as jnp
import numpy as np
from jax.experimental import pallas as pl
from jax.experimental.pallas import tpu as pltpu


def _rnn_kernel(xproj_ref,   # (T, B, H)   f32   layer-0 input projection + layer-0 biases
                h0_ref,      # (L, B, H)   f32   initial hidden state
                whh_ref,     # (L, H, H)   bf16  W_hh^T for every layer
                wih_ref,     # (L-1, H, H) bf16  W_ih^T for layers 1..L-1
                b_ref,       # (L-1, B, H) f32   b_ih + b_hh, pre-broadcast, layers 1..L-1
                wlin_ref,    # (H, O)      bf16  linear weights, transposed
                blin_ref,    # (1, O)      f32   linear bias
                pred_ref,    # out: (B, O)
                hid_ref):    # out: (L, B, H)
    T = xproj_ref.shape[0]
    L = h0_ref.shape[0]

    # Tiny per-layer biases hoisted (a couple of vregs each).  Weights are NOT
    # hoisted -- they are read at each dot so Mosaic streams them from VMEM
    # instead of spilling 640 KB of live values around the unrolled chain.
    bias = [b_ref[l] for l in range(L - 1)]

    # Hidden states live in vregs (wave-loop carries), not VMEM scratch.
    # f32 carry for numerics; one bf16 copy per update for MXU operands.
    h = [h0_ref[l].astype(jnp.float32) for l in range(L)]
    hb = [v.astype(jnp.bfloat16) for v in h]

    # Wavefront: wave d computes layer l at time t = d - l for every valid l.
    # Every update in wave d depends only on values produced by wave d-1, so the
    # true dependency chain is T + L - 1 waves (10) instead of T * L steps (24).
    for d in range(T + L - 1):                         # static unroll, T & L tiny
        new_h = list(h)
        new_hb = list(hb)

        if d < T:                                      # layer 0 at time t = d
            v = jnp.tanh(
                xproj_ref[d]
                + jnp.dot(hb[0], whh_ref[0],
                          preferred_element_type=jnp.float32))
            new_h[0] = v
            new_hb[0] = v.astype(jnp.bfloat16)

        for l in range(1, L):                          # layer l at time t = d - l
            t = d - l
            if 0 <= t < T:
                v = jnp.tanh(
                    jnp.dot(hb[l - 1], wih_ref[l - 1],
                            preferred_element_type=jnp.float32)
                    + jnp.dot(hb[l], whh_ref[l],
                              preferred_element_type=jnp.float32)
                    + bias[l - 1])
                new_h[l] = v
                new_hb[l] = v.astype(jnp.bfloat16)

        h, hb = new_h, new_hb

    # Final hidden state written back once.
    for l in range(L):
        hid_ref[l] = h[l].astype(hid_ref.dtype)

    # Linear head on the last layer's hidden at the final time step
    # (== rnn_out[:, -1, :]); dropout is identity in eval mode.
    pred = (jnp.dot(hb[L - 1], wlin_ref[...],
                    preferred_element_type=jnp.float32)
            + blin_ref[...])
    pred_ref[...] = pred.astype(pred_ref.dtype)


@jax.jit
def simple_rnn_forward(input_seq, hidden_state, params):
    """input_seq: (B, T, I) float32 (batch_first, like PyTorch).
       hidden_state: (L, B, H) float32.
       Returns (predictions (B, O), hidden_state (L, B, H))."""
    B, T, I = input_seq.shape
    L, _, H = hidden_state.shape
    O = params["w_lin"].shape[0]

    # --- Plain-JAX glue (tiny) ---------------------------------------------
    # Layer-0 input projection hoisted out of the recurrence; with I=1 this is a
    # broadcast multiply, not real MXU work.  Layer-0 biases folded in. (T, B, H).
    w_ih0 = params["w_ih"][0]                                      # (H, I)
    b0 = params["b_ih"][0] + params["b_hh"][0]                     # (H,)
    xproj = (jnp.einsum("bti,hi->tbh", input_seq, w_ih0)
             + b0[None, None, :]).astype(jnp.float32)              # (T, B, H)

    # Separate (un-fused) transposed weights: W_hh^T for all layers, W_ih^T for 1..L-1.
    whh_T = jnp.stack([params["w_hh"][l].T for l in range(L)]).astype(jnp.bfloat16)
    wih_T = jnp.stack([params["w_ih"][l].T for l in range(1, L)]).astype(jnp.bfloat16)
    # Biases for layers 1..L-1, pre-broadcast to (B, H) once (hoisted broadcast).
    b = jnp.broadcast_to(
        (params["b_ih"][1:] + params["b_hh"][1:])[:, None, :],
        (L - 1, B, H)).astype(jnp.float32)
    wlin_T = params["w_lin"].T.astype(jnp.bfloat16)                # (H, O)
    blin = params["b_lin"][None, :].astype(jnp.float32)            # (1, O)

    pred, hid = pl.pallas_call(
        _rnn_kernel,
        grid=(1,),                                    # single step; loop is in-kernel
        in_specs=[
            pl.BlockSpec((T, B, H), lambda i: (0, 0, 0)),          # xproj
            pl.BlockSpec((L, B, H), lambda i: (0, 0, 0)),          # h0
            pl.BlockSpec((L, H, H), lambda i: (0, 0, 0)),          # W_hh^T (all layers)
            pl.BlockSpec((L - 1, H, H), lambda i: (0, 0, 0)),      # W_ih^T (layers 1..)
            pl.BlockSpec((L - 1, B, H), lambda i: (0, 0, 0)),      # biases (layers 1..)
            pl.BlockSpec((H, O), lambda i: (0, 0)),                # wlin^T
            pl.BlockSpec((1, O), lambda i: (0, 0)),                # blin
        ],
        out_specs=(
            pl.BlockSpec((B, O), lambda i: (0, 0)),                # predictions
            pl.BlockSpec((L, B, H), lambda i: (0, 0, 0)),          # final hidden state
        ),
        out_shape=(
            jax.ShapeDtypeStruct((B, O), jnp.float32),
            jax.ShapeDtypeStruct((L, B, H), jnp.float32),
        ),
        compiler_params=pltpu.CompilerParams(
            dimension_semantics=("arbitrary",)),      # strictly sequential recurrence
    )(xproj, hidden_state, whh_T, wih_T, b, wlin_T, blin)
    return pred, hid


def init_params(key, input_size=1, hidden=256, output=3, num_layers=3):
    """Deterministic init matching the PyTorch module's parameter shapes
    (uniform(-1/sqrt(H), 1/sqrt(H)) like nn.RNN / nn.Linear defaults)."""
    bound = 1.0 / np.sqrt(hidden)
    keys = jax.random.split(key, 4 * num_layers + 2)
    w_ih, w_hh, b_ih, b_hh = [], [], [], []
    for l in range(num_layers):
        in_sz = input_size if l == 0 else hidden
        w_ih.append(jax.random.uniform(keys[4 * l + 0], (hidden, in_sz),
                                       jnp.float32, -bound, bound))
        w_hh.append(jax.random.uniform(keys[4 * l + 1], (hidden, hidden),
                                       jnp.float32, -bound, bound))
        b_ih.append(jax.random.uniform(keys[4 * l + 2], (hidden,),
                                       jnp.float32, -bound, bound))
        b_hh.append(jax.random.uniform(keys[4 * l + 3], (hidden,),
                                       jnp.float32, -bound, bound))
    w_lin = jax.random.uniform(keys[-2], (output, hidden), jnp.float32, -bound, bound)
    b_lin = jax.random.uniform(keys[-1], (output,), jnp.float32, -bound, bound)
    return {
        "w_ih": w_ih, "w_hh": w_hh,
        "b_ih": jnp.stack(b_ih), "b_hh": jnp.stack(b_hh),
        "w_lin": w_lin, "b_lin": b_lin,
    }


def reference_forward(input_seq, hidden_state, params):
    """Pure-JAX f32 reference of the torch forward (eval mode: dropout = identity)."""
    B, T, I = input_seq.shape
    L = hidden_state.shape[0]
    h = [hidden_state[l] for l in range(L)]
    last_layer_out = None
    for t in range(T):
        layer_in = input_seq[:, t, :]
        for l in range(L):
            h[l] = jnp.tanh(layer_in @ params["w_ih"][l].T
                            + h[l] @ params["w_hh"][l].T
                            + params["b_ih"][l] + params["b_hh"][l])
            layer_in = h[l]
        last_layer_out = h[L - 1]
    pred = last_layer_out @ params["w_lin"].T + params["b_lin"]
    return pred, jnp.stack(h)


if __name__ == "__main__":
    B, T, I = 2, 8, 1          # batch=2, seq=8, input_size=1 (as in the module)
    H, O, L = 256, 3, 3        # hidden_layer_size=256, output_size=3, num_layers=3

    key = jax.random.PRNGKey(0)
    pkey, xkey = jax.random.split(key)
    params = init_params(pkey, input_size=I, hidden=H, output=O, num_layers=L)

    input_seq = jax.random.normal(xkey, (B, T, I), jnp.float32)
    hidden0 = jnp.zeros((L, B, H), jnp.float32)     # == model.init_hidden(B)

    pred, hid = simple_rnn_forward(input_seq, hidden0, params)
    pred, hid = jax.block_until_ready((pred, hid))

    ref_pred, ref_hid = reference_forward(input_seq, hidden0, params)
    # Looser tolerance vs. the f32 reference because MXU inputs are bf16
    # (accumulation stays f32); tanh-bounded states keep the error ~1e-3.
    np.testing.assert_allclose(np.asarray(pred), np.asarray(ref_pred),
                               rtol=2e-2, atol=2e-2)
    np.testing.assert_allclose(np.asarray(hid), np.asarray(ref_hid),
                               rtol=2e-2, atol=2e-2)

    assert pred.shape == (B, O) and hid.shape == (L, B, H)
    print("KERNEL_OK")
</pallas_src>

<mosaic_0001>
module attributes {stable_mosaic.version = 11 : i64} {
  func.func @_rnn_kernel(%arg0: i32, %arg1: memref<8x2x256xf32, #tpu.memory_space<vmem>>, %arg2: memref<3x2x256xf32, #tpu.memory_space<vmem>>, %arg3: memref<3x256x256xbf16, #tpu.memory_space<vmem>>, %arg4: memref<2x256x256xbf16, #tpu.memory_space<vmem>>, %arg5: memref<2x2x256xf32, #tpu.memory_space<vmem>>, %arg6: memref<256x3xbf16, #tpu.memory_space<vmem>>, %arg7: memref<1x3xf32, #tpu.memory_space<vmem>>, %arg8: memref<2x3xf32, #tpu.memory_space<vmem>>, %arg9: memref<3x2x256xf32, #tpu.memory_space<vmem>>) attributes {dimension_semantics = [#tpu.dimension_semantics<arbitrary>], iteration_bounds = array<i64: 1>, scalar_prefetch = 0 : i64, scratch_operands = 0 : i64, tpu.core_type = #tpu.core_type<tc>, window_params = [{pipeline_mode = #tpu.pipeline_mode<synchronous>, transform_indices = @transform_0, window_bounds = array<i64: 8, 2, 256>}, {pipeline_mode = #tpu.pipeline_mode<synchronous>, transform_indices = @transform_1, window_bounds = array<i64: 3, 2, 256>}, {pipeline_mode = #tpu.pipeline_mode<synchronous>, transform_indices = @transform_2, window_bounds = array<i64: 3, 256, 256>}, {pipeline_mode = #tpu.pipeline_mode<synchronous>, transform_indices = @transform_3, window_bounds = array<i64: 2, 256, 256>}, {pipeline_mode = #tpu.pipeline_mode<synchronous>, transform_indices = @transform_4, window_bounds = array<i64: 2, 2, 256>}, {pipeline_mode = #tpu.pipeline_mode<synchronous>, transform_indices = @transform_5, window_bounds = array<i64: 256, 3>}, {pipeline_mode = #tpu.pipeline_mode<synchronous>, transform_indices = @transform_6, window_bounds = array<i64: 1, 3>}, {pipeline_mode = #tpu.pipeline_mode<synchronous>, transform_indices = @transform_7, window_bounds = array<i64: 2, 3>}, {pipeline_mode = #tpu.pipeline_mode<synchronous>, transform_indices = @transform_8, window_bounds = array<i64: 3, 2, 256>}]} {
    %c0 = arith.constant 0 : index
    %c0_0 = arith.constant 0 : index
    %c0_1 = arith.constant 0 : index
    %0 = vector.load %arg5[%c0, %c0_0, %c0_1] : memref<2x2x256xf32, #tpu.memory_space<vmem>>, vector<1x2x256xf32>
    %1 = vector.shape_cast %0 : vector<1x2x256xf32> to vector<2x256xf32>
    %c1 = arith.constant 1 : index
    %c0_2 = arith.constant 0 : index
    %c0_3 = arith.constant 0 : index
    %2 = vector.load %arg5[%c1, %c0_2, %c0_3] : memref<2x2x256xf32, #tpu.memory_space<vmem>>, vector<1x2x256xf32>
    %3 = vector.shape_cast %2 : vector<1x2x256xf32> to vector<2x256xf32>
    %c0_4 = arith.constant 0 : index
    %c0_5 = arith.constant 0 : index
    %c0_6 = arith.constant 0 : index
    %4 = vector.load %arg2[%c0_4, %c0_5, %c0_6] : memref<3x2x256xf32, #tpu.memory_space<vmem>>, vector<1x2x256xf32>
    %5 = vector.shape_cast %4 : vector<1x2x256xf32> to vector<2x256xf32>
    %c1_7 = arith.constant 1 : index
    %c0_8 = arith.constant 0 : index
    %c0_9 = arith.constant 0 : index
    %6 = vector.load %arg2[%c1_7, %c0_8, %c0_9] : memref<3x2x256xf32, #tpu.memory_space<vmem>>, vector<1x2x256xf32>
    %7 = vector.shape_cast %6 : vector<1x2x256xf32> to vector<2x256xf32>
    %c2 = arith.constant 2 : index
    %c0_10 = arith.constant 0 : index
    %c0_11 = arith.constant 0 : index
    %8 = vector.load %arg2[%c2, %c0_10, %c0_11] : memref<3x2x256xf32, #tpu.memory_space<vmem>>, vector<1x2x256xf32>
    %9 = vector.shape_cast %8 : vector<1x2x256xf32> to vector<2x256xf32>
    %10 = arith.truncf %5 : vector<2x256xf32> to vector<2x256xbf16>
    %11 = arith.truncf %7 : vector<2x256xf32> to vector<2x256xbf16>
    %12 = arith.truncf %9 : vector<2x256xf32> to vector<2x256xbf16>
    %c0_12 = arith.constant 0 : index
    %c0_13 = arith.constant 0 : index
    %c0_14 = arith.constant 0 : index
    %13 = vector.load %arg1[%c0_12, %c0_13, %c0_14] : memref<8x2x256xf32, #tpu.memory_space<vmem>>, vector<1x2x256xf32>
    %14 = vector.shape_cast %13 : vector<1x2x256xf32> to vector<2x256xf32>
    %c0_15 = arith.constant 0 : index
    %c0_16 = arith.constant 0 : index
    %c0_17 = arith.constant 0 : index
    %15 = vector.load %arg3[%c0_15, %c0_16, %c0_17] : memref<3x256x256xbf16, #tpu.memory_space<vmem>>, vector<1x256x256xbf16>
    %16 = vector.shape_cast %15 : vector<1x256x256xbf16> to vector<256x256xbf16>
    %cst = arith.constant dense<0.000000e+00> : vector<2x256xf32>
    %17 = tpu.matmul %10, %16, %cst {dimension_numbers = #tpu.dot_dimension_numbers<[1], [0], [0], [1], [0, 0, 1, 1], [], []>} : vector<2x256xbf16>, vector<256x256xbf16>, vector<2x256xf32> -> vector<2x256xf32>
    %18 = arith.addf %14, %17 : vector<2x256xf32>
    %19 = math.tanh %18 : vector<2x256xf32>
    %20 = arith.truncf %19 : vector<2x256xf32> to vector<2x256xbf16>
    %c1_18 = arith.constant 1 : index
    %c0_19 = arith.constant 0 : index
    %c0_20 = arith.constant 0 : index
    %21 = vector.load %arg1[%c1_18, %c0_19, %c0_20] : memref<8x2x256xf32, #tpu.memory_space<vmem>>, vector<1x2x256xf32>
    %22 = vector.shape_cast %21 : vector<1x2x256xf32> to vector<2x256xf32>
    %c0_21 = arith.constant 0 : index
    %c0_22 = arith.constant 0 : index
    %c0_23 = arith.constant 0 : index
    %23 = vector.load %arg3[%c0_21, %c0_22, %c0_23] : memref<3x256x256xbf16, #tpu.memory_space<vmem>>, vector<1x256x256xbf16>
    %24 = vector.shape_cast %23 : vector<1x256x256xbf16> to vector<256x256xbf16>
    %cst_24 = arith.constant dense<0.000000e+00> : vector<2x256xf32>
    %25 = tpu.matmul %20, %24, %cst_24 {dimension_numbers = #tpu.dot_dimension_numbers<[1], [0], [0], [1], [0, 0, 1, 1], [], []>} : vector<2x256xbf16>, vector<256x256xbf16>, vector<2x256xf32> -> vector<2x256xf32>
    %26 = arith.addf %22, %25 : vector<2x256xf32>
    %27 = math.tanh %26 : vector<2x256xf32>
    %28 = arith.truncf %27 : vector<2x256xf32> to vector<2x256xbf16>
    %c0_25 = arith.constant 0 : index
    %c0_26 = arith.constant 0 : index
    %c0_27 = arith.constant 0 : index
    %29 = vector.load %arg4[%c0_25, %c0_26, %c0_27] : memref<2x256x256xbf16, #tpu.memory_space<vmem>>, vector<1x256x256xbf16>
    %30 = vector.shape_cast %29 : vector<1x256x256xbf16> to vector<256x256xbf16>
    %cst_28 = arith.constant dense<0.000000e+00> : vector<2x256xf32>
    %31 = tpu.matmul %20, %30, %cst_28 {dimension_numbers = #tpu.dot_dimension_numbers<[1], [0], [0], [1], [0, 0, 1, 1], [], []>} : vector<2x256xbf16>, vector<256x256xbf16>, vector<2x256xf32> -> vector<2x256xf32>
    %c1_29 = arith.constant 1 : index
    %c0_30 = arith.constant 0 : index
    %c0_31 = arith.constant 0 : index
    %32 = vector.load %arg3[%c1_29, %c0_30, %c0_31] : memref<3x256x256xbf16, #tpu.memory_space<vmem>>, vector<1x256x256xbf16>
    %33 = vector.shape_cast %32 : vector<1x256x256xbf16> to vector<256x256xbf16>
    %cst_32 = arith.constant dense<0.000000e+00> : vector<2x256xf32>
    %34 = tpu.matmul %11, %33, %cst_32 {dimension_numbers = #tpu.dot_dimension_numbers<[1], [0], [0], [1], [0, 0, 1, 1], [], []>} : vector<2x256xbf16>, vector<256x256xbf16>, vector<2x256xf32> -> vector<2x256xf32>
    %35 = arith.addf %31, %34 : vector<2x256xf32>
    %36 = arith.addf %35, %1 : vector<2x256xf32>
    %37 = math.tanh %36 : vector<2x256xf32>
    %38 = arith.truncf %37 : vector<2x256xf32> to vector<2x256xbf16>
    %c2_33 = arith.constant 2 : index
    %c0_34 = arith.constant 0 : index
    %c0_35 = arith.constant 0 : index
    %39 = vector.load %arg1[%c2_33, %c0_34, %c0_35] : memref<8x2x256xf32, #tpu.memory_space<vmem>>, vector<1x2x256xf32>
    %40 = vector.shape_cast %39 : vector<1x2x256xf32> to vector<2x256xf32>
    %c0_36 = arith.constant 0 : index
    %c0_37 = arith.constant 0 : index
    %c0_38 = arith.constant 0 : index
    %41 = vector.load %arg3[%c0_36, %c0_37, %c0_38] : memref<3x256x256xbf16, #tpu.memory_space<vmem>>, vector<1x256x256xbf16>
    %42 = vector.shape_cast %41 : vector<1x256x256xbf16> to vector<256x256xbf16>
    %cst_39 = arith.constant dense<0.000000e+00> : vector<2x256xf32>
    %43 = tpu.matmul %28, %42, %cst_39 {dimension_numbers = #tpu.dot_dimension_numbers<[1], [0], [0], [1], [0, 0, 1, 1], [], []>} : vector<2x256xbf16>, vector<256x256xbf16>, vector<2x256xf32> -> vector<2x256xf32>
    %44 = arith.addf %40, %43 : vector<2x256xf32>
    %45 = math.tanh %44 : vector<2x256xf32>
    %46 = arith.truncf %45 : vector<2x256xf32> to vector<2x256xbf16>
    %c0_40 = arith.constant 0 : index
    %c0_41 = arith.constant 0 : index
    %c0_42 = arith.constant 0 : index
    %47 = vector.load %arg4[%c0_40, %c0_41, %c0_42] : memref<2x256x256xbf16, #tpu.memory_space<vmem>>, vector<1x256x256xbf16>
    %48 = vector.shape_cast %47 : vector<1x256x256xbf16> to vector<256x256xbf16>
    %cst_43 = arith.constant dense<0.000000e+00> : vector<2x256xf32>
    %49 = tpu.matmul %28, %48, %cst_43 {dimension_numbers = #tpu.dot_dimension_numbers<[1], [0], [0], [1], [0, 0, 1, 1], [], []>} : vector<2x256xbf16>, vector<256x256xbf16>, vector<2x256xf32> -> vector<2x256xf32>
    %c1_44 = arith.constant 1 : index
    %c0_45 = arith.constant 0 : index
    %c0_46 = arith.constant 0 : index
    %50 = vector.load %arg3[%c1_44, %c0_45, %c0_46] : memref<3x256x256xbf16, #tpu.memory_space<vmem>>, vector<1x256x256xbf16>
    %51 = vector.shape_cast %50 : vector<1x256x256xbf16> to vector<256x256xbf16>
    %cst_47 = arith.constant dense<0.000000e+00> : vector<2x256xf32>
    %52 = tpu.matmul %38, %51, %cst_47 {dimension_numbers = #tpu.dot_dimension_numbers<[1], [0], [0], [1], [0, 0, 1, 1], [], []>} : vector<2x256xbf16>, vector<256x256xbf16>, vector<2x256xf32> -> vector<2x256xf32>
    %53 = arith.addf %49, %52 : vector<2x256xf32>
    %54 = arith.addf %53, %1 : vector<2x256xf32>
    %55 = math.tanh %54 : vector<2x256xf32>
    %56 = arith.truncf %55 : vector<2x256xf32> to vector<2x256xbf16>
    %c1_48 = arith.constant 1 : index
    %c0_49 = arith.constant 0 : index
    %c0_50 = arith.constant 0 : index
    %57 = vector.load %arg4[%c1_48, %c0_49, %c0_50] : memref<2x256x256xbf16, #tpu.memory_space<vmem>>, vector<1x256x256xbf16>
    %58 = vector.shape_cast %57 : vector<1x256x256xbf16> to vector<256x256xbf16>
    %cst_51 = arith.constant dense<0.000000e+00> : vector<2x256xf32>
    %59 = tpu.matmul %38, %58, %cst_51 {dimension_numbers = #tpu.dot_dimension_numbers<[1], [0], [0], [1], [0, 0, 1, 1], [], []>} : vector<2x256xbf16>, vector<256x256xbf16>, vector<2x256xf32> -> vector<2x256xf32>
    %c2_52 = arith.constant 2 : index
    %c0_53 = arith.constant 0 : index
    %c0_54 = arith.constant 0 : index
    %60 = vector.load %arg3[%c2_52, %c0_53, %c0_54] : memref<3x256x256xbf16, #tpu.memory_space<vmem>>, vector<1x256x256xbf16>
    %61 = vector.shape_cast %60 : vector<1x256x256xbf16> to vector<256x256xbf16>
    %cst_55 = arith.constant dense<0.000000e+00> : vector<2x256xf32>
    %62 = tpu.matmul %12, %61, %cst_55 {dimension_numbers = #tpu.dot_dimension_numbers<[1], [0], [0], [1], [0, 0, 1, 1], [], []>} : vector<2x256xbf16>, vector<256x256xbf16>, vector<2x256xf32> -> vector<2x256xf32>
    %63 = arith.addf %59, %62 : vector<2x256xf32>
    %64 = arith.addf %63, %3 : vector<2x256xf32>
    %65 = math.tanh %64 : vector<2x256xf32>
    %66 = arith.truncf %65 : vector<2x256xf32> to vector<2x256xbf16>
    %c3 = arith.constant 3 : index
    %c0_56 = arith.constant 0 : index
    %c0_57 = arith.constant 0 : index
    %67 = vector.load %arg1[%c3, %c0_56, %c0_57] : memref<8x2x256xf32, #tpu.memory_space<vmem>>, vector<1x2x256xf32>
    %68 = vector.shape_cast %67 : vector<1x2x256xf32> to vector<2x256xf32>
    %c0_58 = arith.constant 0 : index
    %c0_59 = arith.constant 0 : index
    %c0_60 = arith.constant 0 : index
    %69 = vector.load %arg3[%c0_58, %c0_59, %c0_60] : memref<3x256x256xbf16, #tpu.memory_space<vmem>>, vector<1x256x256xbf16>
    %70 = vector.shape_cast %69 : vector<1x256x256xbf16> to vector<256x256xbf16>
    %cst_61 = arith.constant dense<0.000000e+00> : vector<2x256xf32>
    %71 = tpu.matmul %46, %70, %cst_61 {dimension_numbers = #tpu.dot_dimension_numbers<[1], [0], [0], [1], [0, 0, 1, 1], [], []>} : vector<2x256xbf16>, vector<256x256xbf16>, vector<2x256xf32> -> vector<2x256xf32>
    %72 = arith.addf %68, %71 : vector<2x256xf32>
    %73 = math.tanh %72 : vector<2x256xf32>
    %74 = arith.truncf %73 : vector<2x256xf32> to vector<2x256xbf16>
    %c0_62 = arith.constant 0 : index
    %c0_63 = arith.constant 0 : index
    %c0_64 = arith.constant 0 : index
    %75 = vector.load %arg4[%c0_62, %c0_63, %c0_64] : memref<2x256x256xbf16, #tpu.memory_space<vmem>>, vector<1x256x256xbf16>
    %76 = vector.shape_cast %75 : vector<1x256x256xbf16> to vector<256x256xbf16>
    %cst_65 = arith.constant dense<0.000000e+00> : vector<2x256xf32>
    %77 = tpu.matmul %46, %76, %cst_65 {dimension_numbers = #tpu.dot_dimension_numbers<[1], [0], [0], [1], [0, 0, 1, 1], [], []>} : vector<2x256xbf16>, vector<256x256xbf16>, vector<2x256xf32> -> vector<2x256xf32>
    %c1_66 = arith.constant 1 : index
    %c0_67 = arith.constant 0 : index
    %c0_68 = arith.constant 0 : index
    %78 = vector.load %arg3[%c1_66, %c0_67, %c0_68] : memref<3x256x256xbf16, #tpu.memory_space<vmem>>, vector<1x256x256xbf16>
    %79 = vector.shape_cast %78 : vector<1x256x256xbf16> to vector<256x256xbf16>
    %cst_69 = arith.constant dense<0.000000e+00> : vector<2x256xf32>
    %80 = tpu.matmul %56, %79, %cst_69 {dimension_numbers = #tpu.dot_dimension_numbers<[1], [0], [0], [1], [0, 0, 1, 1], [], []>} : vector<2x256xbf16>, vector<256x256xbf16>, vector<2x256xf32> -> vector<2x256xf32>
    %81 = arith.addf %77, %80 : vector<2x256xf32>
    %82 = arith.addf %81, %1 : vector<2x256xf32>
    %83 = math.tanh %82 : vector<2x256xf32>
    %84 = arith.truncf %83 : vector<2x256xf32> to vector<2x256xbf16>
    %c1_70 = arith.constant 1 : index
    %c0_71 = arith.constant 0 : index
    %c0_72 = arith.constant 0 : index
    %85 = vector.load %arg4[%c1_70, %c0_71, %c0_72] : memref<2x256x256xbf16, #tpu.memory_space<vmem>>, vector<1x256x256xbf16>
    %86 = vector.shape_cast %85 : vector<1x256x256xbf16> to vector<256x256xbf16>
    %cst_73 = arith.constant dense<0.000000e+00> : vector<2x256xf32>
    %87 = tpu.matmul %56, %86, %cst_73 {dimension_numbers = #tpu.dot_dimension_numbers<[1], [0], [0], [1], [0, 0, 1, 1], [], []>} : vector<2x256xbf16>, vector<256x256xbf16>, vector<2x256xf32> -> vector<2x256xf32>
    %c2_74 = arith.constant 2 : index
    %c0_75 = arith.constant 0 : index
    %c0_76 = arith.constant 0 : index
    %88 = vector.load %arg3[%c2_74, %c0_75, %c0_76] : memref<3x256x256xbf16, #tpu.memory_space<vmem>>, vector<1x256x256xbf16>
    %89 = vector.shape_cast %88 : vector<1x256x256xbf16> to vector<256x256xbf16>
    %cst_77 = arith.constant dense<0.000000e+00> : vector<2x256xf32>
    %90 = tpu.matmul %66, %89, %cst_77 {dimension_numbers = #tpu.dot_dimension_numbers<[1], [0], [0], [1], [0, 0, 1, 1], [], []>} : vector<2x256xbf16>, vector<256x256xbf16>, vector<2x256xf32> -> vector<2x256xf32>
    %91 = arith.addf %87, %90 : vector<2x256xf32>
    %92 = arith.addf %91, %3 : vector<2x256xf32>
    %93 = math.tanh %92 : vector<2x256xf32>
    %94 = arith.truncf %93 : vector<2x256xf32> to vector<2x256xbf16>
    %c4 = arith.constant 4 : index
    %c0_78 = arith.constant 0 : index
    %c0_79 = arith.constant 0 : index
    %95 = vector.load %arg1[%c4, %c0_78, %c0_79] : memref<8x2x256xf32, #tpu.memory_space<vmem>>, vector<1x2x256xf32>
    %96 = vector.shape_cast %95 : vector<1x2x256xf32> to vector<2x256xf32>
    %c0_80 = arith.constant 0 : index
    %c0_81 = arith.constant 0 : index
    %c0_82 = arith.constant 0 : index
    %97 = vector.load %arg3[%c0_80, %c0_81, %c0_82] : memref<3x256x256xbf16, #tpu.memory_space<vmem>>, vector<1x256x256xbf16>
    %98 = vector.shape_cast %97 : vector<1x256x256xbf16> to vector<256x256xbf16>
    %cst_83 = arith.constant dense<0.000000e+00> : vector<2x256xf32>
    %99 = tpu.matmul %74, %98, %cst_83 {dimension_numbers = #tpu.dot_dimension_numbers<[1], [0], [0], [1], [0, 0, 1, 1], [], []>} : vector<2x256xbf16>, vector<256x256xbf16>, vector<2x256xf32> -> vector<2x256xf32>
    %100 = arith.addf %96, %99 : vector<2x256xf32>
    %101 = math.tanh %100 : vector<2x256xf32>
    %102 = arith.truncf %101 : vector<2x256xf32> to vector<2x256xbf16>
    %c0_84 = arith.constant 0 : index
    %c0_85 = arith.constant 0 : index
    %c0_86 = arith.constant 0 : index
    %103 = vector.load %arg4[%c0_84, %c0_85, %c0_86] : memref<2x256x256xbf16, #tpu.memory_space<vmem>>, vector<1x256x256xbf16>
    %104 = vector.shape_cast %103 : vector<1x256x256xbf16> to vector<256x256xbf16>
    %cst_87 = arith.constant dense<0.000000e+00> : vector<2x256xf32>
    %105 = tpu.matmul %74, %104, %cst_87 {dimension_numbers = #tpu.dot_dimension_numbers<[1], [0], [0], [1], [0, 0, 1, 1], [], []>} : vector<2x256xbf16>, vector<256x256xbf16>, vector<2x256xf32> -> vector<2x256xf32>
    %c1_88 = arith.constant 1 : index
    %c0_89 = arith.constant 0 : index
    %c0_90 = arith.constant 0 : index
    %106 = vector.load %arg3[%c1_88, %c0_89, %c0_90] : memref<3x256x256xbf16, #tpu.memory_space<vmem>>, vector<1x256x256xbf16>
    %107 = vector.shape_cast %106 : vector<1x256x256xbf16> to vector<256x256xbf16>
    %cst_91 = arith.constant dense<0.000000e+00> : vector<2x256xf32>
    %108 = tpu.matmul %84, %107, %cst_91 {dimension_numbers = #tpu.dot_dimension_numbers<[1], [0], [0], [1], [0, 0, 1, 1], [], []>} : vector<2x256xbf16>, vector<256x256xbf16>, vector<2x256xf32> -> vector<2x256xf32>
    %109 = arith.addf %105, %108 : vector<2x256xf32>
    %110 = arith.addf %109, %1 : vector<2x256xf32>
    %111 = math.tanh %110 : vector<2x256xf32>
    %112 = arith.truncf %111 : vector<2x256xf32> to vector<2x256xbf16>
    %c1_92 = arith.constant 1 : index
    %c0_93 = arith.constant 0 : index
    %c0_94 = arith.constant 0 : index
    %113 = vector.load %arg4[%c1_92, %c0_93, %c0_94] : memref<2x256x256xbf16, #tpu.memory_space<vmem>>, vector<1x256x256xbf16>
    %114 = vector.shape_cast %113 : vector<1x256x256xbf16> to vector<256x256xbf16>
    %cst_95 = arith.constant dense<0.000000e+00> : vector<2x256xf32>
    %115 = tpu.matmul %84, %114, %cst_95 {dimension_numbers = #tpu.dot_dimension_numbers<[1], [0], [0], [1], [0, 0, 1, 1], [], []>} : vector<2x256xbf16>, vector<256x256xbf16>, vector<2x256xf32> -> vector<2x256xf32>
    %c2_96 = arith.constant 2 : index
    %c0_97 = arith.constant 0 : index
    %c0_98 = arith.constant 0 : index
    %116 = vector.load %arg3[%c2_96, %c0_97, %c0_98] : memref<3x256x256xbf16, #tpu.memory_space<vmem>>, vector<1x256x256xbf16>
    %117 = vector.shape_cast %116 : vector<1x256x256xbf16> to vector<256x256xbf16>
    %cst_99 = arith.constant dense<0.000000e+00> : vector<2x256xf32>
    %118 = tpu.matmul %94, %117, %cst_99 {dimension_numbers = #tpu.dot_dimension_numbers<[1], [0], [0], [1], [0, 0, 1, 1], [], []>} : vector<2x256xbf16>, vector<256x256xbf16>, vector<2x256xf32> -> vector<2x256xf32>
    %119 = arith.addf %115, %118 : vector<2x256xf32>
    %120 = arith.addf %119, %3 : vector<2x256xf32>
    %121 = math.tanh %120 : vector<2x256xf32>
    %122 = arith.truncf %121 : vector<2x256xf32> to vector<2x256xbf16>
    %c5 = arith.constant 5 : index
    %c0_100 = arith.constant 0 : index
    %c0_101 = arith.constant 0 : index
    %123 = vector.load %arg1[%c5, %c0_100, %c0_101] : memref<8x2x256xf32, #tpu.memory_space<vmem>>, vector<1x2x256xf32>
    %124 = vector.shape_cast %123 : vector<1x2x256xf32> to vector<2x256xf32>
    %c0_102 = arith.constant 0 : index
    %c0_103 = arith.constant 0 : index
    %c0_104 = arith.constant 0 : index
    %125 = vector.load %arg3[%c0_102, %c0_103, %c0_104] : memref<3x256x256xbf16, #tpu.memory_space<vmem>>, vector<1x256x256xbf16>
    %126 = vector.shape_cast %125 : vector<1x256x256xbf16> to vector<256x256xbf16>
    %cst_105 = arith.constant dense<0.000000e+00> : vector<2x256xf32>
    %127 = tpu.matmul %102, %126, %cst_105 {dimension_numbers = #tpu.dot_dimension_numbers<[1], [0], [0], [1], [0, 0, 1, 1], [], []>} : vector<2x256xbf16>, vector<256x256xbf16>, vector<2x256xf32> -> vector<2x256xf32>
    %128 = arith.addf %124, %127 : vector<2x256xf32>
    %129 = math.tanh %128 : vector<2x256xf32>
    %130 = arith.truncf %129 : vector<2x256xf32> to vector<2x256xbf16>
    %c0_106 = arith.constant 0 : index
    %c0_107 = arith.constant 0 : index
    %c0_108 = arith.constant 0 : index
    %131 = vector.load %arg4[%c0_106, %c0_107, %c0_108] : memref<2x256x256xbf16, #tpu.memory_space<vmem>>, vector<1x256x256xbf16>
    %132 = vector.shape_cast %131 : vector<1x256x256xbf16> to vector<256x256xbf16>
    %cst_109 = arith.constant dense<0.000000e+00> : vector<2x256xf32>
    %133 = tpu.matmul %102, %132, %cst_109 {dimension_numbers = #tpu.dot_dimension_numbers<[1], [0], [0], [1], [0, 0, 1, 1], [], []>} : vector<2x256xbf16>, vector<256x256xbf16>, vector<2x256xf32> -> vector<2x256xf32>
    %c1_110 = arith.constant 1 : index
    %c0_111 = arith.constant 0 : index
    %c0_112 = arith.constant 0 : index
    %134 = vector.load %arg3[%c1_110, %c0_111, %c0_112] : memref<3x256x256xbf16, #tpu.memory_space<vmem>>, vector<1x256x256xbf16>
    %135 = vector.shape_cast %134 : vector<1x256x256xbf16> to vector<256x256xbf16>
    %cst_113 = arith.constant dense<0.000000e+00> : vector<2x256xf32>
    %136 = tpu.matmul %112, %135, %cst_113 {dimension_numbers = #tpu.dot_dimension_numbers<[1], [0], [0], [1], [0, 0, 1, 1], [], []>} : vector<2x256xbf16>, vector<256x256xbf16>, vector<2x256xf32> -> vector<2x256xf32>
    %137 = arith.addf %133, %136 : vector<2x256xf32>
    %138 = arith.addf %137, %1 : vector<2x256xf32>
    %139 = math.tanh %138 : vector<2x256xf32>
    %140 = arith.truncf %139 : vector<2x256xf32> to vector<2x256xbf16>
    %c1_114 = arith.constant 1 : index
    %c0_115 = arith.constant 0 : index
    %c0_116 = arith.constant 0 : index
    %141 = vector.load %arg4[%c1_114, %c0_115, %c0_116] : memref<2x256x256xbf16, #tpu.memory_space<vmem>>, vector<1x256x256xbf16>
    %142 = vector.shape_cast %141 : vector<1x256x256xbf16> to vector<256x256xbf16>
    %cst_117 = arith.constant dense<0.000000e+00> : vector<2x256xf32>
    %143 = tpu.matmul %112, %142, %cst_117 {dimension_numbers = #tpu.dot_dimension_numbers<[1], [0], [0], [1], [0, 0, 1, 1], [], []>} : vector<2x256xbf16>, vector<256x256xbf16>, vector<2x256xf32> -> vector<2x256xf32>
    %c2_118 = arith.constant 2 : index
    %c0_119 = arith.constant 0 : index
    %c0_120 = arith.constant 0 : index
    %144 = vector.load %arg3[%c2_118, %c0_119, %c0_120] : memref<3x256x256xbf16, #tpu.memory_space<vmem>>, vector<1x256x256xbf16>
    %145 = vector.shape_cast %144 : vector<1x256x256xbf16> to vector<256x256xbf16>
    %cst_121 = arith.constant dense<0.000000e+00> : vector<2x256xf32>
    %146 = tpu.matmul %122, %145, %cst_121 {dimension_numbers = #tpu.dot_dimension_numbers<[1], [0], [0], [1], [0, 0, 1, 1], [], []>} : vector<2x256xbf16>, vector<256x256xbf16>, vector<2x256xf32> -> vector<2x256xf32>
    %147 = arith.addf %143, %146 : vector<2x256xf32>
    %148 = arith.addf %147, %3 : vector<2x256xf32>
    %149 = math.tanh %148 : vector<2x256xf32>
    %150 = arith.truncf %149 : vector<2x256xf32> to vector<2x256xbf16>
    %c6 = arith.constant 6 : index
    %c0_122 = arith.constant 0 : index
    %c0_123 = arith.constant 0 : index
    %151 = vector.load %arg1[%c6, %c0_122, %c0_123] : memref<8x2x256xf32, #tpu.memory_space<vmem>>, vector<1x2x256xf32>
    %152 = vector.shape_cast %151 : vector<1x2x256xf32> to vector<2x256xf32>
    %c0_124 = arith.constant 0 : index
    %c0_125 = arith.constant 0 : index
    %c0_126 = arith.constant 0 : index
    %153 = vector.load %arg3[%c0_124, %c0_125, %c0_126] : memref<3x256x256xbf16, #tpu.memory_space<vmem>>, vector<1x256x256xbf16>
    %154 = vector.shape_cast %153 : vector<1x256x256xbf16> to vector<256x256xbf16>
    %cst_127 = arith.constant dense<0.000000e+00> : vector<2x256xf32>
    %155 = tpu.matmul %130, %154, %cst_127 {dimension_numbers = #tpu.dot_dimension_numbers<[1], [0], [0], [1], [0, 0, 1, 1], [], []>} : vector<2x256xbf16>, vector<256x256xbf16>, vector<2x256xf32> -> vector<2x256xf32>
    %156 = arith.addf %152, %155 : vector<2x256xf32>
    %157 = math.tanh %156 : vector<2x256xf32>
    %158 = arith.truncf %157 : vector<2x256xf32> to vector<2x256xbf16>
    %c0_128 = arith.constant 0 : index
    %c0_129 = arith.constant 0 : index
    %c0_130 = arith.constant 0 : index
    %159 = vector.load %arg4[%c0_128, %c0_129, %c0_130] : memref<2x256x256xbf16, #tpu.memory_space<vmem>>, vector<1x256x256xbf16>
    %160 = vector.shape_cast %159 : vector<1x256x256xbf16> to vector<256x256xbf16>
    %cst_131 = arith.constant dense<0.000000e+00> : vector<2x256xf32>
    %161 = tpu.matmul %130, %160, %cst_131 {dimension_numbers = #tpu.dot_dimension_numbers<[1], [0], [0], [1], [0, 0, 1, 1], [], []>} : vector<2x256xbf16>, vector<256x256xbf16>, vector<2x256xf32> -> vector<2x256xf32>
    %c1_132 = arith.constant 1 : index
    %c0_133 = arith.constant 0 : index
    %c0_134 = arith.constant 0 : index
    %162 = vector.load %arg3[%c1_132, %c0_133, %c0_134] : memref<3x256x256xbf16, #tpu.memory_space<vmem>>, vector<1x256x256xbf16>
    %163 = vector.shape_cast %162 : vector<1x256x256xbf16> to vector<256x256xbf16>
    %cst_135 = arith.constant dense<0.000000e+00> : vector<2x256xf32>
    %164 = tpu.matmul %140, %163, %cst_135 {dimension_numbers = #tpu.dot_dimension_numbers<[1], [0], [0], [1], [0, 0, 1, 1], [], []>} : vector<2x256xbf16>, vector<256x256xbf16>, vector<2x256xf32> -> vector<2x256xf32>
    %165 = arith.addf %161, %164 : vector<2x256xf32>
    %166 = arith.addf %165, %1 : vector<2x256xf32>
    %167 = math.tanh %166 : vector<2x256xf32>
    %168 = arith.truncf %167 : vector<2x256xf32> to vector<2x256xbf16>
    %c1_136 = arith.constant 1 : index
    %c0_137 = arith.constant 0 : index
    %c0_138 = arith.constant 0 : index
    %169 = vector.load %arg4[%c1_136, %c0_137, %c0_138] : memref<2x256x256xbf16, #tpu.memory_space<vmem>>, vector<1x256x256xbf16>
    %170 = vector.shape_cast %169 : vector<1x256x256xbf16> to vector<256x256xbf16>
    %cst_139 = arith.constant dense<0.000000e+00> : vector<2x256xf32>
    %171 = tpu.matmul %140, %170, %cst_139 {dimension_numbers = #tpu.dot_dimension_numbers<[1], [0], [0], [1], [0, 0, 1, 1], [], []>} : vector<2x256xbf16>, vector<256x256xbf16>, vector<2x256xf32> -> vector<2x256xf32>
    %c2_140 = arith.constant 2 : index
    %c0_141 = arith.constant 0 : index
    %c0_142 = arith.constant 0 : index
    %172 = vector.load %arg3[%c2_140, %c0_141, %c0_142] : memref<3x256x256xbf16, #tpu.memory_space<vmem>>, vector<1x256x256xbf16>
    %173 = vector.shape_cast %172 : vector<1x256x256xbf16> to vector<256x256xbf16>
    %cst_143 = arith.constant dense<0.000000e+00> : vector<2x256xf32>
    %174 = tpu.matmul %150, %173, %cst_143 {dimension_numbers = #tpu.dot_dimension_numbers<[1], [0], [0], [1], [0, 0, 1, 1], [], []>} : vector<2x256xbf16>, vector<256x256xbf16>, vector<2x256xf32> -> vector<2x256xf32>
    %175 = arith.addf %171, %174 : vector<2x256xf32>
    %176 = arith.addf %175, %3 : vector<2x256xf32>
    %177 = math.tanh %176 : vector<2x256xf32>
    %178 = arith.truncf %177 : vector<2x256xf32> to vector<2x256xbf16>
    %c7 = arith.constant 7 : index
    %c0_144 = arith.constant 0 : index
    %c0_145 = arith.constant 0 : index
    %179 = vector.load %arg1[%c7, %c0_144, %c0_145] : memref<8x2x256xf32, #tpu.memory_space<vmem>>, vector<1x2x256xf32>
    %180 = vector.shape_cast %179 : vector<1x2x256xf32> to vector<2x256xf32>
    %c0_146 = arith.constant 0 : index
    %c0_147 = arith.constant 0 : index
    %c0_148 = arith.constant 0 : index
    %181 = vector.load %arg3[%c0_146, %c0_147, %c0_148] : memref<3x256x256xbf16, #tpu.memory_space<vmem>>, vector<1x256x256xbf16>
    %182 = vector.shape_cast %181 : vector<1x256x256xbf16> to vector<256x256xbf16>
    %cst_149 = arith.constant dense<0.000000e+00> : vector<2x256xf32>
    %183 = tpu.matmul %158, %182, %cst_149 {dimension_numbers = #tpu.dot_dimension_numbers<[1], [0], [0], [1], [0, 0, 1, 1], [], []>} : vector<2x256xbf16>, vector<256x256xbf16>, vector<2x256xf32> -> vector<2x256xf32>
    %184 = arith.addf %180, %183 : vector<2x256xf32>
    %185 = math.tanh %184 : vector<2x256xf32>
    %186 = arith.truncf %185 : vector<2x256xf32> to vector<2x256xbf16>
    %c0_150 = arith.constant 0 : index
    %c0_151 = arith.constant 0 : index
    %c0_152 = arith.constant 0 : index
    %187 = vector.load %arg4[%c0_150, %c0_151, %c0_152] : memref<2x256x256xbf16, #tpu.memory_space<vmem>>, vector<1x256x256xbf16>
    %188 = vector.shape_cast %187 : vector<1x256x256xbf16> to vector<256x256xbf16>
    %cst_153 = arith.constant dense<0.000000e+00> : vector<2x256xf32>
    %189 = tpu.matmul %158, %188, %cst_153 {dimension_numbers = #tpu.dot_dimension_numbers<[1], [0], [0], [1], [0, 0, 1, 1], [], []>} : vector<2x256xbf16>, vector<256x256xbf16>, vector<2x256xf32> -> vector<2x256xf32>
    %c1_154 = arith.constant 1 : index
    %c0_155 = arith.constant 0 : index
    %c0_156 = arith.constant 0 : index
    %190 = vector.load %arg3[%c1_154, %c0_155, %c0_156] : memref<3x256x256xbf16, #tpu.memory_space<vmem>>, vector<1x256x256xbf16>
    %191 = vector.shape_cast %190 : vector<1x256x256xbf16> to vector<256x256xbf16>
    %cst_157 = arith.constant dense<0.000000e+00> : vector<2x256xf32>
    %192 = tpu.matmul %168, %191, %cst_157 {dimension_numbers = #tpu.dot_dimension_numbers<[1], [0], [0], [1], [0, 0, 1, 1], [], []>} : vector<2x256xbf16>, vector<256x256xbf16>, vector<2x256xf32> -> vector<2x256xf32>
    %193 = arith.addf %189, %192 : vector<2x256xf32>
    %194 = arith.addf %193, %1 : vector<2x256xf32>
    %195 = math.tanh %194 : vector<2x256xf32>
    %196 = arith.truncf %195 : vector<2x256xf32> to vector<2x256xbf16>
    %c1_158 = arith.constant 1 : index
    %c0_159 = arith.constant 0 : index
    %c0_160 = arith.constant 0 : index
    %197 = vector.load %arg4[%c1_158, %c0_159, %c0_160] : memref<2x256x256xbf16, #tpu.memory_space<vmem>>, vector<1x256x256xbf16>
    %198 = vector.shape_cast %197 : vector<1x256x256xbf16> to vector<256x256xbf16>
    %cst_161 = arith.constant dense<0.000000e+00> : vector<2x256xf32>
    %199 = tpu.matmul %168, %198, %cst_161 {dimension_numbers = #tpu.dot_dimension_numbers<[1], [0], [0], [1], [0, 0, 1, 1], [], []>} : vector<2x256xbf16>, vector<256x256xbf16>, vector<2x256xf32> -> vector<2x256xf32>
    %c2_162 = arith.constant 2 : index
    %c0_163 = arith.constant 0 : index
    %c0_164 = arith.constant 0 : index
    %200 = vector.load %arg3[%c2_162, %c0_163, %c0_164] : memref<3x256x256xbf16, #tpu.memory_space<vmem>>, vector<1x256x256xbf16>
    %201 = vector.shape_cast %200 : vector<1x256x256xbf16> to vector<256x256xbf16>
    %cst_165 = arith.constant dense<0.000000e+00> : vector<2x256xf32>
    %202 = tpu.matmul %178, %201, %cst_165 {dimension_numbers = #tpu.dot_dimension_numbers<[1], [0], [0], [1], [0, 0, 1, 1], [], []>} : vector<2x256xbf16>, vector<256x256xbf16>, vector<2x256xf32> -> vector<2x256xf32>
    %203 = arith.addf %199, %202 : vector<2x256xf32>
    %204 = arith.addf %203, %3 : vector<2x256xf32>
    %205 = math.tanh %204 : vector<2x256xf32>
    %206 = arith.truncf %205 : vector<2x256xf32> to vector<2x256xbf16>
    %c0_166 = arith.constant 0 : index
    %c0_167 = arith.constant 0 : index
    %c0_168 = arith.constant 0 : index
    %207 = vector.load %arg4[%c0_166, %c0_167, %c0_168] : memref<2x256x256xbf16, #tpu.memory_space<vmem>>, vector<1x256x256xbf16>
    %208 = vector.shape_cast %207 : vector<1x256x256xbf16> to vector<256x256xbf16>
    %cst_169 = arith.constant dense<0.000000e+00> : vector<2x256xf32>
    %209 = tpu.matmul %186, %208, %cst_169 {dimension_numbers = #tpu.dot_dimension_numbers<[1], [0], [0], [1], [0, 0, 1, 1], [], []>} : vector<2x256xbf16>, vector<256x256xbf16>, vector<2x256xf32> -> vector<2x256xf32>
    %c1_170 = arith.constant 1 : index
    %c0_171 = arith.constant 0 : index
    %c0_172 = arith.constant 0 : index
    %210 = vector.load %arg3[%c1_170, %c0_171, %c0_172] : memref<3x256x256xbf16, #tpu.memory_space<vmem>>, vector<1x256x256xbf16>
    %211 = vector.shape_cast %210 : vector<1x256x256xbf16> to vector<256x256xbf16>
    %cst_173 = arith.constant dense<0.000000e+00> : vector<2x256xf32>
    %212 = tpu.matmul %196, %211, %cst_173 {dimension_numbers = #tpu.dot_dimension_numbers<[1], [0], [0], [1], [0, 0, 1, 1], [], []>} : vector<2x256xbf16>, vector<256x256xbf16>, vector<2x256xf32> -> vector<2x256xf32>
    %213 = arith.addf %209, %212 : vector<2x256xf32>
    %214 = arith.addf %213, %1 : vector<2x256xf32>
    %215 = math.tanh %214 : vector<2x256xf32>
    %216 = arith.truncf %215 : vector<2x256xf32> to vector<2x256xbf16>
    %c1_174 = arith.constant 1 : index
    %c0_175 = arith.constant 0 : index
    %c0_176 = arith.constant 0 : index
    %217 = vector.load %arg4[%c1_174, %c0_175, %c0_176] : memref<2x256x256xbf16, #tpu.memory_space<vmem>>, vector<1x256x256xbf16>
    %218 = vector.shape_cast %217 : vector<1x256x256xbf16> to vector<256x256xbf16>
    %cst_177 = arith.constant dense<0.000000e+00> : vector<2x256xf32>
    %219 = tpu.matmul %196, %218, %cst_177 {dimension_numbers = #tpu.dot_dimension_numbers<[1], [0], [0], [1], [0, 0, 1, 1], [], []>} : vector<2x256xbf16>, vector<256x256xbf16>, vector<2x256xf32> -> vector<2x256xf32>
    %c2_178 = arith.constant 2 : index
    %c0_179 = arith.constant 0 : index
    %c0_180 = arith.constant 0 : index
    %220 = vector.load %arg3[%c2_178, %c0_179, %c0_180] : memref<3x256x256xbf16, #tpu.memory_space<vmem>>, vector<1x256x256xbf16>
    %221 = vector.shape_cast %220 : vector<1x256x256xbf16> to vector<256x256xbf16>
    %cst_181 = arith.constant dense<0.000000e+00> : vector<2x256xf32>
    %222 = tpu.matmul %206, %221, %cst_181 {dimension_numbers = #tpu.dot_dimension_numbers<[1], [0], [0], [1], [0, 0, 1, 1], [], []>} : vector<2x256xbf16>, vector<256x256xbf16>, vector<2x256xf32> -> vector<2x256xf32>
    %223 = arith.addf %219, %222 : vector<2x256xf32>
    %224 = arith.addf %223, %3 : vector<2x256xf32>
    %225 = math.tanh %224 : vector<2x256xf32>
    %226 = arith.truncf %225 : vector<2x256xf32> to vector<2x256xbf16>
    %c1_182 = arith.constant 1 : index
    %c0_183 = arith.constant 0 : index
    %c0_184 = arith.constant 0 : index
    %227 = vector.load %arg4[%c1_182, %c0_183, %c0_184] : memref<2x256x256xbf16, #tpu.memory_space<vmem>>, vector<1x256x256xbf16>
    %228 = vector.shape_cast %227 : vector<1x256x256xbf16> to vector<256x256xbf16>
    %cst_185 = arith.constant dense<0.000000e+00> : vector<2x256xf32>
    %229 = tpu.matmul %216, %228, %cst_185 {dimension_numbers = #tpu.dot_dimension_numbers<[1], [0], [0], [1], [0, 0, 1, 1], [], []>} : vector<2x256xbf16>, vector<256x256xbf16>, vector<2x256xf32> -> vector<2x256xf32>
    %c2_186 = arith.constant 2 : index
    %c0_187 = arith.constant 0 : index
    %c0_188 = arith.constant 0 : index
    %230 = vector.load %arg3[%c2_186, %c0_187, %c0_188] : memref<3x256x256xbf16, #tpu.memory_space<vmem>>, vector<1x256x256xbf16>
    %231 = vector.shape_cast %230 : vector<1x256x256xbf16> to vector<256x256xbf16>
    %cst_189 = arith.constant dense<0.000000e+00> : vector<2x256xf32>
    %232 = tpu.matmul %226, %231, %cst_189 {dimension_numbers = #tpu.dot_dimension_numbers<[1], [0], [0], [1], [0, 0, 1, 1], [], []>} : vector<2x256xbf16>, vector<256x256xbf16>, vector<2x256xf32> -> vector<2x256xf32>
    %233 = arith.addf %229, %232 : vector<2x256xf32>
    %234 = arith.addf %233, %3 : vector<2x256xf32>
    %235 = math.tanh %234 : vector<2x256xf32>
    %236 = arith.truncf %235 : vector<2x256xf32> to vector<2x256xbf16>
    %c0_190 = arith.constant 0 : index
    %c0_191 = arith.constant 0 : index
    %c0_192 = arith.constant 0 : index
    %237 = vector.load %arg9[%c0_190, %c0_191, %c0_192] : memref<3x2x256xf32, #tpu.memory_space<vmem>>, vector<1x2x256xf32>
    %238 = vector.shape_cast %237 : vector<1x2x256xf32> to vector<2x256xf32>
    %239 = vector.shape_cast %185 : vector<2x256xf32> to vector<1x2x256xf32>
    tpu.vector_store %arg9[%c0_190, %c0_191, %c0_192], %239 {strides = array<i32>} : memref<3x2x256xf32, #tpu.memory_space<vmem>>, vector<1x2x256xf32>,
    %c1_193 = arith.constant 1 : index
    %c0_194 = arith.constant 0 : index
    %c0_195 = arith.constant 0 : index
    %240 = vector.load %arg9[%c1_193, %c0_194, %c0_195] : memref<3x2x256xf32, #tpu.memory_space<vmem>>, vector<1x2x256xf32>
    %241 = vector.shape_cast %240 : vector<1x2x256xf32> to vector<2x256xf32>
    %242 = vector.shape_cast %215 : vector<2x256xf32> to vector<1x2x256xf32>
    tpu.vector_store %arg9[%c1_193, %c0_194, %c0_195], %242 {strides = array<i32>} : memref<3x2x256xf32, #tpu.memory_space<vmem>>, vector<1x2x256xf32>,
    %c2_196 = arith.constant 2 : index
    %c0_197 = arith.constant 0 : index
    %c0_198 = arith.constant 0 : index
    %243 = vector.load %arg9[%c2_196, %c0_197, %c0_198] : memref<3x2x256xf32, #tpu.memory_space<vmem>>, vector<1x2x256xf32>
    %244 = vector.shape_cast %243 : vector<1x2x256xf32> to vector<2x256xf32>
    %245 = vector.shape_cast %235 : vector<2x256xf32> to vector<1x2x256xf32>
    tpu.vector_store %arg9[%c2_196, %c0_197, %c0_198], %245 {strides = array<i32>} : memref<3x2x256xf32, #tpu.memory_space<vmem>>, vector<1x2x256xf32>,
    %c0_199 = arith.constant 0 : index
    %c0_200 = arith.constant 0 : index
    %246 = vector.load %arg6[%c0_199, %c0_200] : memref<256x3xbf16, #tpu.memory_space<vmem>>, vector<256x3xbf16>
    %cst_201 = arith.constant dense<0.000000e+00> : vector<2x3xf32>
    %247 = tpu.matmul %236, %246, %cst_201 {dimension_numbers = #tpu.dot_dimension_numbers<[1], [0], [0], [1], [0, 0, 1, 1], [], []>} : vector<2x256xbf16>, vector<256x3xbf16>, vector<2x3xf32> -> vector<2x3xf32>
    %c0_202 = arith.constant 0 : index
    %c0_203 = arith.constant 0 : index
    %248 = vector.load %arg7[%c0_202, %c0_203] : memref<1x3xf32, #tpu.memory_space<vmem>>, vector<1x3xf32>
    %249 = vector.broadcast %248 : vector<1x3xf32> to vector<2x3xf32>
    %250 = arith.addf %247, %249 : vector<2x3xf32>
    %c0_204 = arith.constant 0 : index
    %c0_205 = arith.constant 0 : index
    %251 = vector.load %arg8[%c0_204, %c0_205] : memref<2x3xf32, #tpu.memory_space<vmem>>, vector<2x3xf32>
    tpu.vector_store %arg8[%c0_204, %c0_205], %250 {strides = array<i32>} : memref<2x3xf32, #tpu.memory_space<vmem>>, vector<2x3xf32>,
    return
  }
  func.func @transform_0(%arg0: i32) -> (i32, i32, i32) {
    %c0_i32 = arith.constant 0 : i32
    %c0_i32_0 = arith.constant 0 : i32
    %c0_i32_1 = arith.constant 0 : i32
    %c0_i32_2 = arith.constant 0 : i32
    return %c0_i32, %c0_i32_0, %c0_i32_1 : i32, i32, i32
  }
  func.func @transform_1(%arg0: i32) -> (i32, i32, i32) {
    %c0_i32 = arith.constant 0 : i32
    %c0_i32_0 = arith.constant 0 : i32
    %c0_i32_1 = arith.constant 0 : i32
    %c0_i32_2 = arith.constant 0 : i32
    return %c0_i32, %c0_i32_0, %c0_i32_1 : i32, i32, i32
  }
  func.func @transform_2(%arg0: i32) -> (i32, i32, i32) {
    %c0_i32 = arith.constant 0 : i32
    %c0_i32_0 = arith.constant 0 : i32
    %c0_i32_1 = arith.constant 0 : i32
    %c0_i32_2 = arith.constant 0 : i32
    return %c0_i32, %c0_i32_0, %c0_i32_1 : i32, i32, i32
  }
  func.func @transform_3(%arg0: i32) -> (i32, i32, i32) {
    %c0_i32 = arith.constant 0 : i32
    %c0_i32_0 = arith.constant 0 : i32
    %c0_i32_1 = arith.constant 0 : i32
    %c0_i32_2 = arith.constant 0 : i32
    return %c0_i32, %c0_i32_0, %c0_i32_1 : i32, i32, i32
  }
  func.func @transform_4(%arg0: i32) -> (i32, i32, i32) {
    %c0_i32 = arith.constant 0 : i32
    %c0_i32_0 = arith.constant 0 : i32
    %c0_i32_1 = arith.constant 0 : i32
    %c0_i32_2 = arith.constant 0 : i32
    return %c0_i32, %c0_i32_0, %c0_i32_1 : i32, i32, i32
  }
  func.func @transform_5(%arg0: i32) -> (i32, i32) {
    %c0_i32 = arith.constant 0 : i32
    %c0_i32_0 = arith.constant 0 : i32
    %c0_i32_1 = arith.constant 0 : i32
    return %c0_i32, %c0_i32_0 : i32, i32
  }
  func.func @transform_6(%arg0: i32) -> (i32, i32) {
    %c0_i32 = arith.constant 0 : i32
    %c0_i32_0 = arith.constant 0 : i32
    %c0_i32_1 = arith.constant 0 : i32
    return %c0_i32, %c0_i32_0 : i32, i32
  }
  func.func @transform_7(%arg0: i32) -> (i32, i32) {
    %c0_i32 = arith.constant 0 : i32
    %c0_i32_0 = arith.constant 0 : i32
    %c0_i32_1 = arith.constant 0 : i32
    return %c0_i32, %c0_i32_0 : i32, i32
  }
  func.func @transform_8(%arg0: i32) -> (i32, i32, i32) {
    %c0_i32 = arith.constant 0 : i32
    %c0_i32_0 = arith.constant 0 : i32
    %c0_i32_1 = arith.constant 0 : i32
    %c0_i32_2 = arith.constant 0 : i32
    return %c0_i32, %c0_i32_0, %c0_i32_1 : i32, i32, i32
  }
}

</mosaic_0001>

<bundles_post_ra>
// kernel: simple_rnn_forward.1
= control target key start
LH: loop header
LB: loop body
LE: loop exit
PB: predicated region body
PF: predicated region fallthrough
CT: control target
= control target key end

     0   :  { %14 = vsyncpa [#allocation3], 0  ;;  %s8227_s0 = inlined_call_operand.vmem [shape: f32[8,2,256], index: 0, kind: input, shape index: {}]   ;;  %s8228_s1 = inlined_call_operand.vmem [shape: f32[3,2,256], index: 1, kind: input, shape index: {}]   ;;  %s8229_s2 = inlined_call_operand.vmem [shape: bf16[3,256,256], index: 2, kind: input, shape index: {}]   ;;  %s8230_s3 = inlined_call_operand.vmem [shape: bf16[2,256,256], index: 3, kind: input, shape index: {}]   ;;  %s8231_s4 = inlined_call_operand.vmem [shape: f32[2,2,256], index: 4, kind: input, shape index: {}]   ;;  %s8232_s5 = inlined_call_operand.vmem [shape: bf16[256,3], index: 5, kind: input, shape index: {}]   ;;  %s8233_s6 = inlined_call_operand.vmem [shape: f32[1,3], index: 6, kind: input, shape index: {}]   ;;  %s8234_s7 = inlined_call_operand.hbm [shape: f32[2,3], index: 7, kind: output, shape index: {0}]   ;;  %s8235_s8 = inlined_call_operand.hbm [shape: f32[3,2,256], index: 8, kind: output, shape index: {1}]  }
   0x1   :  { %v4334_v0 = vld [vmem:[%s8229_s2 + $0x4] ss:$8 sps:$4 sm:$0xff]   ;;  %v4339_v1 = vld [vmem:[%s8229_s2] ss:$8 sps:$4 sm:$0xff]   ;;  %v4345_v2 = vld [vmem:[%s8229_s2 + $0x14] ss:$8 sps:$4 sm:$0xff]  }
   0x2   :  { %271 = vmatprep.subr.bf16.mxu0 %v4334_v0  ;;  %340 = vmatprep.subr.bf16.mxu1 %v4334_v0  ;;  %v4352_v3 = vld [vmem:[%s8229_s2 + $0x10] ss:$8 sps:$4 sm:$0xff]   ;;  %v4359_v4 = vld [vmem:[%s8229_s2 + $0x24] ss:$8 sps:$4 sm:$0xff]   ;;  %v4366_v5 = vld [vmem:[%s8229_s2 + $0x20] ss:$8 sps:$4 sm:$0xff]  }
   0x3   :  { %272 = vmatpush1.bf16.msra.mxu0 %v4339_v1  ;;  %341 = vmatpush1.bf16.msra.mxu1 %v4339_v1  ;;  %v4373_v6 = vld [vmem:[%s8229_s2 + $0x34] ss:$8 sps:$4 sm:$0xff]   ;;  %v4380_v7 = vld [vmem:[%s8229_s2 + $0x30] ss:$8 sps:$4 sm:$0xff]   ;;  %v4387_v8 = vld [vmem:[%s8229_s2 + $0x44] ss:$8 sps:$4 sm:$0xff]  }
   0x4   :  { %273 = vmatprep.subr.bf16.mxu0 %v4345_v2  ;;  %342 = vmatprep.subr.bf16.mxu1 %v4345_v2  ;;  %v4394_v9 = vld [vmem:[%s8229_s2 + $0x40] ss:$8 sps:$4 sm:$0xff]   ;;  %v4401_v10 = vld [vmem:[%s8229_s2 + $0x54] ss:$8 sps:$4 sm:$0xff]   ;;  %v4408_v11 = vld [vmem:[%s8229_s2 + $0x50] ss:$8 sps:$4 sm:$0xff]  }
   0x5   :  { %v4415_v12 = vld [vmem:[%s8229_s2 + $0x64] ss:$8 sps:$4 sm:$0xff]   ;;  %v4421_v13 = vld [vmem:[%s8229_s2 + $0x60] ss:$8 sps:$4 sm:$0xff]   ;;  %v4431_v15 = vld [vmem:[%s8229_s2 + $0x74] ss:$8 sps:$4 sm:$0xff]  }
   0x6   :  { %v4426_v14 = vld.sshfl [vmem:[%s8228_s1] sm:$0x33 pattern:$0x76325410]  ;;  %v4442_v18 = vld [vmem:[%s8229_s2 + $0x70] ss:$8 sps:$4 sm:$0xff]  }
   0x7   :  { %274 = vmatpush1.bf16.msra.mxu0 %v4352_v3  ;;  %343 = vmatpush1.bf16.msra.mxu1 %v4352_v3  ;;  %v47_v16 = vcombine.high %v4426_v14, %v4426_v14  ;;  %v4447_v19 = vld [vmem:[%s8229_s2 + $0x84] ss:$8 sps:$4 sm:$0xff]   ;;  %v4456_v20 = vld [vmem:[%s8229_s2 + $0x80] ss:$8 sps:$4 sm:$0xff]   ;;  %v4461_v21 = vld [vmem:[%s8229_s2 + $0x94] ss:$8 sps:$4 sm:$0xff]   ;;  %v50_v35 = vpack.c.bf16 %v4426_v14, %v4426_v14 }
   0x8   :  { %275 = vmatprep.subr.bf16.mxu0 %v4359_v4  ;;  %344 = vmatprep.subr.bf16.mxu1 %v4359_v4  ;;  %v4470_v22 = vld [vmem:[%s8229_s2 + $0x90] ss:$8 sps:$4 sm:$0xff]   ;;  %v4475_v23 = vld [vmem:[%s8229_s2 + $0xa4] ss:$8 sps:$4 sm:$0xff]   ;;  %v4484_v24 = vld [vmem:[%s8229_s2 + $0xa0] ss:$8 sps:$4 sm:$0xff]  }
   0x9   :  { %v51_v17 = vpack.c.bf16 %v47_v16, %v47_v16  ;;  %v4489_v25 = vld [vmem:[%s8229_s2 + $0xb4] ss:$8 sps:$4 sm:$0xff]   ;;  %v4498_v26 = vld [vmem:[%s8229_s2 + $0xb0] ss:$8 sps:$4 sm:$0xff]   ;;  %v4503_v27 = vld [vmem:[%s8229_s2 + $0xc4] ss:$8 sps:$4 sm:$0xff]  }
   0xa   :  { %v4512_v28 = vld [vmem:[%s8229_s2 + $0xc0] ss:$8 sps:$4 sm:$0xff]   ;;  %v4517_v29 = vld [vmem:[%s8229_s2 + $0xd4] ss:$8 sps:$4 sm:$0xff]   ;;  %v4526_v30 = vld [vmem:[%s8229_s2 + $0xd0] ss:$8 sps:$4 sm:$0xff]  }
   0xb   :  { %276 = vmatpush1.bf16.msra.mxu0 %v4366_v5  ;;  %345 = vmatpush1.bf16.msra.mxu1 %v4366_v5  ;;  %v4531_v31 = vld [vmem:[%s8229_s2 + $0xe4] ss:$8 sps:$4 sm:$0xff]   ;;  %v4540_v32 = vld [vmem:[%s8229_s2 + $0xe0] ss:$8 sps:$4 sm:$0xff]   ;;  %v4545_v33 = vld [vmem:[%s8229_s2 + $0xf4] ss:$8 sps:$4 sm:$0xff]  }
   0xc   :  { %277 = vmatprep.subr.bf16.mxu0 %v4373_v6  ;;  %346 = vmatprep.subr.bf16.mxu1 %v4373_v6  ;;  %v4554_v34 = vld [vmem:[%s8229_s2 + $0xf0] ss:$8 sps:$4 sm:$0xff]  }
   0xd   :  { %303 = vmatprep.mubr.bf16.mxu0 %v51_v17 }
   0xf   :  { %278 = vmatpush1.bf16.msra.mxu0 %v4380_v7  ;;  %347 = vmatpush1.bf16.msra.mxu1 %v4380_v7 }
  0x10   :  { %279 = vmatprep.subr.bf16.mxu0 %v4387_v8  ;;  %348 = vmatprep.subr.bf16.mxu1 %v4387_v8 }
  0x13   :  { %280 = vmatpush1.bf16.msra.mxu0 %v4394_v9  ;;  %349 = vmatpush1.bf16.msra.mxu1 %v4394_v9 }
  0x14   :  { %281 = vmatprep.subr.bf16.mxu0 %v4401_v10  ;;  %350 = vmatprep.subr.bf16.mxu1 %v4401_v10 }
  0x17   :  { %282 = vmatpush1.bf16.msra.mxu0 %v4408_v11  ;;  %351 = vmatpush1.bf16.msra.mxu1 %v4408_v11 }
  0x18   :  { %283 = vmatprep.subr.bf16.mxu0 %v4415_v12  ;;  %352 = vmatprep.subr.bf16.mxu1 %v4415_v12 }
  0x1b   :  { %284 = vmatpush1.bf16.msra.mxu0 %v4421_v13  ;;  %353 = vmatpush1.bf16.msra.mxu1 %v4421_v13 }
  0x1c   :  { %285 = vmatprep.subr.bf16.mxu0 %v4431_v15  ;;  %354 = vmatprep.subr.bf16.mxu1 %v4431_v15 }
  0x1f   :  { %286 = vmatpush1.bf16.msra.mxu0 %v4442_v18  ;;  %355 = vmatpush1.bf16.msra.mxu1 %v4442_v18 }
  0x20   :  { %287 = vmatprep.subr.bf16.mxu0 %v4447_v19  ;;  %356 = vmatprep.subr.bf16.mxu1 %v4447_v19 }
  0x23   :  { %288 = vmatpush1.bf16.msra.mxu0 %v4456_v20  ;;  %357 = vmatpush1.bf16.msra.mxu1 %v4456_v20 }
  0x24   :  { %289 = vmatprep.subr.bf16.mxu0 %v4461_v21  ;;  %358 = vmatprep.subr.bf16.mxu1 %v4461_v21 }
  0x27   :  { %290 = vmatpush1.bf16.msra.mxu0 %v4470_v22  ;;  %359 = vmatpush1.bf16.msra.mxu1 %v4470_v22 }
  0x28   :  { %291 = vmatprep.subr.bf16.mxu0 %v4475_v23  ;;  %360 = vmatprep.subr.bf16.mxu1 %v4475_v23 }
  0x2b   :  { %292 = vmatpush1.bf16.msra.mxu0 %v4484_v24  ;;  %361 = vmatpush1.bf16.msra.mxu1 %v4484_v24 }
  0x2c   :  { %293 = vmatprep.subr.bf16.mxu0 %v4489_v25  ;;  %362 = vmatprep.subr.bf16.mxu1 %v4489_v25 }
  0x2f   :  { %294 = vmatpush1.bf16.msra.mxu0 %v4498_v26  ;;  %363 = vmatpush1.bf16.msra.mxu1 %v4498_v26 }
  0x30   :  { %295 = vmatprep.subr.bf16.mxu0 %v4503_v27  ;;  %364 = vmatprep.subr.bf16.mxu1 %v4503_v27 }
  0x33   :  { %296 = vmatpush1.bf16.msra.mxu0 %v4512_v28  ;;  %365 = vmatpush1.bf16.msra.mxu1 %v4512_v28 }
  0x34   :  { %297 = vmatprep.subr.bf16.mxu0 %v4517_v29  ;;  %366 = vmatprep.subr.bf16.mxu1 %v4517_v29 }
  0x37   :  { %298 = vmatpush1.bf16.msra.mxu0 %v4526_v30  ;;  %367 = vmatpush1.bf16.msra.mxu1 %v4526_v30 }
  0x38   :  { %299 = vmatprep.subr.bf16.mxu0 %v4531_v31  ;;  %368 = vmatprep.subr.bf16.mxu1 %v4531_v31 }
  0x3b   :  { %300 = vmatpush1.bf16.msra.mxu0 %v4540_v32  ;;  %369 = vmatpush1.bf16.msra.mxu1 %v4540_v32 }
  0x3c   :  { %301 = vmatprep.subr.bf16.mxu0 %v4545_v33  ;;  %370 = vmatprep.subr.bf16.mxu1 %v4545_v33 }
  0x3f   :  { %302 = vmatpush1.bf16.msra.mxu0 %v4554_v34  ;;  %371 = vmatpush1.bf16.msra.mxu1 %v4554_v34 }
  0x42   :  { %304 = vmatmul.mubr.bf16.vlgmr.msra.gmra.mrb[0].mxu0 %v50_v35 }
  0x43   :  { %15 = vsyncpa [#allocation5], 0  ;;  %v4567_v36 = vld [vmem:[%s8229_s2 + $0x104] ss:$8 sps:$4 sm:$0xff]   ;;  %v4577_v38 = vld [vmem:[%s8229_s2 + $0x100] ss:$8 sps:$4 sm:$0xff]  }
  0x44   :  { %v4572_v37 = vld [vmem:[%s8230_s3 + $0x4] ss:$8 sps:$4 sm:$0xff]   ;;  %632 = vmatprep.subr.bf16.mxu0 %v4567_v36  ;;  %v4585_v39 = vld [vmem:[%s8229_s2 + $0x114] ss:$8 sps:$4 sm:$0xff]   ;;  %v4590_v40 = vld [vmem:[%s8229_s2 + $0x110] ss:$8 sps:$4 sm:$0xff]  }
  0x45   :  { %8691 = vst [vmem:[#allocation8_spill] sm:$0xff] %v4572_v37  ;;  %833 = vmatprep.subr.bf16.mxu1 %v4572_v37  ;;  %633 = vmatpush1.bf16.msra.mxu0 %v4577_v38  ;;  %v4597_v41 = vld [vmem:[%s8229_s2 + $0x124] ss:$8 sps:$4 sm:$0xff]   ;;  %v4602_v42 = vld [vmem:[%s8229_s2 + $0x120] ss:$8 sps:$4 sm:$0xff]  }
  0x46   :  { %634 = vmatprep.subr.bf16.mxu0 %v4585_v39  ;;  %v4609_v43 = vld [vmem:[%s8229_s2 + $0x134] ss:$8 sps:$4 sm:$0xff]   ;;  %v4614_v44 = vld [vmem:[%s8229_s2 + $0x130] ss:$8 sps:$4 sm:$0xff]   ;;  %v4621_v45 = vld [vmem:[%s8229_s2 + $0x144] ss:$8 sps:$4 sm:$0xff]  }
  0x47   :  { %v4626_v46 = vld [vmem:[%s8229_s2 + $0x140] ss:$8 sps:$4 sm:$0xff]   ;;  %v4633_v47 = vld [vmem:[%s8229_s2 + $0x154] ss:$8 sps:$4 sm:$0xff]   ;;  %v4638_v48 = vld [vmem:[%s8229_s2 + $0x150] ss:$8 sps:$4 sm:$0xff]  }
  0x48   :  { %v4645_v49 = vld [vmem:[%s8229_s2 + $0x164] ss:$8 sps:$4 sm:$0xff]   ;;  %v4650_v50 = vld [vmem:[%s8229_s2 + $0x160] ss:$8 sps:$4 sm:$0xff]   ;;  %v4657_v51 = vld [vmem:[%s8229_s2 + $0x174] ss:$8 sps:$4 sm:$0xff]  }
  0x49   :  { %635 = vmatpush1.bf16.msra.mxu0 %v4590_v40  ;;  %v4662_v52 = vld [vmem:[%s8229_s2 + $0x170] ss:$8 sps:$4 sm:$0xff]   ;;  %v4669_v53 = vld [vmem:[%s8229_s2 + $0x184] ss:$8 sps:$4 sm:$0xff]   ;;  %v4674_v54 = vld [vmem:[%s8229_s2 + $0x180] ss:$8 sps:$4 sm:$0xff]  }
  0x4a   :  { %636 = vmatprep.subr.bf16.mxu0 %v4597_v41  ;;  %8692 = vst [vmem:[#allocation9_spill] sm:$0xff] %v4669_v53  ;;  %8693 = vst [vmem:[#allocation10_spill] sm:$0xff] %v4674_v54  ;;  %v4681_v55 = vld [vmem:[%s8229_s2 + $0x194] ss:$8 sps:$4 sm:$0xff]   ;;  %v4686_v56 = vld [vmem:[%s8229_s2 + $0x190] ss:$8 sps:$4 sm:$0xff]  }
  0x4b   :  { %8694 = vst [vmem:[#allocation11_spill] sm:$0xff] %v4681_v55  ;;  %8695 = vst [vmem:[#allocation12_spill] sm:$0xff] %v4686_v56  ;;  %v4693_v57 = vld [vmem:[%s8229_s2 + $0x1a4] ss:$8 sps:$4 sm:$0xff]   ;;  %v4698_v58 = vld [vmem:[%s8229_s2 + $0x1a0] ss:$8 sps:$4 sm:$0xff]  }
  0x4c   :  { %8696 = vst [vmem:[#allocation13_spill] sm:$0xff] %v4693_v57  ;;  %8697 = vst [vmem:[#allocation14_spill] sm:$0xff] %v4698_v58  ;;  %v4705_v59 = vld [vmem:[%s8229_s2 + $0x1b4] ss:$8 sps:$4 sm:$0xff]   ;;  %v4710_v60 = vld [vmem:[%s8229_s2 + $0x1b0] ss:$8 sps:$4 sm:$0xff]  }
  0x4d   :  { %637 = vmatpush1.bf16.msra.mxu0 %v4602_v42  ;;  %8698 = vst [vmem:[#allocation15_spill] sm:$0xff] %v4705_v59  ;;  %8699 = vst [vmem:[#allocation16_spill] sm:$0xff] %v4710_v60  ;;  %v4717_v61 = vld [vmem:[%s8229_s2 + $0x1c4] ss:$8 sps:$4 sm:$0xff]   ;;  %v4722_v62 = vld [vmem:[%s8229_s2 + $0x1c0] ss:$8 sps:$4 sm:$0xff]  }
  0x4e   :  { %638 = vmatprep.subr.bf16.mxu0 %v4609_v43  ;;  %8700 = vst [vmem:[#allocation17_spill] sm:$0xff] %v4717_v61  ;;  %8701 = vst [vmem:[#allocation18_spill] sm:$0xff] %v4722_v62  ;;  %v4729_v63 = vld [vmem:[%s8229_s2 + $0x1d4] ss:$8 sps:$4 sm:$0xff]   ;;  %v4734_v14 = vld [vmem:[%s8229_s2 + $0x1d0] ss:$8 sps:$4 sm:$0xff]  }
  0x4f   :  { %8702 = vst [vmem:[#allocation19_spill] sm:$0xff] %v4729_v63  ;;  %8703 = vst [vmem:[#allocation20_spill] sm:$0xff] %v4734_v14  ;;  %v4741_v16 = vld [vmem:[%s8229_s2 + $0x1e4] ss:$8 sps:$4 sm:$0xff]   ;;  %v4746_v17 = vld [vmem:[%s8229_s2 + $0x1e0] ss:$8 sps:$4 sm:$0xff]  }
  0x50   :  { %8704 = vst [vmem:[#allocation21_spill] sm:$0xff] %v4741_v16  ;;  %8705 = vst [vmem:[#allocation22_spill] sm:$0xff] %v4746_v17  ;;  %v4753_v35 = vld [vmem:[%s8229_s2 + $0x1f4] ss:$8 sps:$4 sm:$0xff]  }
  0x51   :  { %639 = vmatpush1.bf16.msra.mxu0 %v4614_v44  ;;  %8706 = vst [vmem:[#allocation23_spill] sm:$0xff] %v4753_v35 }
  0x52   :  { %640 = vmatprep.subr.bf16.mxu0 %v4621_v45 }
  0x55   :  { %641 = vmatpush1.bf16.msra.mxu0 %v4626_v46 }
  0x56   :  { %642 = vmatprep.subr.bf16.mxu0 %v4633_v47 }
  0x59   :  { %643 = vmatpush1.bf16.msra.mxu0 %v4638_v48 }
  0x5a   :  { %644 = vmatprep.subr.bf16.mxu0 %v4645_v49 }
  0x5d   :  { %645 = vmatpush1.bf16.msra.mxu0 %v4650_v50 }
  0x5e   :  { %646 = vmatprep.subr.bf16.mxu0 %v4657_v51 }
  0x61   :  { %647 = vmatpush1.bf16.msra.mxu0 %v4662_v52 }
  0x62   :  { %648 = vmatprep.subr.bf16.mxu0 %v4669_v53 }
  0x65   :  { %649 = vmatpush1.bf16.msra.mxu0 %v4674_v54 }
  0x66   :  { %650 = vmatprep.subr.bf16.mxu0 %v4681_v55 }
  0x69   :  { %651 = vmatpush1.bf16.msra.mxu0 %v4686_v56 }
  0x6a   :  { %652 = vmatprep.subr.bf16.mxu0 %v4693_v57 }
  0x6d   :  { %653 = vmatpush1.bf16.msra.mxu0 %v4698_v58 }
  0x6e   :  { %654 = vmatprep.subr.bf16.mxu0 %v4705_v59 }
  0x71   :  { %655 = vmatpush1.bf16.msra.mxu0 %v4710_v60 }
  0x72   :  { %656 = vmatprep.subr.bf16.mxu0 %v4717_v61 }
  0x75   :  { %657 = vmatpush1.bf16.msra.mxu0 %v4722_v62 }
  0x76   :  { %658 = vmatprep.subr.bf16.mxu0 %v4729_v63  ;;  %v3260_v63 = vld.sshfl [vmem:[%s8228_s1 + $0x4] sm:$0x33 pattern:$0x76325410] }
  0x79   :  { %659 = vmatpush1.bf16.msra.mxu0 %v4734_v14  ;;  %v4758_v14 = vld [vmem:[%s8229_s2 + $0x1f0] ss:$8 sps:$4 sm:$0xff]  }
  0x7a   :  { %660 = vmatprep.subr.bf16.mxu0 %v4741_v16  ;;  %8707 = vst [vmem:[#allocation24_spill] sm:$0xff] %v4758_v14  ;;  %v60_v16 = vcombine.high %v3260_v63, %v3260_v63 }
  0x7c   :  { %v64_v62 = vpack.c.bf16 %v60_v16, %v60_v16  ;;  %v4900_v16 = vld [vmem:[%s8230_s3 + $0x84] ss:$8 sps:$4 sm:$0xff]  }
  0x7d   :  { %661 = vmatpush1.bf16.msra.mxu0 %v4746_v17  ;;  %v63_v17 = vpack.c.bf16 %v3260_v63, %v3260_v63  ;;  %v4894_v63 = vld [vmem:[%s8230_s3 + $0x70] ss:$8 sps:$4 sm:$0xff]  }
  0x7e   :  { %662 = vmatprep.subr.bf16.mxu0 %v4753_v35  ;;  %664 = vmatprep.mubr.bf16.mxu0 %v64_v62  ;;  %v4888_v62 = vld [vmem:[%s8230_s3 + $0x74] ss:$8 sps:$4 sm:$0xff]  }
  0x81   :  { %663 = vmatpush1.bf16.msra.mxu0 %v4758_v14 }
  0x82   :  { %893 = vmatprep.subr.bf16.mxu0 %v4334_v0  ;;  %v4281_v0 = vmov 1983009808  }
  0x84   :  { %665 = vmatmul.mubr.bf16.vlgmr.msra.gmra.mrb[4].mxu0 %v63_v17  ;;  %v4906_v17 = vld [vmem:[%s8230_s3 + $0x80] ss:$8 sps:$4 sm:$0xff]  }
  0x85   :  { %894 = vmatpush1.bf16.msra.mxu0 %v4339_v1  ;;  %v316_v1 = vunpack.c.l.s4 %v4281_v0  ;;  %v4912_v0 = vld [vmem:[%s8230_s3 + $0x94] ss:$8 sps:$4 sm:$0xff]  }
  0x86   :  { %895 = vmatprep.subr.bf16.mxu0 %v4345_v2  ;;  %v318_v2 = vlaneseq }
  0x89   :  { %896 = vmatpush1.bf16.msra.mxu0 %v4352_v3  ;;  %v317_v3 = vunpack.c.0.s8 %v316_v1  ;;  %v4918_v1 = vld [vmem:[%s8230_s3 + $0x90] ss:$8 sps:$4 sm:$0xff]  }
  0x8a   :  { %897 = vmatprep.subr.bf16.mxu0 %v4359_v4  ;;  %v319_v4 = vshrl.u32 %v318_v2, 7  ;;  %v4924_v2 = vld [vmem:[%s8230_s3 + $0xa4] ss:$8 sps:$4 sm:$0xff]  }
  0x8d   :  { %898 = vmatpush1.bf16.msra.mxu0 %v4366_v5 }
  0x8e   :  { %899 = vmatprep.subr.bf16.mxu0 %v4373_v6  ;;  %v4784_v6 = vsub.s32 %v317_v3, %v319_v4  ;;  %v4930_v3 = vld [vmem:[%s8230_s3 + $0xa0] ss:$8 sps:$4 sm:$0xff]   ;;  %v4936_v4 = vld [vmem:[%s8230_s3 + $0xb4] ss:$8 sps:$4 sm:$0xff]  }
  0x90   :  { %8708 = vst [vmem:[#allocation25_spill] sm:$0xff] %v4784_v6 }
  0x91   :  { %900 = vmatpush1.bf16.msra.mxu0 %v4380_v7 }
  0x92   :  { %901 = vmatprep.subr.bf16.mxu0 %v4387_v8 }
  0x95   :  { %902 = vmatpush1.bf16.msra.mxu0 %v4394_v9 }
  0x96   :  { %903 = vmatprep.subr.bf16.mxu0 %v4401_v10  ;;  %v78_v10 = vld [vmem:[%s8227_s0] sm:$0xf] }
  0x99   :  { %904 = vmatpush1.bf16.msra.mxu0 %v4408_v11 }
  0x9a   :  { %905 = vmatprep.subr.bf16.mxu0 %v4415_v12 }
  0x9d   :  { %906 = vmatpush1.bf16.msra.mxu0 %v4421_v13 }
  0x9e   :  { %907 = vmatprep.subr.bf16.mxu0 %v4431_v15 }
  0xa1   :  { %908 = vmatpush1.bf16.msra.mxu0 %v4442_v18 }
  0xa2   :  { %909 = vmatprep.subr.bf16.mxu0 %v4447_v19 }
  0xa5   :  { %910 = vmatpush1.bf16.msra.mxu0 %v4456_v20 }
  0xa6   :  { %911 = vmatprep.subr.bf16.mxu0 %v4461_v21  ;;  %v4806_v21 = vld [vmem:[%s8230_s3] ss:$8 sps:$4 sm:$0xff]  }
  0xa9   :  { %912 = vmatpush1.bf16.msra.mxu0 %v4470_v22 }
  0xaa   :  { %913 = vmatprep.subr.bf16.mxu0 %v4475_v23  ;;  %v4813_v23 = vld [vmem:[%s8230_s3 + $0x14] ss:$8 sps:$4 sm:$0xff]  }
  0xad   :  { %914 = vmatpush1.bf16.msra.mxu0 %v4484_v24  ;;  %v4822_v24 = vld [vmem:[%s8230_s3 + $0x10] ss:$8 sps:$4 sm:$0xff]  }
  0xae   :  { %915 = vmatprep.subr.bf16.mxu0 %v4489_v25  ;;  %v4828_v25 = vld [vmem:[%s8230_s3 + $0x24] ss:$8 sps:$4 sm:$0xff]  }
  0xb1   :  { %916 = vmatpush1.bf16.msra.mxu0 %v4498_v26  ;;  %v4834_v26 = vld [vmem:[%s8230_s3 + $0x20] ss:$8 sps:$4 sm:$0xff]  }
  0xb2   :  { %917 = vmatprep.subr.bf16.mxu0 %v4503_v27  ;;  %v4840_v27 = vld [vmem:[%s8230_s3 + $0x34] ss:$8 sps:$4 sm:$0xff]  }
  0xb5   :  { %918 = vmatpush1.bf16.msra.mxu0 %v4512_v28  ;;  %v4846_v28 = vld [vmem:[%s8230_s3 + $0x30] ss:$8 sps:$4 sm:$0xff]  }
  0xb6   :  { %919 = vmatprep.subr.bf16.mxu0 %v4517_v29  ;;  %v4852_v29 = vld [vmem:[%s8230_s3 + $0x44] ss:$8 sps:$4 sm:$0xff]  }
  0xb9   :  { %920 = vmatpush1.bf16.msra.mxu0 %v4526_v30  ;;  %v4858_v30 = vld [vmem:[%s8230_s3 + $0x40] ss:$8 sps:$4 sm:$0xff]  }
  0xba   :  { %921 = vmatprep.subr.bf16.mxu0 %v4531_v31  ;;  %v4864_v31 = vld [vmem:[%s8230_s3 + $0x54] ss:$8 sps:$4 sm:$0xff]  }
  0xbd   :  { %922 = vmatpush1.bf16.msra.mxu0 %v4540_v32  ;;  %v4870_v32 = vld [vmem:[%s8230_s3 + $0x50] ss:$8 sps:$4 sm:$0xff]  }
  0xbe   :  { %923 = vmatprep.subr.bf16.mxu0 %v4545_v33  ;;  %v4876_v33 = vld [vmem:[%s8230_s3 + $0x64] ss:$8 sps:$4 sm:$0xff]  }
  0xc1   :  { %924 = vmatpush1.bf16.msra.mxu0 %v4554_v34  ;;  %v4882_v34 = vld [vmem:[%s8230_s3 + $0x60] ss:$8 sps:$4 sm:$0xff]  }
  0xc2   :  { %1001 = vmatprep.subr.bf16.mxu0 %v4572_v37  ;;  %v8713_v37 = vld [vmem:[#allocation22_spill] sm:$0xff] }
 0x115   :  { %v305_v5 = vpop.f32.mrb[0].mxu0 }
 0x116   :  { %v307_v7 = vpop.f32.mrb[1].mxu0 }
 0x117   :  { %v314_v8 = vcombine.low %v305_v5, %v307_v7  ;;  %v309_v9 = vpop.f32.mrb[2].mxu0  ;;  %v4942_v5 = vld [vmem:[%s8230_s3 + $0xb0] ss:$8 sps:$4 sm:$0xff]   ;;  %v4948_v7 = vld [vmem:[%s8230_s3 + $0xc4] ss:$8 sps:$4 sm:$0xff]  }
 0x118   :  { %v310_v11 = vpop.f32.mrb[3].mxu0  ;;  %v4960_v9 = vld [vmem:[%s8230_s3 + $0xd4] ss:$8 sps:$4 sm:$0xff]  }
 0x119   :  { %v321_v12 = vrot.slane %v314_v8, %v4784_v6  ;;  %v4954_v8 = vld [vmem:[%s8230_s3 + $0xc0] ss:$8 sps:$4 sm:$0xff]   ;;  %v4972_v11 = vld [vmem:[%s8230_s3 + $0xe4] ss:$8 sps:$4 sm:$0xff]  }
 0x11b   :  { %v323_v13 = vadd.f32 %v321_v12, %v78_v10  ;;  %v4966_v10 = vld [vmem:[%s8230_s3 + $0xd0] ss:$8 sps:$4 sm:$0xff]   ;;  %v4978_v12 = vld [vmem:[%s8230_s3 + $0xe0] ss:$8 sps:$4 sm:$0xff]  }
 0x11d   :  { %3829 = vtanh.f32 %v323_v13  ;;  %v4984_v13 = vld [vmem:[%s8230_s3 + $0xf4] ss:$8 sps:$4 sm:$0xff]  }
 0x127   :  { %v3830_v15 = vpop.eup %3829 }
 0x128   :  { %v332_v18 = vrot.slane %v3830_v15, %v4784_v6  ;;  %v4990_v15 = vld [vmem:[%s8230_s3 + $0xf0] ss:$8 sps:$4 sm:$0xff]  }
 0x12a   :  { %v333_v19 = vcombine.high %v332_v18, %v332_v18  ;;  %v4808_v22 = vpack.c.bf16 %v332_v18, %v332_v18  ;;  %v8709_v18 = vld [vmem:[#allocation18_spill] sm:$0xff] }
 0x12c   :  { %v337_v20 = vpack.c.bf16 %v333_v19, %v333_v19  ;;  %v8710_v19 = vld [vmem:[#allocation19_spill] sm:$0xff] }
 0x12e   :  { %372 = vmatprep.mubr.bf16.mxu1 %v337_v20 }
 0x12f   :  { %373 = vmatmul.mubr.bf16.vlgmr.msra.gmra.mrb[0].mxu1 %v4808_v22 }
 0x130   :  { %834 = vmatpush1.bf16.msra.mxu1 %v4806_v21  ;;  %865 = vmatprep.mubr.bf16.mxu1 %v337_v20  ;;  %v8711_v20 = vld [vmem:[#allocation20_spill] sm:$0xff] }
 0x131   :  { %835 = vmatprep.subr.bf16.mxu1 %v4813_v23 }
 0x134   :  { %836 = vmatpush1.bf16.msra.mxu1 %v4822_v24 }
 0x135   :  { %837 = vmatprep.subr.bf16.mxu1 %v4828_v25 }
 0x138   :  { %838 = vmatpush1.bf16.msra.mxu1 %v4834_v26 }
 0x139   :  { %839 = vmatprep.subr.bf16.mxu1 %v4840_v27 }
 0x13c   :  { %840 = vmatpush1.bf16.msra.mxu1 %v4846_v28 }
 0x13d   :  { %841 = vmatprep.subr.bf16.mxu1 %v4852_v29 }
 0x140   :  { %842 = vmatpush1.bf16.msra.mxu1 %v4858_v30 }
 0x141   :  { %843 = vmatprep.subr.bf16.mxu1 %v4864_v31 }
 0x144   :  { %844 = vmatpush1.bf16.msra.mxu1 %v4870_v32 }
 0x145   :  { %845 = vmatprep.subr.bf16.mxu1 %v4876_v33 }
 0x148   :  { %846 = vmatpush1.bf16.msra.mxu1 %v4882_v34 }
 0x149   :  { %847 = vmatprep.subr.bf16.mxu1 %v4888_v62 }
 0x14c   :  { %848 = vmatpush1.bf16.msra.mxu1 %v4894_v63 }
 0x14d   :  { %849 = vmatprep.subr.bf16.mxu1 %v4900_v16 }
 0x150   :  { %850 = vmatpush1.bf16.msra.mxu1 %v4906_v17 }
 0x151   :  { %851 = vmatprep.subr.bf16.mxu1 %v4912_v0 }
 0x154   :  { %852 = vmatpush1.bf16.msra.mxu1 %v4918_v1 }
 0x155   :  { %853 = vmatprep.subr.bf16.mxu1 %v4924_v2 }
 0x158   :  { %854 = vmatpush1.bf16.msra.mxu1 %v4930_v3 }
 0x159   :  { %855 = vmatprep.subr.bf16.mxu1 %v4936_v4 }
 0x15c   :  { %856 = vmatpush1.bf16.msra.mxu1 %v4942_v5 }
 0x15d   :  { %857 = vmatprep.subr.bf16.mxu1 %v4948_v7 }
 0x160   :  { %858 = vmatpush1.bf16.msra.mxu1 %v4954_v8 }
 0x161   :  { %859 = vmatprep.subr.bf16.mxu1 %v4960_v9 }
 0x164   :  { %860 = vmatpush1.bf16.msra.mxu1 %v4966_v10 }
 0x165   :  { %861 = vmatprep.subr.bf16.mxu1 %v4972_v11 }
 0x168   :  { %862 = vmatpush1.bf16.msra.mxu1 %v4978_v12 }
 0x169   :  { %863 = vmatprep.subr.bf16.mxu1 %v4984_v13 }
 0x16c   :  { %864 = vmatpush1.bf16.msra.mxu1 %v4990_v15 }
 0x16d   :  { %960 = vmatprep.subr.bf16.mxu1 %v4567_v36 }
 0x16f   :  { %866 = vmatmul.mubr.bf16.vlgmr.msra.gmra.mrb[4].mxu1 %v4808_v22  ;;  %v8712_v22 = vld [vmem:[#allocation21_spill] sm:$0xff] }
 0x170   :  { %961 = vmatpush1.bf16.msra.mxu1 %v4577_v38 }
 0x171   :  { %962 = vmatprep.subr.bf16.mxu1 %v4585_v39 }
 0x174   :  { %963 = vmatpush1.bf16.msra.mxu1 %v4590_v40 }
 0x175   :  { %964 = vmatprep.subr.bf16.mxu1 %v4597_v41 }
 0x178   :  { %965 = vmatpush1.bf16.msra.mxu1 %v4602_v42 }
 0x179   :  { %966 = vmatprep.subr.bf16.mxu1 %v4609_v43 }
 0x17c   :  { %967 = vmatpush1.bf16.msra.mxu1 %v4614_v44 }
 0x17d   :  { %968 = vmatprep.subr.bf16.mxu1 %v4621_v45 }
 0x180   :  { %969 = vmatpush1.bf16.msra.mxu1 %v4626_v46 }
 0x181   :  { %970 = vmatprep.subr.bf16.mxu1 %v4633_v47 }
 0x184   :  { %971 = vmatpush1.bf16.msra.mxu1 %v4638_v48 }
 0x185   :  { %972 = vmatprep.subr.bf16.mxu1 %v4645_v49 }
 0x188   :  { %973 = vmatpush1.bf16.msra.mxu1 %v4650_v50 }
 0x189   :  { %974 = vmatprep.subr.bf16.mxu1 %v4657_v51 }
 0x18c   :  { %975 = vmatpush1.bf16.msra.mxu1 %v4662_v52 }
 0x18d   :  { %976 = vmatprep.subr.bf16.mxu1 %v4669_v53 }
 0x190   :  { %977 = vmatpush1.bf16.msra.mxu1 %v4674_v54 }
 0x191   :  { %978 = vmatprep.subr.bf16.mxu1 %v4681_v55 }
 0x194   :  { %979 = vmatpush1.bf16.msra.mxu1 %v4686_v56 }
 0x195   :  { %980 = vmatprep.subr.bf16.mxu1 %v4693_v57 }
 0x198   :  { %981 = vmatpush1.bf16.msra.mxu1 %v4698_v58  ;;  %v666_v58 = vpop.f32.mrb[4].mxu0 }
 0x199   :  { %982 = vmatprep.subr.bf16.mxu1 %v4705_v59  ;;  %v668_v59 = vpop.f32.mrb[5].mxu0 }
 0x19a   :  { %v670_v57 = vpop.f32.mrb[6].mxu0 }
 0x19c   :  { %983 = vmatpush1.bf16.msra.mxu1 %v4710_v60  ;;  %v671_v60 = vpop.f32.mrb[7].mxu0 }
 0x19d   :  { %984 = vmatprep.subr.bf16.mxu1 %v4717_v61 }
 0x1a0   :  { %985 = vmatpush1.bf16.msra.mxu1 %v8709_v18  ;;  %v5030_v18 = vld [vmem:[%s8229_s2 + $0x204] ss:$8 sps:$4 sm:$0xff]  }
 0x1a1   :  { %986 = vmatprep.subr.bf16.mxu1 %v8710_v19 }
 0x1a4   :  { %987 = vmatpush1.bf16.msra.mxu1 %v8711_v20 }
 0x1a5   :  { %988 = vmatprep.subr.bf16.mxu1 %v8712_v22 }
 0x1a8   :  { %989 = vmatpush1.bf16.msra.mxu1 %v8713_v37 }
 0x1a9   :  { %990 = vmatprep.subr.bf16.mxu1 %v4753_v35  ;;  %v3294_v35 = vld [vmem:[%s8227_s0 + $0x4] sm:$0xf] }
 0x1ac   :  { %991 = vmatpush1.bf16.msra.mxu1 %v4758_v14 }
 0x1ad   :  { %1274 = vmatprep.subr.bf16.mxu1 %v5030_v18 }
 0x202   :  { %v374_v20 = vpop.f32.mrb[0].mxu1 }
 0x203   :  { %v376_v19 = vpop.f32.mrb[1].mxu1 }
 0x204   :  { %v383_v22 = vcombine.low %v374_v20, %v376_v19  ;;  %v378_v61 = vpop.f32.mrb[2].mxu1 }
 0x205   :  { %v379_v14 = vpop.f32.mrb[3].mxu1 }
 0x206   :  { %v390_v37 = vrot.slane %v383_v22, %v4784_v6 }
 0x208   :  { %v392_v57 = vadd.f32 %v3294_v35, %v390_v37  ;;  %v5062_v37 = vld.sshfl [vmem:[%s8231_s4] sm:$0x33 pattern:$0x76325410] }
 0x20a   :  { %3831 = vtanh.f32 %v392_v57 }
 0x214   :  { %v3832_v60 = vpop.eup %3831 }
 0x215   :  { %v401_v56 = vrot.slane %v3832_v60, %v4784_v6 }
 0x217   :  { %v402_v55 = vcombine.high %v401_v56, %v401_v56  ;;  %v5038_v53 = vpack.c.bf16 %v401_v56, %v401_v56 }
 0x219   :  { %v406_v54 = vpack.c.bf16 %v402_v55, %v402_v55  ;;  %v5067_v55 = vcombine.high %v5062_v37, %v5062_v37 }
 0x21b   :  { %925 = vmatprep.mubr.bf16.mxu0 %v406_v54  ;;  %8714 = vst [vmem:[#allocation26_spill] sm:$0xff] %v5067_v55 }
 0x21c   :  { %926 = vmatmul.mubr.bf16.vlgmr.msra.gmra.mrb[8].mxu0 %v5038_v53 }
 0x21d   :  { %1002 = vmatpush1.bf16.msra.mxu0 %v4806_v21  ;;  %1033 = vmatprep.mubr.bf16.mxu0 %v406_v54 }
 0x21e   :  { %1003 = vmatprep.subr.bf16.mxu0 %v4813_v23 }
 0x221   :  { %1004 = vmatpush1.bf16.msra.mxu0 %v4822_v24 }
 0x222   :  { %1005 = vmatprep.subr.bf16.mxu0 %v4828_v25 }
 0x225   :  { %1006 = vmatpush1.bf16.msra.mxu0 %v4834_v26 }
 0x226   :  { %1007 = vmatprep.subr.bf16.mxu0 %v4840_v27 }
 0x229   :  { %1008 = vmatpush1.bf16.msra.mxu0 %v4846_v28 }
 0x22a   :  { %1009 = vmatprep.subr.bf16.mxu0 %v4852_v29 }
 0x22d   :  { %1010 = vmatpush1.bf16.msra.mxu0 %v4858_v30 }
 0x22e   :  { %1011 = vmatprep.subr.bf16.mxu0 %v4864_v31 }
 0x231   :  { %1012 = vmatpush1.bf16.msra.mxu0 %v4870_v32 }
 0x232   :  { %1013 = vmatprep.subr.bf16.mxu0 %v4876_v33 }
 0x235   :  { %1014 = vmatpush1.bf16.msra.mxu0 %v4882_v34 }
 0x236   :  { %1015 = vmatprep.subr.bf16.mxu0 %v4888_v62 }
 0x239   :  { %1016 = vmatpush1.bf16.msra.mxu0 %v4894_v63 }
 0x23a   :  { %1017 = vmatprep.subr.bf16.mxu0 %v4900_v16 }
 0x23d   :  { %1018 = vmatpush1.bf16.msra.mxu0 %v4906_v17 }
 0x23e   :  { %1019 = vmatprep.subr.bf16.mxu0 %v4912_v0 }
 0x241   :  { %1020 = vmatpush1.bf16.msra.mxu0 %v4918_v1 }
 0x242   :  { %v867_v54 = vpop.f32.mrb[4].mxu1  ;;  %1021 = vmatprep.subr.bf16.mxu0 %v4924_v2 }
 0x243   :  { %v868_v56 = vadd.f32 %v867_v54, %v666_v58  ;;  %v869_v61 = vpop.f32.mrb[5].mxu1  ;;  %v5079_v58 = vld.sshfl [vmem:[%s8228_s1 + $0x8] sm:$0x33 pattern:$0x76325410] }
 0x244   :  { %v870_v14 = vadd.f32 %v869_v61, %v668_v59  ;;  %v871_v35 = vpop.f32.mrb[6].mxu1  ;;  %v73_v59 = vcombine.high %v5079_v58, %v5079_v58 }
 0x245   :  { %v885_v19 = vadd.f32 %v5062_v37, %v868_v56  ;;  %v872_v20 = vpop.f32.mrb[7].mxu1  ;;  %1022 = vmatpush1.bf16.msra.mxu0 %v4930_v3  ;;  %v5090_v56 = vld [vmem:[%s8229_s2 + $0x200] ss:$8 sps:$4 sm:$0xff]   ;;  %v5097_v35 = vld [vmem:[%s8229_s2 + $0x214] ss:$8 sps:$4 sm:$0xff]  }
 0x246   :  { %v886_v22 = vadd.f32 %v5067_v55, %v870_v14  ;;  %1023 = vmatprep.subr.bf16.mxu0 %v4936_v4  ;;  %v77_v61 = vpack.c.bf16 %v73_v59, %v73_v59  ;;  %v5111_v20 = vld [vmem:[%s8229_s2 + $0x210] ss:$8 sps:$4 sm:$0xff]   ;;  %v5123_v59 = vld [vmem:[%s8230_s3 + $0x100] ss:$8 sps:$4 sm:$0xff]  }
 0x247   :  { %3833 = vtanh.f32 %v885_v19  ;;  %v5105_v19 = vld [vmem:[%s8230_s3 + $0x104] ss:$8 sps:$4 sm:$0xff]   ;;  %8715 = vst [vmem:[#allocation27_spill] sm:$0xff] %v5111_v20 }
 0x248   :  { %3835 = vtanh.f32 %v886_v22  ;;  %v5117_v22 = vld [vmem:[%s8229_s2 + $0x224] ss:$8 sps:$4 sm:$0xff]  }
 0x249   :  { %1024 = vmatpush1.bf16.msra.mxu0 %v4942_v5  ;;  %8716 = vst [vmem:[#allocation28_spill] sm:$0xff] %v5117_v22 }
 0x24a   :  { %1025 = vmatprep.subr.bf16.mxu0 %v4948_v7 }
 0x24d   :  { %1026 = vmatpush1.bf16.msra.mxu0 %v4954_v8 }
 0x24e   :  { %1027 = vmatprep.subr.bf16.mxu0 %v4960_v9 }
 0x251   :  { %v3834_v57 = vpop.eup %3833  ;;  %1028 = vmatpush1.bf16.msra.mxu0 %v4966_v10 }
 0x252   :  { %v3836_v60 = vpop.eup %3835  ;;  %1029 = vmatprep.subr.bf16.mxu0 %v4972_v11  ;;  %v5092_v14 = vpack.c.bf16 %v3834_v57, %v3834_v57  ;;  %v5129_v57 = vld [vmem:[%s8230_s3 + $0x114] ss:$8 sps:$4 sm:$0xff]  }
 0x253   :  { %v890_v54 = vpack.c.bf16 %v3836_v60, %v3836_v60  ;;  %8717 = vst [vmem:[#allocation29_spill] sm:$0xff] %v5129_v57  ;;  %v5135_v60 = vld [vmem:[%s8229_s2 + $0x220] ss:$8 sps:$4 sm:$0xff]  }
 0x254   :  { %8718 = vst [vmem:[#allocation30_spill] sm:$0xff] %v5135_v60 }
 0x255   :  { %992 = vmatprep.mubr.bf16.mxu1 %v890_v54  ;;  %1030 = vmatpush1.bf16.msra.mxu0 %v4978_v12 }
 0x256   :  { %993 = vmatmul.mubr.bf16.vlgmr.msra.gmra.mrb[8].mxu1 %v5092_v14  ;;  %1031 = vmatprep.subr.bf16.mxu0 %v4984_v13 }
 0x257   :  { %1275 = vmatpush1.bf16.msra.mxu1 %v5090_v56  ;;  %1306 = vmatprep.mubr.bf16.mxu1 %v77_v61  ;;  %v5142_v61 = vld [vmem:[%s8229_s2 + $0x234] ss:$8 sps:$4 sm:$0xff]  }
 0x258   :  { %1276 = vmatprep.subr.bf16.mxu1 %v5097_v35  ;;  %8719 = vst [vmem:[#allocation31_spill] sm:$0xff] %v5142_v61 }
 0x259   :  { %1032 = vmatpush1.bf16.msra.mxu0 %v4990_v15 }
 0x25a   :  { %1475 = vmatprep.subr.bf16.mxu0 %v5105_v19 }
 0x25b   :  { %1277 = vmatpush1.bf16.msra.mxu1 %v5111_v20  ;;  %v5148_v20 = vld [vmem:[%s8230_s3 + $0x110] ss:$8 sps:$4 sm:$0xff]  }
 0x25c   :  { %1034 = vmatmul.mubr.bf16.vlgmr.msra.gmra.mrb[12].mxu0 %v5038_v53  ;;  %1278 = vmatprep.subr.bf16.mxu1 %v5117_v22  ;;  %8720 = vst [vmem:[#allocation32_spill] sm:$0xff] %v5148_v20  ;;  %v5154_v53 = vld [vmem:[%s8230_s3 + $0x124] ss:$8 sps:$4 sm:$0xff]   ;;  %v5160_v22 = vld [vmem:[%s8229_s2 + $0x230] ss:$8 sps:$4 sm:$0xff]  }
 0x25d   :  { %1476 = vmatpush1.bf16.msra.mxu0 %v5123_v59  ;;  %1507 = vmatprep.mubr.bf16.mxu0 %v890_v54  ;;  %8721 = vst [vmem:[#allocation33_spill] sm:$0xff] %v5154_v53  ;;  %8722 = vst [vmem:[#allocation34_spill] sm:$0xff] %v5160_v22  ;;  %v5166_v54 = vld [vmem:[%s8229_s2 + $0x244] ss:$8 sps:$4 sm:$0xff]  }
 0x25e   :  { %1477 = vmatprep.subr.bf16.mxu0 %v5129_v57  ;;  %8723 = vst [vmem:[#allocation35_spill] sm:$0xff] %v5166_v54  ;;  %v5172_v57 = vld [vmem:[%s8230_s3 + $0x120] ss:$8 sps:$4 sm:$0xff]  }
 0x25f   :  { %1279 = vmatpush1.bf16.msra.mxu1 %v5135_v60  ;;  %8724 = vst [vmem:[#allocation36_spill] sm:$0xff] %v5172_v57  ;;  %v5178_v60 = vld [vmem:[%s8230_s3 + $0x134] ss:$8 sps:$4 sm:$0xff]  }
 0x260   :  { %1280 = vmatprep.subr.bf16.mxu1 %v5142_v61  ;;  %8725 = vst [vmem:[#allocation37_spill] sm:$0xff] %v5178_v60  ;;  %v5184_v61 = vld [vmem:[%s8229_s2 + $0x240] ss:$8 sps:$4 sm:$0xff]  }
 0x261   :  { %1478 = vmatpush1.bf16.msra.mxu0 %v5148_v20  ;;  %8726 = vst [vmem:[#allocation38_spill] sm:$0xff] %v5184_v61  ;;  %v5190_v20 = vld [vmem:[%s8229_s2 + $0x254] ss:$8 sps:$4 sm:$0xff]  }
 0x262   :  { %1479 = vmatprep.subr.bf16.mxu0 %v5154_v53  ;;  %8727 = vst [vmem:[#allocation39_spill] sm:$0xff] %v5190_v20  ;;  %v5196_v53 = vld [vmem:[%s8230_s3 + $0x130] ss:$8 sps:$4 sm:$0xff]  }
 0x263   :  { %1281 = vmatpush1.bf16.msra.mxu1 %v5160_v22  ;;  %8728 = vst [vmem:[#allocation40_spill] sm:$0xff] %v5196_v53  ;;  %v5202_v22 = vld [vmem:[%s8230_s3 + $0x144] ss:$8 sps:$4 sm:$0xff]  }
 0x264   :  { %1282 = vmatprep.subr.bf16.mxu1 %v5166_v54  ;;  %8729 = vst [vmem:[#allocation41_spill] sm:$0xff] %v5202_v22  ;;  %v5208_v54 = vld [vmem:[%s8229_s2 + $0x250] ss:$8 sps:$4 sm:$0xff]  }
 0x265   :  { %1480 = vmatpush1.bf16.msra.mxu0 %v5172_v57  ;;  %8730 = vst [vmem:[#allocation42_spill] sm:$0xff] %v5208_v54  ;;  %v5214_v57 = vld [vmem:[%s8229_s2 + $0x264] ss:$8 sps:$4 sm:$0xff]  }
 0x266   :  { %1481 = vmatprep.subr.bf16.mxu0 %v5178_v60  ;;  %8731 = vst [vmem:[#allocation43_spill] sm:$0xff] %v5214_v57  ;;  %v5220_v60 = vld [vmem:[%s8230_s3 + $0x140] ss:$8 sps:$4 sm:$0xff]  }
 0x267   :  { %1283 = vmatpush1.bf16.msra.mxu1 %v5184_v61  ;;  %8732 = vst [vmem:[#allocation44_spill] sm:$0xff] %v5220_v60  ;;  %v5226_v61 = vld [vmem:[%s8230_s3 + $0x154] ss:$8 sps:$4 sm:$0xff]  }
 0x268   :  { %1284 = vmatprep.subr.bf16.mxu1 %v5190_v20  ;;  %8733 = vst [vmem:[#allocation45_spill] sm:$0xff] %v5226_v61  ;;  %v5232_v20 = vld [vmem:[%s8229_s2 + $0x260] ss:$8 sps:$4 sm:$0xff]  }
 0x269   :  { %1482 = vmatpush1.bf16.msra.mxu0 %v5196_v53  ;;  %8734 = vst [vmem:[#allocation46_spill] sm:$0xff] %v5232_v20  ;;  %v5238_v53 = vld [vmem:[%s8229_s2 + $0x274] ss:$8 sps:$4 sm:$0xff]  }
 0x26a   :  { %1483 = vmatprep.subr.bf16.mxu0 %v5202_v22  ;;  %8735 = vst [vmem:[#allocation47_spill] sm:$0xff] %v5238_v53  ;;  %v5244_v22 = vld [vmem:[%s8230_s3 + $0x150] ss:$8 sps:$4 sm:$0xff]  }
 0x26b   :  { %1285 = vmatpush1.bf16.msra.mxu1 %v5208_v54  ;;  %8736 = vst [vmem:[#allocation48_spill] sm:$0xff] %v5244_v22  ;;  %v5250_v54 = vld [vmem:[%s8230_s3 + $0x164] ss:$8 sps:$4 sm:$0xff]  }
 0x26c   :  { %1286 = vmatprep.subr.bf16.mxu1 %v5214_v57  ;;  %8737 = vst [vmem:[#allocation49_spill] sm:$0xff] %v5250_v54  ;;  %v5256_v57 = vld [vmem:[%s8229_s2 + $0x270] ss:$8 sps:$4 sm:$0xff]  }
 0x26d   :  { %1484 = vmatpush1.bf16.msra.mxu0 %v5220_v60  ;;  %8738 = vst [vmem:[#allocation50_spill] sm:$0xff] %v5256_v57  ;;  %v5262_v60 = vld [vmem:[%s8229_s2 + $0x284] ss:$8 sps:$4 sm:$0xff]  }
 0x26e   :  { %1485 = vmatprep.subr.bf16.mxu0 %v5226_v61  ;;  %8739 = vst [vmem:[#allocation51_spill] sm:$0xff] %v5262_v60  ;;  %v5268_v61 = vld [vmem:[%s8230_s3 + $0x160] ss:$8 sps:$4 sm:$0xff]  }
 0x26f   :  { %1287 = vmatpush1.bf16.msra.mxu1 %v5232_v20  ;;  %8740 = vst [vmem:[#allocation52_spill] sm:$0xff] %v5268_v61  ;;  %v5274_v20 = vld [vmem:[%s8230_s3 + $0x174] ss:$8 sps:$4 sm:$0xff]  }
 0x270   :  { %1288 = vmatprep.subr.bf16.mxu1 %v5238_v53  ;;  %8741 = vst [vmem:[#allocation53_spill] sm:$0xff] %v5274_v20  ;;  %v5280_v53 = vld [vmem:[%s8229_s2 + $0x280] ss:$8 sps:$4 sm:$0xff]  }
 0x271   :  { %1486 = vmatpush1.bf16.msra.mxu0 %v5244_v22  ;;  %8742 = vst [vmem:[#allocation54_spill] sm:$0xff] %v5280_v53  ;;  %v5286_v22 = vld [vmem:[%s8229_s2 + $0x294] ss:$8 sps:$4 sm:$0xff]  }
 0x272   :  { %1487 = vmatprep.subr.bf16.mxu0 %v5250_v54  ;;  %8743 = vst [vmem:[#allocation55_spill] sm:$0xff] %v5286_v22  ;;  %v5292_v54 = vld [vmem:[%s8230_s3 + $0x170] ss:$8 sps:$4 sm:$0xff]  }
 0x273   :  { %1289 = vmatpush1.bf16.msra.mxu1 %v5256_v57  ;;  %8744 = vst [vmem:[#allocation56_spill] sm:$0xff] %v5292_v54  ;;  %v5298_v57 = vld [vmem:[%s8230_s3 + $0x184] ss:$8 sps:$4 sm:$0xff]  }
 0x274   :  { %1290 = vmatprep.subr.bf16.mxu1 %v5262_v60  ;;  %8745 = vst [vmem:[#allocation57_spill] sm:$0xff] %v5298_v57  ;;  %v5304_v60 = vld [vmem:[%s8229_s2 + $0x290] ss:$8 sps:$4 sm:$0xff]  }
 0x275   :  { %1488 = vmatpush1.bf16.msra.mxu0 %v5268_v61  ;;  %8746 = vst [vmem:[#allocation58_spill] sm:$0xff] %v5304_v60  ;;  %v5310_v61 = vld [vmem:[%s8229_s2 + $0x2a4] ss:$8 sps:$4 sm:$0xff]  }
 0x276   :  { %1489 = vmatprep.subr.bf16.mxu0 %v5274_v20  ;;  %8747 = vst [vmem:[#allocation59_spill] sm:$0xff] %v5310_v61  ;;  %v5316_v20 = vld [vmem:[%s8230_s3 + $0x180] ss:$8 sps:$4 sm:$0xff]  }
 0x277   :  { %1291 = vmatpush1.bf16.msra.mxu1 %v5280_v53  ;;  %8748 = vst [vmem:[#allocation60_spill] sm:$0xff] %v5316_v20  ;;  %v5322_v53 = vld [vmem:[%s8230_s3 + $0x194] ss:$8 sps:$4 sm:$0xff]  }
 0x278   :  { %1292 = vmatprep.subr.bf16.mxu1 %v5286_v22  ;;  %8749 = vst [vmem:[#allocation61_spill] sm:$0xff] %v5322_v53  ;;  %v5328_v22 = vld [vmem:[%s8229_s2 + $0x2a0] ss:$8 sps:$4 sm:$0xff]  }
 0x279   :  { %1490 = vmatpush1.bf16.msra.mxu0 %v5292_v54  ;;  %8750 = vst [vmem:[#allocation62_spill] sm:$0xff] %v5328_v22  ;;  %v5334_v54 = vld [vmem:[%s8229_s2 + $0x2b4] ss:$8 sps:$4 sm:$0xff]  }
 0x27a   :  { %1491 = vmatprep.subr.bf16.mxu0 %v5298_v57  ;;  %8751 = vst [vmem:[#allocation63_spill] sm:$0xff] %v5334_v54  ;;  %v5340_v57 = vld [vmem:[%s8230_s3 + $0x190] ss:$8 sps:$4 sm:$0xff]  }
 0x27b   :  { %1293 = vmatpush1.bf16.msra.mxu1 %v5304_v60  ;;  %8752 = vst [vmem:[#allocation64_spill] sm:$0xff] %v5340_v57  ;;  %v5346_v60 = vld [vmem:[%s8230_s3 + $0x1a4] ss:$8 sps:$4 sm:$0xff]  }
 0x27c   :  { %1294 = vmatprep.subr.bf16.mxu1 %v5310_v61  ;;  %8753 = vst [vmem:[#allocation65_spill] sm:$0xff] %v5346_v60  ;;  %v5352_v61 = vld [vmem:[%s8229_s2 + $0x2b0] ss:$8 sps:$4 sm:$0xff]  }
 0x27d   :  { %1492 = vmatpush1.bf16.msra.mxu0 %v5316_v20  ;;  %8754 = vst [vmem:[#allocation66_spill] sm:$0xff] %v5352_v61  ;;  %v5358_v20 = vld [vmem:[%s8229_s2 + $0x2c4] ss:$8 sps:$4 sm:$0xff]  }
 0x27e   :  { %1493 = vmatprep.subr.bf16.mxu0 %v5322_v53  ;;  %8755 = vst [vmem:[#allocation67_spill] sm:$0xff] %v5358_v20  ;;  %v5364_v53 = vld [vmem:[%s8230_s3 + $0x1a0] ss:$8 sps:$4 sm:$0xff]  }
 0x27f   :  { %1295 = vmatpush1.bf16.msra.mxu1 %v5328_v22  ;;  %8756 = vst [vmem:[#allocation68_spill] sm:$0xff] %v5364_v53  ;;  %v5370_v22 = vld [vmem:[%s8230_s3 + $0x1b4] ss:$8 sps:$4 sm:$0xff]  }
 0x280   :  { %1296 = vmatprep.subr.bf16.mxu1 %v5334_v54  ;;  %8757 = vst [vmem:[#allocation69_spill] sm:$0xff] %v5370_v22  ;;  %v5376_v54 = vld [vmem:[%s8229_s2 + $0x2c0] ss:$8 sps:$4 sm:$0xff]  }
 0x281   :  { %1494 = vmatpush1.bf16.msra.mxu0 %v5340_v57  ;;  %8758 = vst [vmem:[#allocation70_spill] sm:$0xff] %v5376_v54  ;;  %v5382_v57 = vld [vmem:[%s8229_s2 + $0x2d4] ss:$8 sps:$4 sm:$0xff]  }
 0x282   :  { %1495 = vmatprep.subr.bf16.mxu0 %v5346_v60  ;;  %8759 = vst [vmem:[#allocation71_spill] sm:$0xff] %v5382_v57  ;;  %v5388_v60 = vld [vmem:[%s8230_s3 + $0x1b0] ss:$8 sps:$4 sm:$0xff]  }
 0x283   :  { %1297 = vmatpush1.bf16.msra.mxu1 %v5352_v61  ;;  %8760 = vst [vmem:[#allocation72_spill] sm:$0xff] %v5388_v60  ;;  %v5394_v61 = vld [vmem:[%s8230_s3 + $0x1c4] ss:$8 sps:$4 sm:$0xff]  }
 0x284   :  { %1298 = vmatprep.subr.bf16.mxu1 %v5358_v20  ;;  %8761 = vst [vmem:[#allocation73_spill] sm:$0xff] %v5394_v61  ;;  %v5400_v20 = vld [vmem:[%s8229_s2 + $0x2d0] ss:$8 sps:$4 sm:$0xff]  }
 0x285   :  { %1496 = vmatpush1.bf16.msra.mxu0 %v5364_v53  ;;  %8762 = vst [vmem:[#allocation74_spill] sm:$0xff] %v5400_v20  ;;  %v5406_v53 = vld [vmem:[%s8229_s2 + $0x2e4] ss:$8 sps:$4 sm:$0xff]  }
 0x286   :  { %1497 = vmatprep.subr.bf16.mxu0 %v5370_v22  ;;  %8763 = vst [vmem:[#allocation75_spill] sm:$0xff] %v5406_v53  ;;  %v5412_v22 = vld [vmem:[%s8230_s3 + $0x1c0] ss:$8 sps:$4 sm:$0xff]  }
 0x287   :  { %1299 = vmatpush1.bf16.msra.mxu1 %v5376_v54  ;;  %8764 = vst [vmem:[#allocation76_spill] sm:$0xff] %v5412_v22  ;;  %v5418_v54 = vld [vmem:[%s8230_s3 + $0x1d4] ss:$8 sps:$4 sm:$0xff]  }
 0x288   :  { %1300 = vmatprep.subr.bf16.mxu1 %v5382_v57  ;;  %8765 = vst [vmem:[#allocation77_spill] sm:$0xff] %v5418_v54  ;;  %v5424_v57 = vld [vmem:[%s8229_s2 + $0x2e0] ss:$8 sps:$4 sm:$0xff]  }
 0x289   :  { %1498 = vmatpush1.bf16.msra.mxu0 %v5388_v60  ;;  %8766 = vst [vmem:[#allocation78_spill] sm:$0xff] %v5424_v57  ;;  %v5430_v60 = vld [vmem:[%s8229_s2 + $0x2f4] ss:$8 sps:$4 sm:$0xff]  }
 0x28a   :  { %1499 = vmatprep.subr.bf16.mxu0 %v5394_v61  ;;  %v5436_v61 = vld [vmem:[%s8230_s3 + $0x1d0] ss:$8 sps:$4 sm:$0xff]  }
 0x28b   :  { %1301 = vmatpush1.bf16.msra.mxu1 %v5400_v20  ;;  %8767 = vst [vmem:[#allocation79_spill] sm:$0xff] %v5436_v61  ;;  %v5442_v20 = vld [vmem:[%s8230_s3 + $0x1e4] ss:$8 sps:$4 sm:$0xff]  }
 0x28c   :  { %1302 = vmatprep.subr.bf16.mxu1 %v5406_v53  ;;  %8768 = vst [vmem:[#allocation80_spill] sm:$0xff] %v5442_v20  ;;  %v5448_v53 = vld [vmem:[%s8229_s2 + $0x2f0] ss:$8 sps:$4 sm:$0xff]  }
 0x28d   :  { %1500 = vmatpush1.bf16.msra.mxu0 %v5412_v22  ;;  %8769 = vst [vmem:[#allocation81_spill] sm:$0xff] %v5448_v53  ;;  %v76_v22 = vpack.c.bf16 %v5079_v58, %v5079_v58  ;;  %v5482_v58 = vld [vmem:[%s8229_s2] ss:$8 sps:$4 sm:$0xff]  }
 0x28e   :  { %1501 = vmatprep.subr.bf16.mxu0 %v5418_v54  ;;  %v5455_v54 = vld [vmem:[%s8230_s3 + $0x1e0] ss:$8 sps:$4 sm:$0xff]   ;;  %8772 = vst [vmem:[#allocation84_spill] sm:$0xff] %v5482_v58 }
 0x28f   :  { %1303 = vmatpush1.bf16.msra.mxu1 %v5424_v57  ;;  %v5461_v57 = vld [vmem:[%s8230_s3 + $0x1f4] ss:$8 sps:$4 sm:$0xff]  }
 0x290   :  { %1304 = vmatprep.subr.bf16.mxu1 %v5430_v60 }
 0x291   :  { %1502 = vmatpush1.bf16.msra.mxu0 %v5436_v61  ;;  %v5469_v61 = vld [vmem:[%s8229_s2 + $0x4] ss:$8 sps:$4 sm:$0xff]  }
 0x292   :  { %1503 = vmatprep.subr.bf16.mxu0 %v5442_v20  ;;  %8770 = vst [vmem:[#allocation82_spill] sm:$0xff] %v5469_v61  ;;  %v5476_v20 = vld [vmem:[%s8230_s3 + $0x1f0] ss:$8 sps:$4 sm:$0xff]  }
 0x293   :  { %1305 = vmatpush1.bf16.msra.mxu1 %v5448_v53  ;;  %8771 = vst [vmem:[#allocation83_spill] sm:$0xff] %v5476_v20 }
 0x294   :  { %1535 = vmatprep.subr.bf16.mxu1 %v5469_v61  ;;  %v5488_v61 = vld [vmem:[%s8229_s2 + $0x14] ss:$8 sps:$4 sm:$0xff]  }
 0x295   :  { %1504 = vmatpush1.bf16.msra.mxu0 %v5455_v54 }
 0x296   :  { %1505 = vmatprep.subr.bf16.mxu0 %v5461_v57  ;;  %1307 = vmatmul.mubr.bf16.vlgmr.msra.gmra.mrb[12].mxu1 %v76_v22  ;;  %v5496_v22 = vld [vmem:[%s8229_s2 + $0x10] ss:$8 sps:$4 sm:$0xff]  }
 0x297   :  { %1536 = vmatpush1.bf16.msra.mxu1 %v5482_v58  ;;  %8773 = vst [vmem:[#allocation85_spill] sm:$0xff] %v5496_v22  ;;  %v5503_v58 = vld [vmem:[%s8229_s2 + $0x24] ss:$8 sps:$4 sm:$0xff]  }
 0x298   :  { %1537 = vmatprep.subr.bf16.mxu1 %v5488_v61  ;;  %8774 = vst [vmem:[#allocation86_spill] sm:$0xff] %v5503_v58 }
 0x299   :  { %1506 = vmatpush1.bf16.msra.mxu0 %v5476_v20 }
 0x29a   :  { %1602 = vmatprep.subr.bf16.mxu0 %v4567_v36  ;;  %v5511_v36 = vld [vmem:[%s8229_s2 + $0x20] ss:$8 sps:$4 sm:$0xff]  }
 0x29b   :  { %1538 = vmatpush1.bf16.msra.mxu1 %v5496_v22  ;;  %8775 = vst [vmem:[#allocation87_spill] sm:$0xff] %v5511_v36 }
 0x29c   :  { %1508 = vmatmul.mubr.bf16.vlgmr.msra.gmra.mrb[16].mxu0 %v5092_v14  ;;  %1539 = vmatprep.subr.bf16.mxu1 %v5503_v58  ;;  %v5517_v14 = vld [vmem:[%s8229_s2 + $0x34] ss:$8 sps:$4 sm:$0xff]  }
 0x29d   :  { %1603 = vmatpush1.bf16.msra.mxu0 %v4577_v38  ;;  %8776 = vst [vmem:[#allocation88_spill] sm:$0xff] %v5517_v14  ;;  %v5525_v38 = vld [vmem:[%s8229_s2 + $0x30] ss:$8 sps:$4 sm:$0xff]  }
 0x29e   :  { %1604 = vmatprep.subr.bf16.mxu0 %v4585_v39  ;;  %8777 = vst [vmem:[#allocation89_spill] sm:$0xff] %v5525_v38  ;;  %v5531_v39 = vld [vmem:[%s8229_s2 + $0x44] ss:$8 sps:$4 sm:$0xff]  }
 0x29f   :  { %1540 = vmatpush1.bf16.msra.mxu1 %v5511_v36  ;;  %8778 = vst [vmem:[#allocation90_spill] sm:$0xff] %v5531_v39 }
 0x2a0   :  { %1541 = vmatprep.subr.bf16.mxu1 %v5517_v14 }
 0x2a1   :  { %1605 = vmatpush1.bf16.msra.mxu0 %v4590_v40  ;;  %v5539_v40 = vld [vmem:[%s8229_s2 + $0x40] ss:$8 sps:$4 sm:$0xff]  }
 0x2a2   :  { %1606 = vmatprep.subr.bf16.mxu0 %v4597_v41  ;;  %8779 = vst [vmem:[#allocation91_spill] sm:$0xff] %v5539_v40  ;;  %v5545_v41 = vld [vmem:[%s8229_s2 + $0x54] ss:$8 sps:$4 sm:$0xff]  }
 0x2a3   :  { %1542 = vmatpush1.bf16.msra.mxu1 %v5525_v38  ;;  %8780 = vst [vmem:[#allocation92_spill] sm:$0xff] %v5545_v41 }
 0x2a4   :  { %1543 = vmatprep.subr.bf16.mxu1 %v5531_v39 }
 0x2a5   :  { %1607 = vmatpush1.bf16.msra.mxu0 %v4602_v42  ;;  %v5553_v42 = vld [vmem:[%s8229_s2 + $0x50] ss:$8 sps:$4 sm:$0xff]  }
 0x2a6   :  { %1608 = vmatprep.subr.bf16.mxu0 %v4609_v43  ;;  %8781 = vst [vmem:[#allocation93_spill] sm:$0xff] %v5553_v42  ;;  %v5559_v43 = vld [vmem:[%s8229_s2 + $0x64] ss:$8 sps:$4 sm:$0xff]  }
 0x2a7   :  { %1544 = vmatpush1.bf16.msra.mxu1 %v5539_v40  ;;  %8782 = vst [vmem:[#allocation94_spill] sm:$0xff] %v5559_v43 }
 0x2a8   :  { %1545 = vmatprep.subr.bf16.mxu1 %v5545_v41 }
 0x2a9   :  { %1609 = vmatpush1.bf16.msra.mxu0 %v4614_v44  ;;  %v5567_v44 = vld [vmem:[%s8229_s2 + $0x60] ss:$8 sps:$4 sm:$0xff]  }
 0x2aa   :  { %1610 = vmatprep.subr.bf16.mxu0 %v4621_v45  ;;  %8783 = vst [vmem:[#allocation95_spill] sm:$0xff] %v5567_v44  ;;  %v5573_v45 = vld [vmem:[%s8229_s2 + $0x74] ss:$8 sps:$4 sm:$0xff]  }
 0x2ab   :  { %1546 = vmatpush1.bf16.msra.mxu1 %v5553_v42  ;;  %8784 = vst [vmem:[#allocation96_spill] sm:$0xff] %v5573_v45 }
 0x2ac   :  { %1547 = vmatprep.subr.bf16.mxu1 %v5559_v43  ;;  %v3392_v43 = vld [vmem:[%s8227_s0 + $0x8] sm:$0xf] }
 0x2ad   :  { %1611 = vmatpush1.bf16.msra.mxu0 %v4626_v46  ;;  %v5581_v46 = vld [vmem:[%s8229_s2 + $0x70] ss:$8 sps:$4 sm:$0xff]  }
 0x2ae   :  { %1612 = vmatprep.subr.bf16.mxu0 %v4633_v47  ;;  %8785 = vst [vmem:[#allocation97_spill] sm:$0xff] %v5581_v46  ;;  %v5587_v47 = vld [vmem:[%s8229_s2 + $0x84] ss:$8 sps:$4 sm:$0xff]  }
 0x2af   :  { %1548 = vmatpush1.bf16.msra.mxu1 %v5567_v44  ;;  %8786 = vst [vmem:[#allocation98_spill] sm:$0xff] %v5587_v47 }
 0x2b0   :  { %1549 = vmatprep.subr.bf16.mxu1 %v5573_v45  ;;  %v8818_v45 = vld [vmem:[#allocation24_spill] sm:$0xff] }
 0x2b1   :  { %1613 = vmatpush1.bf16.msra.mxu0 %v4638_v48  ;;  %v5595_v48 = vld [vmem:[%s8229_s2 + $0x80] ss:$8 sps:$4 sm:$0xff]  }
 0x2b2   :  { %1614 = vmatprep.subr.bf16.mxu0 %v4645_v49  ;;  %8787 = vst [vmem:[#allocation99_spill] sm:$0xff] %v5595_v48  ;;  %v5601_v49 = vld [vmem:[%s8229_s2 + $0x94] ss:$8 sps:$4 sm:$0xff]  }
 0x2b3   :  { %1550 = vmatpush1.bf16.msra.mxu1 %v5581_v46  ;;  %8788 = vst [vmem:[#allocation100_spill] sm:$0xff] %v5601_v49  ;;  %v8817_v46 = vld [vmem:[#allocation23_spill] sm:$0xff] }
 0x2b4   :  { %1551 = vmatprep.subr.bf16.mxu1 %v5587_v47  ;;  %v8789_v47 = vld [vmem:[#allocation9_spill] sm:$0xff] }
 0x2b5   :  { %1615 = vmatpush1.bf16.msra.mxu0 %v4650_v50  ;;  %v5609_v50 = vld [vmem:[%s8229_s2 + $0x90] ss:$8 sps:$4 sm:$0xff]  }
 0x2b6   :  { %1616 = vmatprep.subr.bf16.mxu0 %v4657_v51  ;;  %8790 = vst [vmem:[#allocation9_spill] sm:$0xff] %v5609_v50  ;;  %v5615_v51 = vld [vmem:[%s8229_s2 + $0xa4] ss:$8 sps:$4 sm:$0xff]  }
 0x2b7   :  { %1552 = vmatpush1.bf16.msra.mxu1 %v5595_v48  ;;  %8791 = vst [vmem:[#allocation101_spill] sm:$0xff] %v5615_v51  ;;  %v8792_v48 = vld [vmem:[#allocation10_spill] sm:$0xff] }
 0x2b8   :  { %1553 = vmatprep.subr.bf16.mxu1 %v5601_v49  ;;  %v8793_v49 = vld [vmem:[#allocation11_spill] sm:$0xff] }
 0x2b9   :  { %1617 = vmatpush1.bf16.msra.mxu0 %v4662_v52  ;;  %v5623_v52 = vld [vmem:[%s8229_s2 + $0xa0] ss:$8 sps:$4 sm:$0xff]  }
 0x2ba   :  { %1618 = vmatprep.subr.bf16.mxu0 %v8789_v47  ;;  %8794 = vst [vmem:[#allocation10_spill] sm:$0xff] %v5623_v52  ;;  %v5629_v47 = vld [vmem:[%s8229_s2 + $0xb4] ss:$8 sps:$4 sm:$0xff]  }
 0x2bb   :  { %1554 = vmatpush1.bf16.msra.mxu1 %v5609_v50  ;;  %8795 = vst [vmem:[#allocation11_spill] sm:$0xff] %v5629_v47  ;;  %v8796_v50 = vld [vmem:[#allocation12_spill] sm:$0xff] }
 0x2bc   :  { %1555 = vmatprep.subr.bf16.mxu1 %v5615_v51  ;;  %v8797_v51 = vld [vmem:[#allocation13_spill] sm:$0xff] }
 0x2bd   :  { %1619 = vmatpush1.bf16.msra.mxu0 %v8792_v48  ;;  %v5637_v48 = vld [vmem:[%s8229_s2 + $0xb0] ss:$8 sps:$4 sm:$0xff]  }
 0x2be   :  { %1620 = vmatprep.subr.bf16.mxu0 %v8793_v49  ;;  %8798 = vst [vmem:[#allocation12_spill] sm:$0xff] %v5637_v48  ;;  %v5643_v49 = vld [vmem:[%s8229_s2 + $0xc4] ss:$8 sps:$4 sm:$0xff]  }
 0x2bf   :  { %1556 = vmatpush1.bf16.msra.mxu1 %v5623_v52  ;;  %8799 = vst [vmem:[#allocation13_spill] sm:$0xff] %v5643_v49  ;;  %v8800_v52 = vld [vmem:[#allocation14_spill] sm:$0xff] }
 0x2c0   :  { %1557 = vmatprep.subr.bf16.mxu1 %v5629_v47  ;;  %v8801_v47 = vld [vmem:[#allocation15_spill] sm:$0xff] }
 0x2c1   :  { %1621 = vmatpush1.bf16.msra.mxu0 %v8796_v50  ;;  %v5651_v50 = vld [vmem:[%s8229_s2 + $0xc0] ss:$8 sps:$4 sm:$0xff]  }
 0x2c2   :  { %1622 = vmatprep.subr.bf16.mxu0 %v8797_v51  ;;  %8802 = vst [vmem:[#allocation14_spill] sm:$0xff] %v5651_v50  ;;  %v5657_v51 = vld [vmem:[%s8229_s2 + $0xd4] ss:$8 sps:$4 sm:$0xff]  }
 0x2c3   :  { %1558 = vmatpush1.bf16.msra.mxu1 %v5637_v48  ;;  %8803 = vst [vmem:[#allocation15_spill] sm:$0xff] %v5657_v51  ;;  %v8804_v48 = vld [vmem:[#allocation16_spill] sm:$0xff] }
 0x2c4   :  { %1559 = vmatprep.subr.bf16.mxu1 %v5643_v49  ;;  %v8805_v49 = vld [vmem:[#allocation17_spill] sm:$0xff] }
 0x2c5   :  { %1623 = vmatpush1.bf16.msra.mxu0 %v8800_v52  ;;  %v5665_v52 = vld [vmem:[%s8229_s2 + $0xd0] ss:$8 sps:$4 sm:$0xff]  }
 0x2c6   :  { %1624 = vmatprep.subr.bf16.mxu0 %v8801_v47  ;;  %8806 = vst [vmem:[#allocation16_spill] sm:$0xff] %v5665_v52  ;;  %v5671_v47 = vld [vmem:[%s8229_s2 + $0xe4] ss:$8 sps:$4 sm:$0xff]  }
 0x2c7   :  { %1560 = vmatpush1.bf16.msra.mxu1 %v5651_v50  ;;  %8807 = vst [vmem:[#allocation17_spill] sm:$0xff] %v5671_v47  ;;  %v8808_v50 = vld [vmem:[#allocation18_spill] sm:$0xff] }
 0x2c8   :  { %1561 = vmatprep.subr.bf16.mxu1 %v5657_v51  ;;  %v8809_v51 = vld [vmem:[#allocation19_spill] sm:$0xff] }
 0x2c9   :  { %1625 = vmatpush1.bf16.msra.mxu0 %v8804_v48  ;;  %v5679_v48 = vld [vmem:[%s8229_s2 + $0xe0] ss:$8 sps:$4 sm:$0xff]  }
 0x2ca   :  { %1626 = vmatprep.subr.bf16.mxu0 %v8805_v49  ;;  %8810 = vst [vmem:[#allocation18_spill] sm:$0xff] %v5679_v48  ;;  %v5685_v49 = vld [vmem:[%s8229_s2 + $0xf4] ss:$8 sps:$4 sm:$0xff]  }
 0x2cb   :  { %1562 = vmatpush1.bf16.msra.mxu1 %v5665_v52  ;;  %8811 = vst [vmem:[#allocation19_spill] sm:$0xff] %v5685_v49  ;;  %v8812_v52 = vld [vmem:[#allocation20_spill] sm:$0xff] }
 0x2cc   :  { %1563 = vmatprep.subr.bf16.mxu1 %v5671_v47  ;;  %v8813_v47 = vld [vmem:[#allocation21_spill] sm:$0xff] }
 0x2cd   :  { %1627 = vmatpush1.bf16.msra.mxu0 %v8808_v50  ;;  %v5693_v50 = vld [vmem:[%s8229_s2 + $0xf0] ss:$8 sps:$4 sm:$0xff]  }
 0x2ce   :  { %1628 = vmatprep.subr.bf16.mxu0 %v8809_v51  ;;  %8814 = vst [vmem:[#allocation20_spill] sm:$0xff] %v5693_v50  ;;  %v8815_v51 = vld [vmem:[#allocation8_spill] sm:$0xff] }
 0x2cf   :  { %1564 = vmatpush1.bf16.msra.mxu1 %v5679_v48  ;;  %v8816_v48 = vld [vmem:[#allocation22_spill] sm:$0xff] }
 0x2d0   :  { %1565 = vmatprep.subr.bf16.mxu1 %v5685_v49 }
 0x2d1   :  { %1629 = vmatpush1.bf16.msra.mxu0 %v8812_v52 }
 0x2d2   :  { %1630 = vmatprep.subr.bf16.mxu0 %v8813_v47 }
 0x2d3   :  { %1566 = vmatpush1.bf16.msra.mxu1 %v5693_v50 }
 0x2d4   :  { %1643 = vmatprep.subr.bf16.mxu1 %v8815_v51 }
 0x2d5   :  { %1631 = vmatpush1.bf16.msra.mxu0 %v8816_v48 }
 0x2d6   :  { %1632 = vmatprep.subr.bf16.mxu0 %v8817_v46 }
 0x2d9   :  { %1633 = vmatpush1.bf16.msra.mxu0 %v8818_v45 }
 0x2da   :  { %1690 = vmatprep.subr.bf16.mxu0 %v5030_v18 }
 0x2ef   :  { %v927_v52 = vpop.f32.mrb[8].mxu0 }
 0x2f0   :  { %v929_v49 = vpop.f32.mrb[9].mxu0 }
 0x2f1   :  { %v936_v47 = vcombine.low %v927_v52, %v929_v49  ;;  %v931_v44 = vpop.f32.mrb[10].mxu0  ;;  %v8839_v49 = vld [vmem:[#allocation47_spill] sm:$0xff]  ;;  %v8841_v52 = vld [vmem:[#allocation49_spill] sm:$0xff] }
 0x2f2   :  { %v932_v42 = vpop.f32.mrb[11].mxu0  ;;  %v8838_v44 = vld [vmem:[#allocation46_spill] sm:$0xff] }
 0x2f3   :  { %v943_v50 = vrot.slane %v936_v47, %v4784_v6  ;;  %v8836_v42 = vld [vmem:[#allocation44_spill] sm:$0xff]  ;;  %v8842_v47 = vld [vmem:[#allocation50_spill] sm:$0xff] }
 0x2f5   :  { %v945_v51 = vadd.f32 %v3392_v43, %v943_v50  ;;  %v8837_v43 = vld [vmem:[#allocation45_spill] sm:$0xff]  ;;  %v8840_v50 = vld [vmem:[#allocation48_spill] sm:$0xff] }
 0x2f7   :  { %3837 = vtanh.f32 %v945_v51  ;;  %v8843_v51 = vld [vmem:[#allocation51_spill] sm:$0xff] }
 0x301   :  { %v3838_v48 = vpop.eup %3837 }
 0x302   :  { %v954_v46 = vrot.slane %v3838_v48, %v4784_v6  ;;  %v8844_v48 = vld [vmem:[#allocation52_spill] sm:$0xff] }
 0x304   :  { %v955_v41 = vcombine.high %v954_v46, %v954_v46  ;;  %v958_v40 = vpack.c.bf16 %v954_v46, %v954_v46  ;;  %v8845_v46 = vld [vmem:[#allocation53_spill] sm:$0xff] }
 0x306   :  { %v959_v45 = vpack.c.bf16 %v955_v41, %v955_v41  ;;  %v8835_v41 = vld [vmem:[#allocation43_spill] sm:$0xff] }
 0x308   :  { %1567 = vmatprep.mubr.bf16.mxu1 %v959_v45 }
 0x309   :  { %1568 = vmatmul.mubr.bf16.vlgmr.msra.gmra.mrb[16].mxu1 %v958_v40 }
 0x30a   :  { %1644 = vmatpush1.bf16.msra.mxu1 %v4806_v21  ;;  %1675 = vmatprep.mubr.bf16.mxu1 %v959_v45  ;;  %v8846_v45 = vld [vmem:[#allocation54_spill] sm:$0xff] }
 0x30b   :  { %1645 = vmatprep.subr.bf16.mxu1 %v4813_v23 }
 0x30e   :  { %1646 = vmatpush1.bf16.msra.mxu1 %v4822_v24 }
 0x30f   :  { %1647 = vmatprep.subr.bf16.mxu1 %v4828_v25 }
 0x312   :  { %1648 = vmatpush1.bf16.msra.mxu1 %v4834_v26 }
 0x313   :  { %1649 = vmatprep.subr.bf16.mxu1 %v4840_v27 }
 0x316   :  { %1650 = vmatpush1.bf16.msra.mxu1 %v4846_v28 }
 0x317   :  { %1651 = vmatprep.subr.bf16.mxu1 %v4852_v29 }
 0x31a   :  { %1652 = vmatpush1.bf16.msra.mxu1 %v4858_v30 }
 0x31b   :  { %1653 = vmatprep.subr.bf16.mxu1 %v4864_v31 }
 0x31e   :  { %1654 = vmatpush1.bf16.msra.mxu1 %v4870_v32 }
 0x31f   :  { %1655 = vmatprep.subr.bf16.mxu1 %v4876_v33 }
 0x322   :  { %1656 = vmatpush1.bf16.msra.mxu1 %v4882_v34 }
 0x323   :  { %1657 = vmatprep.subr.bf16.mxu1 %v4888_v62 }
 0x326   :  { %1658 = vmatpush1.bf16.msra.mxu1 %v4894_v63 }
 0x327   :  { %1659 = vmatprep.subr.bf16.mxu1 %v4900_v16 }
 0x329   :  { %v994_v21 = vpop.f32.mrb[8].mxu1 }
 0x32a   :  { %v996_v23 = vpop.f32.mrb[9].mxu1  ;;  %1660 = vmatpush1.bf16.msra.mxu1 %v4906_v17  ;;  %v8819_v17 = vld [vmem:[#allocation27_spill] sm:$0xff] }
 0x32b   :  { %v998_v24 = vpop.f32.mrb[10].mxu1  ;;  %1661 = vmatprep.subr.bf16.mxu1 %v4912_v0  ;;  %v8820_v0 = vld [vmem:[#allocation28_spill] sm:$0xff] }
 0x32c   :  { %v999_v25 = vpop.f32.mrb[11].mxu1  ;;  %v8849_v24 = vld [vmem:[#allocation57_spill] sm:$0xff] }
 0x32d   :  { %v8850_v25 = vld [vmem:[#allocation58_spill] sm:$0xff] }
 0x32e   :  { %1662 = vmatpush1.bf16.msra.mxu1 %v4918_v1  ;;  %v8821_v1 = vld [vmem:[#allocation29_spill] sm:$0xff] }
 0x32f   :  { %v1035_v26 = vpop.f32.mrb[12].mxu0  ;;  %1663 = vmatprep.subr.bf16.mxu1 %v4924_v2  ;;  %v8822_v2 = vld [vmem:[#allocation30_spill] sm:$0xff] }
 0x330   :  { %v1036_v27 = vadd.f32 %v1035_v26, %v994_v21  ;;  %v1037_v28 = vpop.f32.mrb[13].mxu0  ;;  %v8847_v21 = vld [vmem:[#allocation55_spill] sm:$0xff] }
 0x331   :  { %v1038_v29 = vadd.f32 %v1037_v28, %v996_v23  ;;  %v1039_v30 = vpop.f32.mrb[14].mxu0  ;;  %v8848_v23 = vld [vmem:[#allocation56_spill] sm:$0xff]  ;;  %v8851_v26 = vld [vmem:[#allocation59_spill] sm:$0xff] }
 0x332   :  { %v1042_v31 = vadd.f32 %v5062_v37, %v1036_v27  ;;  %v1040_v32 = vpop.f32.mrb[15].mxu0  ;;  %1664 = vmatpush1.bf16.msra.mxu1 %v4930_v3  ;;  %v8823_v3 = vld [vmem:[#allocation31_spill] sm:$0xff]  ;;  %v8852_v28 = vld [vmem:[#allocation60_spill] sm:$0xff]  ;;  %v8853_v30 = vld [vmem:[#allocation61_spill] sm:$0xff] }
 0x333   :  { %v1043_v33 = vadd.f32 %v1038_v29, %v5067_v55  ;;  %1665 = vmatprep.subr.bf16.mxu1 %v4936_v4  ;;  %v8824_v4 = vld [vmem:[#allocation32_spill] sm:$0xff]  ;;  %v8854_v32 = vld [vmem:[#allocation62_spill] sm:$0xff] }
 0x334   :  { %3839 = vtanh.f32 %v1042_v31 }
 0x335   :  { %3841 = vtanh.f32 %v1043_v33  ;;  %v5785_v33 = vld.sshfl [vmem:[%s8231_s4 + $0x4] sm:$0x33 pattern:$0x76325410] }
 0x336   :  { %1666 = vmatpush1.bf16.msra.mxu1 %v4942_v5  ;;  %v8825_v5 = vld [vmem:[#allocation33_spill] sm:$0xff] }
 0x337   :  { %1667 = vmatprep.subr.bf16.mxu1 %v4948_v7  ;;  %v8826_v7 = vld [vmem:[#allocation34_spill] sm:$0xff] }
 0x33a   :  { %1668 = vmatpush1.bf16.msra.mxu1 %v4954_v8  ;;  %v8827_v8 = vld [vmem:[#allocation35_spill] sm:$0xff] }
 0x33b   :  { %1669 = vmatprep.subr.bf16.mxu1 %v4960_v9  ;;  %v8828_v9 = vld [vmem:[#allocation36_spill] sm:$0xff] }
 0x33e   :  { %v3840_v34 = vpop.eup %3839  ;;  %1670 = vmatpush1.bf16.msra.mxu1 %v4966_v10  ;;  %v8829_v10 = vld [vmem:[#allocation37_spill] sm:$0xff] }
 0x33f   :  { %v3842_v62 = vpop.eup %3841  ;;  %1671 = vmatprep.subr.bf16.mxu1 %v4972_v11  ;;  %v5736_v16 = vpack.c.bf16 %v3840_v34, %v3840_v34  ;;  %v8830_v11 = vld [vmem:[#allocation38_spill] sm:$0xff] }
 0x340   :  { %v1047_v63 = vpack.c.bf16 %v3842_v62, %v3842_v62  ;;  %v8855_v62 = vld [vmem:[#allocation63_spill] sm:$0xff] }
 0x342   :  { %1634 = vmatprep.mubr.bf16.mxu0 %v1047_v63  ;;  %1672 = vmatpush1.bf16.msra.mxu1 %v4978_v12  ;;  %v8831_v12 = vld [vmem:[#allocation39_spill] sm:$0xff] }
 0x343   :  { %1635 = vmatmul.mubr.bf16.vlgmr.msra.gmra.mrb[20].mxu0 %v5736_v16  ;;  %1673 = vmatprep.subr.bf16.mxu1 %v4984_v13  ;;  %v8832_v13 = vld [vmem:[#allocation40_spill] sm:$0xff] }
 0x344   :  { %1691 = vmatpush1.bf16.msra.mxu0 %v5090_v56 }
 0x345   :  { %1692 = vmatprep.subr.bf16.mxu0 %v5097_v35 }
 0x346   :  { %1674 = vmatpush1.bf16.msra.mxu1 %v4990_v15  ;;  %v8833_v15 = vld [vmem:[#allocation41_spill] sm:$0xff] }
 0x347   :  { %1731 = vmatprep.subr.bf16.mxu1 %v5105_v19 }
 0x348   :  { %1693 = vmatpush1.bf16.msra.mxu0 %v8819_v17 }
 0x349   :  { %1676 = vmatmul.mubr.bf16.vlgmr.msra.gmra.mrb[20].mxu1 %v958_v40  ;;  %1694 = vmatprep.subr.bf16.mxu0 %v8820_v0  ;;  %v8834_v40 = vld [vmem:[#allocation42_spill] sm:$0xff] }
 0x34a   :  { %1732 = vmatpush1.bf16.msra.mxu1 %v5123_v59  ;;  %1763 = vmatprep.mubr.bf16.mxu1 %v1047_v63  ;;  %v8856_v63 = vld [vmem:[#allocation64_spill] sm:$0xff] }
 0x34b   :  { %1733 = vmatprep.subr.bf16.mxu1 %v8821_v1 }
 0x34c   :  { %1695 = vmatpush1.bf16.msra.mxu0 %v8822_v2 }
 0x34d   :  { %1696 = vmatprep.subr.bf16.mxu0 %v8823_v3 }
 0x34e   :  { %1734 = vmatpush1.bf16.msra.mxu1 %v8824_v4 }
 0x34f   :  { %1735 = vmatprep.subr.bf16.mxu1 %v8825_v5 }
 0x350   :  { %1697 = vmatpush1.bf16.msra.mxu0 %v8826_v7 }
 0x351   :  { %1698 = vmatprep.subr.bf16.mxu0 %v8827_v8 }
 0x352   :  { %1736 = vmatpush1.bf16.msra.mxu1 %v8828_v9 }
 0x353   :  { %1737 = vmatprep.subr.bf16.mxu1 %v8829_v10 }
 0x354   :  { %1699 = vmatpush1.bf16.msra.mxu0 %v8830_v11 }
 0x355   :  { %1700 = vmatprep.subr.bf16.mxu0 %v8831_v12 }
 0x356   :  { %1738 = vmatpush1.bf16.msra.mxu1 %v8832_v13 }
 0x357   :  { %1739 = vmatprep.subr.bf16.mxu1 %v8833_v15 }
 0x358   :  { %1701 = vmatpush1.bf16.msra.mxu0 %v8834_v40 }
 0x359   :  { %1702 = vmatprep.subr.bf16.mxu0 %v8835_v41 }
 0x35a   :  { %1740 = vmatpush1.bf16.msra.mxu1 %v8836_v42 }
 0x35b   :  { %1741 = vmatprep.subr.bf16.mxu1 %v8837_v43 }
 0x35c   :  { %1703 = vmatpush1.bf16.msra.mxu0 %v8838_v44 }
 0x35d   :  { %1704 = vmatprep.subr.bf16.mxu0 %v8839_v49 }
 0x35e   :  { %1742 = vmatpush1.bf16.msra.mxu1 %v8840_v50 }
 0x35f   :  { %1743 = vmatprep.subr.bf16.mxu1 %v8841_v52 }
 0x360   :  { %1705 = vmatpush1.bf16.msra.mxu0 %v8842_v47 }
 0x361   :  { %1706 = vmatprep.subr.bf16.mxu0 %v8843_v51 }
 0x362   :  { %1744 = vmatpush1.bf16.msra.mxu1 %v8844_v48  ;;  %v8862_v48 = vld [vmem:[#allocation70_spill] sm:$0xff] }
 0x363   :  { %1745 = vmatprep.subr.bf16.mxu1 %v8845_v46  ;;  %v8861_v46 = vld [vmem:[#allocation69_spill] sm:$0xff] }
 0x364   :  { %1707 = vmatpush1.bf16.msra.mxu0 %v8846_v45  ;;  %v8860_v45 = vld [vmem:[#allocation68_spill] sm:$0xff] }
 0x365   :  { %1708 = vmatprep.subr.bf16.mxu0 %v8847_v21  ;;  %v8859_v21 = vld [vmem:[#allocation67_spill] sm:$0xff] }
 0x366   :  { %1746 = vmatpush1.bf16.msra.mxu1 %v8848_v23 }
 0x367   :  { %1747 = vmatprep.subr.bf16.mxu1 %v8849_v24 }
 0x368   :  { %1709 = vmatpush1.bf16.msra.mxu0 %v8850_v25  ;;  %v8857_v25 = vld [vmem:[#allocation65_spill] sm:$0xff] }
 0x369   :  { %1710 = vmatprep.subr.bf16.mxu0 %v8851_v26  ;;  %v1308_v27 = vpop.f32.mrb[12].mxu1 }
 0x36a   :  { %1748 = vmatpush1.bf16.msra.mxu1 %v8852_v28  ;;  %v1310_v29 = vpop.f32.mrb[13].mxu1  ;;  %v5791_v28 = vcombine.high %v5785_v33, %v5785_v33 }
 0x36b   :  { %1749 = vmatprep.subr.bf16.mxu1 %v8853_v30  ;;  %v1312_v31 = vpop.f32.mrb[14].mxu1 }
 0x36c   :  { %1711 = vmatpush1.bf16.msra.mxu0 %v8854_v32  ;;  %v1313_v34 = vpop.f32.mrb[15].mxu1  ;;  %v8858_v32 = vld [vmem:[#allocation66_spill] sm:$0xff] }
 0x36d   :  { %1712 = vmatprep.subr.bf16.mxu0 %v8855_v62 }
 0x36e   :  { %1750 = vmatpush1.bf16.msra.mxu1 %v8856_v63 }
 0x36f   :  { %v1509_v26 = vpop.f32.mrb[16].mxu0  ;;  %1751 = vmatprep.subr.bf16.mxu1 %v8857_v25 }
 0x370   :  { %v1510_v31 = vadd.f32 %v1509_v26, %v1308_v27  ;;  %v1511_v30 = vpop.f32.mrb[17].mxu0  ;;  %1713 = vmatpush1.bf16.msra.mxu0 %v8858_v32  ;;  %v8863_v26 = vld [vmem:[#allocation71_spill] sm:$0xff]  ;;  %v8864_v27 = vld [vmem:[#allocation72_spill] sm:$0xff] }
 0x371   :  { %v1512_v24 = vadd.f32 %v1511_v30, %v1310_v29  ;;  %v1513_v23 = vpop.f32.mrb[18].mxu0  ;;  %1714 = vmatprep.subr.bf16.mxu0 %v8859_v21  ;;  %v8866_v29 = vld [vmem:[#allocation74_spill] sm:$0xff]  ;;  %v8867_v30 = vld [vmem:[#allocation75_spill] sm:$0xff] }
 0x372   :  { %v1527_v34 = vadd.f32 %v5785_v33, %v1510_v31  ;;  %v1514_v62 = vpop.f32.mrb[19].mxu0  ;;  %1752 = vmatpush1.bf16.msra.mxu1 %v8860_v45  ;;  %v8865_v23 = vld [vmem:[#allocation73_spill] sm:$0xff] }
 0x373   :  { %v1528_v63 = vadd.f32 %v5791_v28, %v1512_v24  ;;  %1753 = vmatprep.subr.bf16.mxu1 %v8861_v46  ;;  %v8868_v62 = vld [vmem:[#allocation76_spill] sm:$0xff]  ;;  %v8869_v31 = vld [vmem:[#allocation77_spill] sm:$0xff]  ;;  %v8870_v24 = vld [vmem:[#allocation78_spill] sm:$0xff] }
 0x374   :  { %3843 = vtanh.f32 %v1527_v34  ;;  %1715 = vmatpush1.bf16.msra.mxu0 %v8862_v48  ;;  %v8872_v48 = vld [vmem:[#allocation80_spill] sm:$0xff] }
 0x375   :  { %3845 = vtanh.f32 %v1528_v63  ;;  %1716 = vmatprep.subr.bf16.mxu0 %v8863_v26  ;;  %v8871_v63 = vld [vmem:[#allocation79_spill] sm:$0xff] }
 0x376   :  { %1754 = vmatpush1.bf16.msra.mxu1 %v8864_v27  ;;  %v8873_v27 = vld [vmem:[#allocation82_spill] sm:$0xff] }
 0x377   :  { %1755 = vmatprep.subr.bf16.mxu1 %v8865_v23 }
 0x378   :  { %1717 = vmatpush1.bf16.msra.mxu0 %v8866_v29 }
 0x379   :  { %1718 = vmatprep.subr.bf16.mxu0 %v8867_v30 }
 0x37a   :  { %1756 = vmatpush1.bf16.msra.mxu1 %v8868_v62 }
 0x37b   :  { %1757 = vmatprep.subr.bf16.mxu1 %v8869_v31 }
 0x37c   :  { %1719 = vmatpush1.bf16.msra.mxu0 %v8870_v24  ;;  %v8874_v24 = vld [vmem:[#allocation84_spill] sm:$0xff] }
 0x37d   :  { %1720 = vmatprep.subr.bf16.mxu0 %v5430_v60 }
 0x37e   :  { %v3844_v34 = vpop.eup %3843  ;;  %1758 = vmatpush1.bf16.msra.mxu1 %v8871_v63 }
 0x37f   :  { %v3846_v26 = vpop.eup %3845  ;;  %1759 = vmatprep.subr.bf16.mxu1 %v8872_v48  ;;  %v1531_v29 = vpack.c.bf16 %v3844_v34, %v3844_v34  ;;  %v5859_v34 = vld [vmem:[%s8229_s2 + $0x120] ss:$8 sps:$4 sm:$0xff]  }
 0x380   :  { %1721 = vmatpush1.bf16.msra.mxu0 %v5448_v53  ;;  %v1532_v23 = vpack.c.bf16 %v3846_v26, %v3846_v26  ;;  %v5822_v53 = vld [vmem:[%s8229_s2 + $0x104] ss:$8 sps:$4 sm:$0xff]   ;;  %v5831_v26 = vld [vmem:[%s8229_s2 + $0x100] ss:$8 sps:$4 sm:$0xff]   ;;  %8880 = vst [vmem:[#allocation27_spill] sm:$0xff] %v5859_v34 }
 0x381   :  { %1780 = vmatprep.subr.bf16.mxu0 %v8873_v27  ;;  %8875 = vst [vmem:[#allocation21_spill] sm:$0xff] %v5822_v53  ;;  %8876 = vst [vmem:[#allocation8_spill] sm:$0xff] %v5831_v26 }
 0x382   :  { %1722 = vmatprep.mubr.bf16.mxu0 %v1532_v23  ;;  %1760 = vmatpush1.bf16.msra.mxu1 %v5455_v54  ;;  %v5837_v23 = vld [vmem:[%s8229_s2 + $0x114] ss:$8 sps:$4 sm:$0xff]  }
 0x383   :  { %1723 = vmatmul.mubr.bf16.vlgmr.msra.gmra.mrb[24].mxu0 %v1531_v29  ;;  %1761 = vmatprep.subr.bf16.mxu1 %v5461_v57  ;;  %8877 = vst [vmem:[#allocation22_spill] sm:$0xff] %v5837_v23  ;;  %v5851_v29 = vld [vmem:[%s8229_s2 + $0x124] ss:$8 sps:$4 sm:$0xff]  }
 0x384   :  { %1781 = vmatpush1.bf16.msra.mxu0 %v8874_v24  ;;  %8879 = vst [vmem:[#allocation24_spill] sm:$0xff] %v5851_v29 }
 0x385   :  { %1782 = vmatprep.subr.bf16.mxu0 %v5488_v61 }
 0x386   :  { %1762 = vmatpush1.bf16.msra.mxu1 %v5476_v20 }
 0x387   :  { %1847 = vmatprep.subr.bf16.mxu1 %v5822_v53 }
 0x388   :  { %1783 = vmatpush1.bf16.msra.mxu0 %v5496_v22 }
 0x389   :  { %1764 = vmatmul.mubr.bf16.vlgmr.msra.gmra.mrb[24].mxu1 %v5736_v16  ;;  %1784 = vmatprep.subr.bf16.mxu0 %v5503_v58  ;;  %v5845_v16 = vld [vmem:[%s8229_s2 + $0x110] ss:$8 sps:$4 sm:$0xff]  }
 0x38a   :  { %1848 = vmatpush1.bf16.msra.mxu1 %v5831_v26  ;;  %8878 = vst [vmem:[#allocation23_spill] sm:$0xff] %v5845_v16 }
 0x38b   :  { %1849 = vmatprep.subr.bf16.mxu1 %v5837_v23 }
 0x38c   :  { %1785 = vmatpush1.bf16.msra.mxu0 %v5511_v36  ;;  %v3522_v36 = vld [vmem:[%s8227_s0 + $0xc] sm:$0xf] }
 0x38d   :  { %1786 = vmatprep.subr.bf16.mxu0 %v5517_v14  ;;  %v8882_v14 = vld [vmem:[#allocation91_spill] sm:$0xff] }
 0x38e   :  { %1850 = vmatpush1.bf16.msra.mxu1 %v5845_v16  ;;  %v5865_v16 = vld [vmem:[%s8229_s2 + $0x134] ss:$8 sps:$4 sm:$0xff]  }
 0x38f   :  { %1851 = vmatprep.subr.bf16.mxu1 %v5851_v29  ;;  %8881 = vst [vmem:[#allocation28_spill] sm:$0xff] %v5865_v16  ;;  %v8883_v29 = vld [vmem:[#allocation92_spill] sm:$0xff] }
 0x390   :  { %1787 = vmatpush1.bf16.msra.mxu0 %v5525_v38  ;;  %v8886_v38 = vld [vmem:[#allocation93_spill] sm:$0xff] }
 0x391   :  { %1788 = vmatprep.subr.bf16.mxu0 %v5531_v39  ;;  %v5873_v39 = vld [vmem:[%s8229_s2 + $0x130] ss:$8 sps:$4 sm:$0xff]  }
 0x392   :  { %1852 = vmatpush1.bf16.msra.mxu1 %v5859_v34  ;;  %8884 = vst [vmem:[#allocation29_spill] sm:$0xff] %v5873_v39  ;;  %v5879_v34 = vld [vmem:[%s8229_s2 + $0x144] ss:$8 sps:$4 sm:$0xff]  }
 0x393   :  { %1853 = vmatprep.subr.bf16.mxu1 %v5865_v16  ;;  %8885 = vst [vmem:[#allocation30_spill] sm:$0xff] %v5879_v34  ;;  %v8887_v16 = vld [vmem:[#allocation94_spill] sm:$0xff] }
 0x394   :  { %1789 = vmatpush1.bf16.msra.mxu0 %v8882_v14  ;;  %v8890_v14 = vld [vmem:[#allocation95_spill] sm:$0xff] }
 0x395   :  { %1790 = vmatprep.subr.bf16.mxu0 %v8883_v29  ;;  %v5887_v29 = vld [vmem:[%s8229_s2 + $0x140] ss:$8 sps:$4 sm:$0xff]  }
 0x396   :  { %1854 = vmatpush1.bf16.msra.mxu1 %v5873_v39  ;;  %8888 = vst [vmem:[#allocation31_spill] sm:$0xff] %v5887_v29  ;;  %v5893_v39 = vld [vmem:[%s8229_s2 + $0x154] ss:$8 sps:$4 sm:$0xff]  }
 0x397   :  { %1855 = vmatprep.subr.bf16.mxu1 %v5879_v34  ;;  %8889 = vst [vmem:[#allocation32_spill] sm:$0xff] %v5893_v39  ;;  %v8891_v34 = vld [vmem:[#allocation96_spill] sm:$0xff] }
 0x398   :  { %1791 = vmatpush1.bf16.msra.mxu0 %v8886_v38  ;;  %v8894_v38 = vld [vmem:[#allocation97_spill] sm:$0xff] }
 0x399   :  { %1792 = vmatprep.subr.bf16.mxu0 %v8887_v16  ;;  %v5901_v16 = vld [vmem:[%s8229_s2 + $0x150] ss:$8 sps:$4 sm:$0xff]  }
 0x39a   :  { %1856 = vmatpush1.bf16.msra.mxu1 %v5887_v29  ;;  %8892 = vst [vmem:[#allocation33_spill] sm:$0xff] %v5901_v16  ;;  %v5907_v29 = vld [vmem:[%s8229_s2 + $0x164] ss:$8 sps:$4 sm:$0xff]  }
 0x39b   :  { %1857 = vmatprep.subr.bf16.mxu1 %v5893_v39  ;;  %8893 = vst [vmem:[#allocation34_spill] sm:$0xff] %v5907_v29  ;;  %v8895_v39 = vld [vmem:[#allocation98_spill] sm:$0xff] }
 0x39c   :  { %1793 = vmatpush1.bf16.msra.mxu0 %v8890_v14  ;;  %v8898_v14 = vld [vmem:[#allocation99_spill] sm:$0xff] }
 0x39d   :  { %1794 = vmatprep.subr.bf16.mxu0 %v8891_v34  ;;  %v5915_v34 = vld [vmem:[%s8229_s2 + $0x160] ss:$8 sps:$4 sm:$0xff]  }
 0x39e   :  { %1858 = vmatpush1.bf16.msra.mxu1 %v5901_v16  ;;  %8896 = vst [vmem:[#allocation35_spill] sm:$0xff] %v5915_v34  ;;  %v5921_v16 = vld [vmem:[%s8229_s2 + $0x174] ss:$8 sps:$4 sm:$0xff]  }
 0x39f   :  { %1859 = vmatprep.subr.bf16.mxu1 %v5907_v29  ;;  %8897 = vst [vmem:[#allocation36_spill] sm:$0xff] %v5921_v16  ;;  %v8899_v29 = vld [vmem:[#allocation100_spill] sm:$0xff] }
 0x3a0   :  { %1795 = vmatpush1.bf16.msra.mxu0 %v8894_v38  ;;  %v8902_v38 = vld [vmem:[#allocation9_spill] sm:$0xff] }
 0x3a1   :  { %1796 = vmatprep.subr.bf16.mxu0 %v8895_v39  ;;  %v5929_v39 = vld [vmem:[%s8229_s2 + $0x170] ss:$8 sps:$4 sm:$0xff]  }
 0x3a2   :  { %1860 = vmatpush1.bf16.msra.mxu1 %v5915_v34  ;;  %8900 = vst [vmem:[#allocation37_spill] sm:$0xff] %v5929_v39  ;;  %v5935_v34 = vld [vmem:[%s8229_s2 + $0x184] ss:$8 sps:$4 sm:$0xff]  }
 0x3a3   :  { %1861 = vmatprep.subr.bf16.mxu1 %v5921_v16  ;;  %8901 = vst [vmem:[#allocation38_spill] sm:$0xff] %v5935_v34  ;;  %v8903_v16 = vld [vmem:[#allocation101_spill] sm:$0xff] }
 0x3a4   :  { %1797 = vmatpush1.bf16.msra.mxu0 %v8898_v14  ;;  %v8906_v14 = vld [vmem:[#allocation10_spill] sm:$0xff] }
 0x3a5   :  { %1798 = vmatprep.subr.bf16.mxu0 %v8899_v29  ;;  %v5943_v29 = vld [vmem:[%s8229_s2 + $0x180] ss:$8 sps:$4 sm:$0xff]  }
 0x3a6   :  { %1862 = vmatpush1.bf16.msra.mxu1 %v5929_v39  ;;  %8904 = vst [vmem:[#allocation39_spill] sm:$0xff] %v5943_v29  ;;  %v5949_v39 = vld [vmem:[%s8229_s2 + $0x194] ss:$8 sps:$4 sm:$0xff]  }
 0x3a7   :  { %1863 = vmatprep.subr.bf16.mxu1 %v5935_v34  ;;  %8905 = vst [vmem:[#allocation40_spill] sm:$0xff] %v5949_v39  ;;  %v8907_v34 = vld [vmem:[#allocation11_spill] sm:$0xff] }
 0x3a8   :  { %1799 = vmatpush1.bf16.msra.mxu0 %v8902_v38  ;;  %v8910_v38 = vld [vmem:[#allocation12_spill] sm:$0xff] }
 0x3a9   :  { %1800 = vmatprep.subr.bf16.mxu0 %v8903_v16  ;;  %v5957_v16 = vld [vmem:[%s8229_s2 + $0x190] ss:$8 sps:$4 sm:$0xff]  }
 0x3aa   :  { %1864 = vmatpush1.bf16.msra.mxu1 %v5943_v29  ;;  %8908 = vst [vmem:[#allocation41_spill] sm:$0xff] %v5957_v16  ;;  %v5963_v29 = vld [vmem:[%s8229_s2 + $0x1a4] ss:$8 sps:$4 sm:$0xff]  }
 0x3ab   :  { %1865 = vmatprep.subr.bf16.mxu1 %v5949_v39  ;;  %8909 = vst [vmem:[#allocation42_spill] sm:$0xff] %v5963_v29  ;;  %v8911_v39 = vld [vmem:[#allocation13_spill] sm:$0xff] }
 0x3ac   :  { %1801 = vmatpush1.bf16.msra.mxu0 %v8906_v14  ;;  %v8914_v14 = vld [vmem:[#allocation14_spill] sm:$0xff] }
 0x3ad   :  { %1802 = vmatprep.subr.bf16.mxu0 %v8907_v34  ;;  %v5971_v34 = vld [vmem:[%s8229_s2 + $0x1a0] ss:$8 sps:$4 sm:$0xff]  }
 0x3ae   :  { %1866 = vmatpush1.bf16.msra.mxu1 %v5957_v16  ;;  %8912 = vst [vmem:[#allocation43_spill] sm:$0xff] %v5971_v34  ;;  %v5977_v16 = vld [vmem:[%s8229_s2 + $0x1b4] ss:$8 sps:$4 sm:$0xff]  }
 0x3af   :  { %1867 = vmatprep.subr.bf16.mxu1 %v5963_v29  ;;  %8913 = vst [vmem:[#allocation44_spill] sm:$0xff] %v5977_v16  ;;  %v8915_v29 = vld [vmem:[#allocation15_spill] sm:$0xff] }
 0x3b0   :  { %1803 = vmatpush1.bf16.msra.mxu0 %v8910_v38  ;;  %v8918_v38 = vld [vmem:[#allocation16_spill] sm:$0xff] }
 0x3b1   :  { %1804 = vmatprep.subr.bf16.mxu0 %v8911_v39  ;;  %v5985_v39 = vld [vmem:[%s8229_s2 + $0x1b0] ss:$8 sps:$4 sm:$0xff]  }
 0x3b2   :  { %1868 = vmatpush1.bf16.msra.mxu1 %v5971_v34  ;;  %8916 = vst [vmem:[#allocation45_spill] sm:$0xff] %v5985_v39  ;;  %v5991_v34 = vld [vmem:[%s8229_s2 + $0x1c4] ss:$8 sps:$4 sm:$0xff]  }
 0x3b3   :  { %1869 = vmatprep.subr.bf16.mxu1 %v5977_v16  ;;  %8917 = vst [vmem:[#allocation46_spill] sm:$0xff] %v5991_v34  ;;  %v8919_v16 = vld [vmem:[#allocation17_spill] sm:$0xff] }
 0x3b4   :  { %1805 = vmatpush1.bf16.msra.mxu0 %v8914_v14  ;;  %v8922_v14 = vld [vmem:[#allocation18_spill] sm:$0xff] }
 0x3b5   :  { %1806 = vmatprep.subr.bf16.mxu0 %v8915_v29  ;;  %v5999_v29 = vld [vmem:[%s8229_s2 + $0x1c0] ss:$8 sps:$4 sm:$0xff]  }
 0x3b6   :  { %1870 = vmatpush1.bf16.msra.mxu1 %v5985_v39  ;;  %8920 = vst [vmem:[#allocation47_spill] sm:$0xff] %v5999_v29  ;;  %v6005_v39 = vld [vmem:[%s8229_s2 + $0x1d4] ss:$8 sps:$4 sm:$0xff]  }
 0x3b7   :  { %1871 = vmatprep.subr.bf16.mxu1 %v5991_v34  ;;  %8921 = vst [vmem:[#allocation48_spill] sm:$0xff] %v6005_v39  ;;  %v8923_v34 = vld [vmem:[#allocation19_spill] sm:$0xff] }
 0x3b8   :  { %1807 = vmatpush1.bf16.msra.mxu0 %v8918_v38  ;;  %v8926_v38 = vld [vmem:[#allocation20_spill] sm:$0xff] }
 0x3b9   :  { %1808 = vmatprep.subr.bf16.mxu0 %v8919_v16  ;;  %v6013_v16 = vld [vmem:[%s8229_s2 + $0x1d0] ss:$8 sps:$4 sm:$0xff]  }
 0x3ba   :  { %1872 = vmatpush1.bf16.msra.mxu1 %v5999_v29  ;;  %8924 = vst [vmem:[#allocation49_spill] sm:$0xff] %v6013_v16  ;;  %v6019_v29 = vld [vmem:[%s8229_s2 + $0x1e4] ss:$8 sps:$4 sm:$0xff]  }
 0x3bb   :  { %1873 = vmatprep.subr.bf16.mxu1 %v6005_v39  ;;  %8925 = vst [vmem:[#allocation50_spill] sm:$0xff] %v6019_v29 }
 0x3bc   :  { %1809 = vmatpush1.bf16.msra.mxu0 %v8922_v14 }
 0x3bd   :  { %1810 = vmatprep.subr.bf16.mxu0 %v8923_v34  ;;  %v6026_v34 = vld [vmem:[%s8230_s3 + $0x4] ss:$8 sps:$4 sm:$0xff]  }
 0x3be   :  { %1874 = vmatpush1.bf16.msra.mxu1 %v6013_v16  ;;  %8927 = vst [vmem:[#allocation51_spill] sm:$0xff] %v6026_v34  ;;  %v6032_v16 = vld [vmem:[%s8229_s2 + $0x1e0] ss:$8 sps:$4 sm:$0xff]  }
 0x3bf   :  { %1875 = vmatprep.subr.bf16.mxu1 %v6019_v29  ;;  %8928 = vst [vmem:[#allocation65_spill] sm:$0xff] %v6032_v16  ;;  %v6038_v29 = vld [vmem:[%s8229_s2 + $0x1f4] ss:$8 sps:$4 sm:$0xff]  }
 0x3c0   :  { %1811 = vmatpush1.bf16.msra.mxu0 %v8926_v38  ;;  %8929 = vst [vmem:[#allocation66_spill] sm:$0xff] %v6038_v29  ;;  %v6044_v38 = vld [vmem:[%s8229_s2 + $0x1f0] ss:$8 sps:$4 sm:$0xff]  }
 0x3c1   :  { %1888 = vmatprep.subr.bf16.mxu0 %v6026_v34  ;;  %8930 = vst [vmem:[#allocation67_spill] sm:$0xff] %v6044_v38 }
 0x3c2   :  { %1876 = vmatpush1.bf16.msra.mxu1 %v6032_v16 }
 0x3c3   :  { %1877 = vmatprep.subr.bf16.mxu1 %v6038_v29 }
 0x3c6   :  { %1878 = vmatpush1.bf16.msra.mxu1 %v6044_v38 }
 0x3c7   :  { %1935 = vmatprep.subr.bf16.mxu1 %v5030_v18  ;;  %v6059_v18 = vld [vmem:[%s8230_s3] ss:$8 sps:$4 sm:$0xff]  }
 0x3c8   :  { %8931 = vst [vmem:[#allocation68_spill] sm:$0xff] %v6059_v18 }
 0x3dc   :  { %v1569_v34 = vpop.f32.mrb[16].mxu1 }
 0x3dd   :  { %v1571_v14 = vpop.f32.mrb[17].mxu1 }
 0x3de   :  { %v1578_v39 = vcombine.low %v1569_v34, %v1571_v14  ;;  %v1573_v16 = vpop.f32.mrb[18].mxu1  ;;  %v6089_v14 = vld [vmem:[%s8230_s3 + $0x34] ss:$8 sps:$4 sm:$0xff]   ;;  %v6131_v34 = vld [vmem:[%s8230_s3 + $0x60] ss:$8 sps:$4 sm:$0xff]  }
 0x3df   :  { %v1574_v23 = vpop.f32.mrb[19].mxu1  ;;  %8936 = vst [vmem:[#allocation79_spill] sm:$0xff] %v6089_v14  ;;  %v6119_v16 = vld [vmem:[%s8230_s3 + $0x50] ss:$8 sps:$4 sm:$0xff]   ;;  %8943 = vst [vmem:[#allocation105_spill] sm:$0xff] %v6131_v34 }
 0x3e0   :  { %v1585_v29 = vrot.slane %v1578_v39, %v4784_v6  ;;  %v6101_v39 = vld [vmem:[%s8230_s3 + $0x44] ss:$8 sps:$4 sm:$0xff]   ;;  %v6113_v23 = vld [vmem:[%s8230_s3 + $0x54] ss:$8 sps:$4 sm:$0xff]   ;;  %8941 = vst [vmem:[#allocation103_spill] sm:$0xff] %v6119_v16 }
 0x3e1   :  { %8938 = vst [vmem:[#allocation82_spill] sm:$0xff] %v6101_v39  ;;  %8940 = vst [vmem:[#allocation102_spill] sm:$0xff] %v6113_v23 }
 0x3e2   :  { %v1587_v26 = vadd.f32 %v3522_v36, %v1585_v29  ;;  %v6065_v36 = vld [vmem:[%s8230_s3 + $0x14] ss:$8 sps:$4 sm:$0xff]   ;;  %v6125_v29 = vld [vmem:[%s8230_s3 + $0x64] ss:$8 sps:$4 sm:$0xff]  }
 0x3e3   :  { %8932 = vst [vmem:[#allocation69_spill] sm:$0xff] %v6065_v36  ;;  %8942 = vst [vmem:[#allocation104_spill] sm:$0xff] %v6125_v29 }
 0x3e4   :  { %3847 = vtanh.f32 %v1587_v26  ;;  %v6107_v26 = vld [vmem:[%s8230_s3 + $0x40] ss:$8 sps:$4 sm:$0xff]  }
 0x3e5   :  { %8939 = vst [vmem:[#allocation84_spill] sm:$0xff] %v6107_v26 }
 0x3ee   :  { %v3848_v58 = vpop.eup %3847 }
 0x3ef   :  { %v1596_v22 = vrot.slane %v3848_v58, %v4784_v6  ;;  %v6077_v58 = vld [vmem:[%s8230_s3 + $0x24] ss:$8 sps:$4 sm:$0xff]  }
 0x3f0   :  { %8934 = vst [vmem:[#allocation76_spill] sm:$0xff] %v6077_v58 }
 0x3f1   :  { %v1597_v53 = vcombine.high %v1596_v22, %v1596_v22  ;;  %v6053_v20 = vpack.c.bf16 %v1596_v22, %v1596_v22  ;;  %v6083_v22 = vld [vmem:[%s8230_s3 + $0x20] ss:$8 sps:$4 sm:$0xff]  }
 0x3f2   :  { %8935 = vst [vmem:[#allocation77_spill] sm:$0xff] %v6083_v22 }
 0x3f3   :  { %v1601_v38 = vpack.c.bf16 %v1597_v53, %v1597_v53  ;;  %v6071_v53 = vld [vmem:[%s8230_s3 + $0x10] ss:$8 sps:$4 sm:$0xff]  }
 0x3f4   :  { %8933 = vst [vmem:[#allocation75_spill] sm:$0xff] %v6071_v53 }
 0x3f5   :  { %1812 = vmatprep.mubr.bf16.mxu0 %v1601_v38 }
 0x3f6   :  { %1813 = vmatmul.mubr.bf16.vlgmr.msra.gmra.mrb[28].mxu0 %v6053_v20 }
 0x3f7   :  { %1889 = vmatpush1.bf16.msra.mxu0 %v6059_v18  ;;  %1920 = vmatprep.mubr.bf16.mxu0 %v1601_v38  ;;  %v6095_v38 = vld [vmem:[%s8230_s3 + $0x30] ss:$8 sps:$4 sm:$0xff]  }
 0x3f8   :  { %1890 = vmatprep.subr.bf16.mxu0 %v6065_v36  ;;  %8937 = vst [vmem:[#allocation80_spill] sm:$0xff] %v6095_v38  ;;  %v6180_v36 = vld [vmem:[%s8230_s3 + $0xa0] ss:$8 sps:$4 sm:$0xff]  }
 0x3fb   :  { %1891 = vmatpush1.bf16.msra.mxu0 %v6071_v53 }
 0x3fc   :  { %1892 = vmatprep.subr.bf16.mxu0 %v6077_v58 }
 0x3ff   :  { %1893 = vmatpush1.bf16.msra.mxu0 %v6083_v22 }
 0x400   :  { %1894 = vmatprep.subr.bf16.mxu0 %v6089_v14 }
 0x403   :  { %1895 = vmatpush1.bf16.msra.mxu0 %v6095_v38 }
 0x404   :  { %1896 = vmatprep.subr.bf16.mxu0 %v6101_v39 }
 0x407   :  { %1897 = vmatpush1.bf16.msra.mxu0 %v6107_v26 }
 0x408   :  { %1898 = vmatprep.subr.bf16.mxu0 %v6113_v23  ;;  %v6137_v23 = vld [vmem:[%s8230_s3 + $0x74] ss:$8 sps:$4 sm:$0xff]  }
 0x409   :  { %8944 = vst [vmem:[#allocation106_spill] sm:$0xff] %v6137_v23 }
 0x40b   :  { %1899 = vmatpush1.bf16.msra.mxu0 %v6119_v16  ;;  %v6143_v16 = vld [vmem:[%s8230_s3 + $0x70] ss:$8 sps:$4 sm:$0xff]  }
 0x40c   :  { %1900 = vmatprep.subr.bf16.mxu0 %v6125_v29  ;;  %8945 = vst [vmem:[#allocation107_spill] sm:$0xff] %v6143_v16  ;;  %v6149_v29 = vld [vmem:[%s8230_s3 + $0x84] ss:$8 sps:$4 sm:$0xff]  }
 0x40d   :  { %8946 = vst [vmem:[#allocation108_spill] sm:$0xff] %v6149_v29 }
 0x40f   :  { %1901 = vmatpush1.bf16.msra.mxu0 %v6131_v34 }
 0x410   :  { %1902 = vmatprep.subr.bf16.mxu0 %v6137_v23  ;;  %v6155_v23 = vld [vmem:[%s8230_s3 + $0x80] ss:$8 sps:$4 sm:$0xff]  }
 0x411   :  { %8947 = vst [vmem:[#allocation109_spill] sm:$0xff] %v6155_v23 }
 0x413   :  { %1903 = vmatpush1.bf16.msra.mxu0 %v6143_v16  ;;  %v6161_v16 = vld [vmem:[%s8230_s3 + $0x94] ss:$8 sps:$4 sm:$0xff]  }
 0x414   :  { %1904 = vmatprep.subr.bf16.mxu0 %v6149_v29  ;;  %8948 = vst [vmem:[#allocation110_spill] sm:$0xff] %v6161_v16  ;;  %v6167_v29 = vld [vmem:[%s8230_s3 + $0x90] ss:$8 sps:$4 sm:$0xff]  }
 0x415   :  { %8949 = vst [vmem:[#allocation111_spill] sm:$0xff] %v6167_v29 }
 0x416   :  { %v1636_v34 = vpop.f32.mrb[20].mxu0 }
 0x417   :  { %v1638_v26 = vpop.f32.mrb[21].mxu0  ;;  %1905 = vmatpush1.bf16.msra.mxu0 %v6155_v23 }
 0x418   :  { %v1640_v39 = vpop.f32.mrb[22].mxu0  ;;  %1906 = vmatprep.subr.bf16.mxu0 %v6161_v16 }
 0x419   :  { %v1641_v38 = vpop.f32.mrb[23].mxu0  ;;  %v6173_v39 = vld [vmem:[%s8230_s3 + $0xa4] ss:$8 sps:$4 sm:$0xff]  }
 0x41a   :  { %8950 = vst [vmem:[#allocation112_spill] sm:$0xff] %v6173_v39 }
 0x41b   :  { %1907 = vmatpush1.bf16.msra.mxu0 %v6167_v29 }
 0x41c   :  { %v1677_v14 = vpop.f32.mrb[20].mxu1  ;;  %1908 = vmatprep.subr.bf16.mxu0 %v6173_v39  ;;  %v6187_v39 = vld [vmem:[%s8230_s3 + $0xb4] ss:$8 sps:$4 sm:$0xff]  }
 0x41d   :  { %v1678_v23 = vadd.f32 %v1677_v14, %v1636_v34  ;;  %v1679_v22 = vpop.f32.mrb[21].mxu1 }
 0x41e   :  { %v1680_v58 = vadd.f32 %v1679_v22, %v1638_v26  ;;  %v1681_v16 = vpop.f32.mrb[22].mxu1  ;;  %v6211_v22 = vld [vmem:[%s8230_s3 + $0xd4] ss:$8 sps:$4 sm:$0xff]   ;;  %v6217_v26 = vld [vmem:[%s8230_s3 + $0xd0] ss:$8 sps:$4 sm:$0xff]  }
 0x41f   :  { %v1684_v38 = vadd.f32 %v5062_v37, %v1678_v23  ;;  %v1682_v53 = vpop.f32.mrb[23].mxu1  ;;  %1909 = vmatpush1.bf16.msra.mxu0 %v6180_v36  ;;  %v6193_v37 = vld [vmem:[%s8230_s3 + $0xb0] ss:$8 sps:$4 sm:$0xff]   ;;  %8951 = vst [vmem:[#allocation113_spill] sm:$0xff] %v6217_v26  ;;  %v6223_v16 = vld [vmem:[%s8230_s3 + $0xe4] ss:$8 sps:$4 sm:$0xff]  }
 0x420   :  { %v1685_v29 = vadd.f32 %v1680_v58, %v5067_v55  ;;  %1910 = vmatprep.subr.bf16.mxu0 %v6187_v39  ;;  %v6199_v53 = vld [vmem:[%s8230_s3 + $0xc4] ss:$8 sps:$4 sm:$0xff]   ;;  %v6205_v58 = vld [vmem:[%s8230_s3 + $0xc0] ss:$8 sps:$4 sm:$0xff]  }
 0x421   :  { %3849 = vtanh.f32 %v1684_v38  ;;  %v6231_v38 = vld [vmem:[%s8230_s3 + $0xe0] ss:$8 sps:$4 sm:$0xff]  }
 0x422   :  { %3851 = vtanh.f32 %v1685_v29 }
 0x423   :  { %1911 = vmatpush1.bf16.msra.mxu0 %v6193_v37 }
 0x424   :  { %1912 = vmatprep.subr.bf16.mxu0 %v6199_v53 }
 0x427   :  { %1913 = vmatpush1.bf16.msra.mxu0 %v6205_v58 }
 0x428   :  { %1914 = vmatprep.subr.bf16.mxu0 %v6211_v22 }
 0x42b   :  { %v3850_v14 = vpop.eup %3849  ;;  %1915 = vmatpush1.bf16.msra.mxu0 %v6217_v26  ;;  %v6238_v26 = vld [vmem:[%s8230_s3 + $0xf4] ss:$8 sps:$4 sm:$0xff]  }
 0x42c   :  { %v3852_v23 = vpop.eup %3851  ;;  %1916 = vmatprep.subr.bf16.mxu0 %v6223_v16  ;;  %v6226_v34 = vpack.c.bf16 %v3850_v14, %v3850_v14  ;;  %v6246_v14 = vld [vmem:[%s8230_s3 + $0xf0] ss:$8 sps:$4 sm:$0xff]  }
 0x42d   :  { %v1689_v29 = vpack.c.bf16 %v3852_v23, %v3852_v23  ;;  %8952 = vst [vmem:[#allocation114_spill] sm:$0xff] %v6246_v14 }
 0x42f   :  { %1879 = vmatprep.mubr.bf16.mxu1 %v1689_v29  ;;  %1917 = vmatpush1.bf16.msra.mxu0 %v6231_v38 }
 0x430   :  { %1880 = vmatmul.mubr.bf16.vlgmr.msra.gmra.mrb[28].mxu1 %v6226_v34  ;;  %1918 = vmatprep.subr.bf16.mxu0 %v6238_v26 }
 0x431   :  { %1936 = vmatpush1.bf16.msra.mxu1 %v5090_v56  ;;  %v8953_v56 = vld [vmem:[#allocation52_spill] sm:$0xff] }
 0x432   :  { %1937 = vmatprep.subr.bf16.mxu1 %v5097_v35  ;;  %v8954_v35 = vld [vmem:[#allocation53_spill] sm:$0xff] }
 0x433   :  { %1919 = vmatpush1.bf16.msra.mxu0 %v6246_v14 }
 0x434   :  { %1976 = vmatprep.subr.bf16.mxu0 %v5105_v19  ;;  %v8955_v19 = vld [vmem:[#allocation54_spill] sm:$0xff] }
 0x435   :  { %1938 = vmatpush1.bf16.msra.mxu1 %v8819_v17  ;;  %v8958_v17 = vld [vmem:[#allocation57_spill] sm:$0xff] }
 0x436   :  { %1921 = vmatmul.mubr.bf16.vlgmr.msra.gmra.mrb[32].mxu0 %v6053_v20  ;;  %1939 = vmatprep.subr.bf16.mxu1 %v8820_v0  ;;  %v8956_v20 = vld [vmem:[#allocation55_spill] sm:$0xff]  ;;  %v8959_v0 = vld [vmem:[#allocation58_spill] sm:$0xff] }
 0x437   :  { %1977 = vmatpush1.bf16.msra.mxu0 %v5123_v59  ;;  %2008 = vmatprep.mubr.bf16.mxu0 %v1689_v29  ;;  %v8957_v59 = vld [vmem:[#allocation56_spill] sm:$0xff]  ;;  %v8984_v29 = vld [vmem:[#allocation90_spill] sm:$0xff] }
 0x438   :  { %1978 = vmatprep.subr.bf16.mxu0 %v8821_v1 }
 0x439   :  { %1940 = vmatpush1.bf16.msra.mxu1 %v8822_v2  ;;  %v8960_v2 = vld [vmem:[#allocation59_spill] sm:$0xff] }
 0x43a   :  { %1941 = vmatprep.subr.bf16.mxu1 %v8823_v3 }
 0x43b   :  { %1979 = vmatpush1.bf16.msra.mxu0 %v8824_v4  ;;  %v8961_v4 = vld [vmem:[#allocation60_spill] sm:$0xff] }
 0x43c   :  { %1980 = vmatprep.subr.bf16.mxu0 %v8825_v5 }
 0x43d   :  { %1942 = vmatpush1.bf16.msra.mxu1 %v8826_v7  ;;  %v8962_v7 = vld [vmem:[#allocation61_spill] sm:$0xff] }
 0x43e   :  { %1943 = vmatprep.subr.bf16.mxu1 %v8827_v8 }
 0x43f   :  { %1981 = vmatpush1.bf16.msra.mxu0 %v8828_v9  ;;  %v8963_v9 = vld [vmem:[#allocation62_spill] sm:$0xff] }
 0x440   :  { %1982 = vmatprep.subr.bf16.mxu0 %v8829_v10  ;;  %v8964_v10 = vld [vmem:[#allocation63_spill] sm:$0xff] }
 0x441   :  { %1944 = vmatpush1.bf16.msra.mxu1 %v8830_v11  ;;  %v8965_v11 = vld [vmem:[#allocation64_spill] sm:$0xff] }
 0x442   :  { %1945 = vmatprep.subr.bf16.mxu1 %v8831_v12 }
 0x443   :  { %1983 = vmatpush1.bf16.msra.mxu0 %v8832_v13 }
 0x444   :  { %1984 = vmatprep.subr.bf16.mxu0 %v8833_v15 }
 0x445   :  { %1946 = vmatpush1.bf16.msra.mxu1 %v8834_v40 }
 0x446   :  { %1947 = vmatprep.subr.bf16.mxu1 %v8835_v41 }
 0x447   :  { %1985 = vmatpush1.bf16.msra.mxu0 %v8836_v42 }
 0x448   :  { %1986 = vmatprep.subr.bf16.mxu0 %v8837_v43 }
 0x449   :  { %1948 = vmatpush1.bf16.msra.mxu1 %v8838_v44 }
 0x44a   :  { %1949 = vmatprep.subr.bf16.mxu1 %v8839_v49  ;;  %v8966_v49 = vld [vmem:[#allocation70_spill] sm:$0xff] }
 0x44b   :  { %1987 = vmatpush1.bf16.msra.mxu0 %v8840_v50  ;;  %v8967_v50 = vld [vmem:[#allocation71_spill] sm:$0xff] }
 0x44c   :  { %1988 = vmatprep.subr.bf16.mxu0 %v8841_v52  ;;  %v8968_v52 = vld [vmem:[#allocation72_spill] sm:$0xff] }
 0x44d   :  { %1950 = vmatpush1.bf16.msra.mxu1 %v8842_v47  ;;  %v8969_v47 = vld [vmem:[#allocation73_spill] sm:$0xff] }
 0x44e   :  { %1951 = vmatprep.subr.bf16.mxu1 %v8843_v51  ;;  %v8970_v51 = vld [vmem:[#allocation74_spill] sm:$0xff] }
 0x44f   :  { %1989 = vmatpush1.bf16.msra.mxu0 %v8953_v56  ;;  %v8985_v56 = vld [vmem:[#allocation27_spill] sm:$0xff] }
 0x450   :  { %1990 = vmatprep.subr.bf16.mxu0 %v8954_v35  ;;  %v8987_v35 = vld [vmem:[#allocation91_spill] sm:$0xff] }
 0x451   :  { %1952 = vmatpush1.bf16.msra.mxu1 %v8955_v19  ;;  %v8988_v19 = vld [vmem:[#allocation92_spill] sm:$0xff] }
 0x452   :  { %1953 = vmatprep.subr.bf16.mxu1 %v8956_v20  ;;  %v8989_v20 = vld [vmem:[#allocation29_spill] sm:$0xff] }
 0x453   :  { %1991 = vmatpush1.bf16.msra.mxu0 %v8957_v59  ;;  %v8990_v59 = vld [vmem:[#allocation30_spill] sm:$0xff] }
 0x454   :  { %1992 = vmatprep.subr.bf16.mxu0 %v8958_v17  ;;  %v8991_v17 = vld [vmem:[#allocation93_spill] sm:$0xff] }
 0x455   :  { %1954 = vmatpush1.bf16.msra.mxu1 %v8959_v0  ;;  %v8992_v0 = vld [vmem:[#allocation94_spill] sm:$0xff] }
 0x456   :  { %v1724_v1 = vpop.f32.mrb[24].mxu0  ;;  %1955 = vmatprep.subr.bf16.mxu1 %v8960_v2  ;;  %v8994_v2 = vld [vmem:[#allocation32_spill] sm:$0xff] }
 0x457   :  { %v1726_v3 = vpop.f32.mrb[25].mxu0  ;;  %1993 = vmatpush1.bf16.msra.mxu0 %v8961_v4  ;;  %v8996_v4 = vld [vmem:[#allocation96_spill] sm:$0xff] }
 0x458   :  { %v1728_v5 = vpop.f32.mrb[26].mxu0  ;;  %1994 = vmatprep.subr.bf16.mxu0 %v8962_v7  ;;  %v8998_v7 = vld [vmem:[#allocation34_spill] sm:$0xff] }
 0x459   :  { %v1729_v8 = vpop.f32.mrb[27].mxu0  ;;  %1956 = vmatpush1.bf16.msra.mxu1 %v8963_v9  ;;  %v8997_v5 = vld [vmem:[#allocation33_spill] sm:$0xff]  ;;  %v9000_v9 = vld [vmem:[#allocation98_spill] sm:$0xff] }
 0x45a   :  { %1957 = vmatprep.subr.bf16.mxu1 %v8964_v10  ;;  %v8999_v8 = vld [vmem:[#allocation97_spill] sm:$0xff]  ;;  %v9001_v10 = vld [vmem:[#allocation35_spill] sm:$0xff] }
 0x45b   :  { %1995 = vmatpush1.bf16.msra.mxu0 %v8965_v11  ;;  %v9002_v11 = vld [vmem:[#allocation36_spill] sm:$0xff] }
 0x45c   :  { %v1765_v12 = vpop.f32.mrb[24].mxu1  ;;  %1996 = vmatprep.subr.bf16.mxu0 %v8857_v25  ;;  %v8972_v25 = vld [vmem:[#allocation81_spill] sm:$0xff] }
 0x45d   :  { %v1766_v13 = vadd.f32 %v1765_v12, %v1724_v1  ;;  %v1767_v15 = vpop.f32.mrb[25].mxu1  ;;  %1958 = vmatpush1.bf16.msra.mxu1 %v8858_v32  ;;  %v8993_v1 = vld [vmem:[#allocation31_spill] sm:$0xff] }
 0x45e   :  { %v1768_v40 = vadd.f32 %v1767_v15, %v1726_v3  ;;  %v1769_v41 = vpop.f32.mrb[26].mxu1  ;;  %1959 = vmatprep.subr.bf16.mxu1 %v8859_v21  ;;  %v8995_v3 = vld [vmem:[#allocation95_spill] sm:$0xff]  ;;  %v9005_v15 = vld [vmem:[#allocation37_spill] sm:$0xff] }
 0x45f   :  { %v1772_v42 = vadd.f32 %v5785_v33, %v1766_v13  ;;  %v1770_v43 = vpop.f32.mrb[27].mxu1  ;;  %1997 = vmatpush1.bf16.msra.mxu0 %v8860_v45  ;;  %v8971_v45 = vld [vmem:[#allocation78_spill] sm:$0xff]  ;;  %v9003_v12 = vld [vmem:[#allocation99_spill] sm:$0xff]  ;;  %v9004_v13 = vld [vmem:[#allocation100_spill] sm:$0xff] }
 0x460   :  { %v1773_v44 = vadd.f32 %v1768_v40, %v5791_v28  ;;  %1998 = vmatprep.subr.bf16.mxu0 %v8861_v46  ;;  %v9006_v40 = vld [vmem:[#allocation38_spill] sm:$0xff]  ;;  %v9007_v41 = vld [vmem:[#allocation9_spill] sm:$0xff]  ;;  %v9009_v43 = vld [vmem:[#allocation39_spill] sm:$0xff] }
 0x461   :  { %3853 = vtanh.f32 %v1772_v42  ;;  %1960 = vmatpush1.bf16.msra.mxu1 %v8966_v49  ;;  %v9008_v42 = vld [vmem:[#allocation101_spill] sm:$0xff]  ;;  %v9011_v49 = vld [vmem:[#allocation10_spill] sm:$0xff] }
 0x462   :  { %3855 = vtanh.f32 %v1773_v44  ;;  %1961 = vmatprep.subr.bf16.mxu1 %v8967_v50  ;;  %v9010_v44 = vld [vmem:[#allocation40_spill] sm:$0xff]  ;;  %v9012_v50 = vld [vmem:[#allocation11_spill] sm:$0xff] }
 0x463   :  { %1999 = vmatpush1.bf16.msra.mxu0 %v8968_v52  ;;  %v9013_v52 = vld [vmem:[#allocation41_spill] sm:$0xff] }
 0x464   :  { %2000 = vmatprep.subr.bf16.mxu0 %v8969_v47  ;;  %v9014_v47 = vld [vmem:[#allocation42_spill] sm:$0xff] }
 0x465   :  { %1962 = vmatpush1.bf16.msra.mxu1 %v8970_v51  ;;  %v9015_v51 = vld [vmem:[#allocation12_spill] sm:$0xff] }
 0x466   :  { %1963 = vmatprep.subr.bf16.mxu1 %v8867_v30  ;;  %v8974_v30 = vld [vmem:[#allocation21_spill] sm:$0xff] }
 0x467   :  { %2001 = vmatpush1.bf16.msra.mxu0 %v8868_v62  ;;  %v8976_v62 = vld [vmem:[#allocation86_spill] sm:$0xff] }
 0x468   :  { %2002 = vmatprep.subr.bf16.mxu0 %v8869_v31  ;;  %v8979_v31 = vld [vmem:[#allocation87_spill] sm:$0xff] }
 0x469   :  { %1964 = vmatpush1.bf16.msra.mxu1 %v8971_v45  ;;  %v9016_v45 = vld [vmem:[#allocation13_spill] sm:$0xff] }
 0x46a   :  { %1965 = vmatprep.subr.bf16.mxu1 %v5430_v60  ;;  %v8973_v60 = vld [vmem:[#allocation83_spill] sm:$0xff] }
 0x46b   :  { %v3854_v46 = vpop.eup %3853  ;;  %2003 = vmatpush1.bf16.msra.mxu0 %v8871_v63  ;;  %v8983_v63 = vld [vmem:[#allocation89_spill] sm:$0xff] }
 0x46c   :  { %v3856_v21 = vpop.eup %3855  ;;  %2004 = vmatprep.subr.bf16.mxu0 %v8872_v48  ;;  %v1776_v23 = vpack.c.bf16 %v3854_v46, %v3854_v46  ;;  %v8975_v48 = vld [vmem:[#allocation85_spill] sm:$0xff]  ;;  %v9017_v46 = vld [vmem:[#allocation43_spill] sm:$0xff] }
 0x46d   :  { %1966 = vmatpush1.bf16.msra.mxu1 %v8972_v25  ;;  %v1777_v32 = vpack.c.bf16 %v3856_v21, %v3856_v21  ;;  %v9018_v21 = vld [vmem:[#allocation44_spill] sm:$0xff]  ;;  %v9019_v25 = vld [vmem:[#allocation14_spill] sm:$0xff] }
 0x46e   :  { %2025 = vmatprep.subr.bf16.mxu1 %v8873_v27  ;;  %v8977_v27 = vld [vmem:[#allocation8_spill] sm:$0xff] }
 0x46f   :  { %1967 = vmatprep.mubr.bf16.mxu1 %v1777_v32  ;;  %2005 = vmatpush1.bf16.msra.mxu0 %v5455_v54  ;;  %v8978_v54 = vld [vmem:[#allocation22_spill] sm:$0xff]  ;;  %v9020_v32 = vld [vmem:[#allocation15_spill] sm:$0xff] }
 0x470   :  { %1968 = vmatmul.mubr.bf16.vlgmr.msra.gmra.mrb[32].mxu1 %v1776_v23  ;;  %2006 = vmatprep.subr.bf16.mxu0 %v5461_v57  ;;  %v8980_v57 = vld [vmem:[#allocation88_spill] sm:$0xff]  ;;  %v9021_v23 = vld [vmem:[#allocation45_spill] sm:$0xff] }
 0x471   :  { %2026 = vmatpush1.bf16.msra.mxu1 %v8874_v24  ;;  %v8981_v24 = vld [vmem:[#allocation23_spill] sm:$0xff] }
 0x472   :  { %2027 = vmatprep.subr.bf16.mxu1 %v5488_v61  ;;  %v8982_v61 = vld [vmem:[#allocation24_spill] sm:$0xff] }
 0x473   :  { %2007 = vmatpush1.bf16.msra.mxu0 %v8973_v60  ;;  %v9022_v60 = vld [vmem:[#allocation46_spill] sm:$0xff] }
 0x474   :  { %2092 = vmatprep.subr.bf16.mxu0 %v8974_v30 }
 0x475   :  { %2028 = vmatpush1.bf16.msra.mxu1 %v8975_v48  ;;  %v9023_v48 = vld [vmem:[#allocation16_spill] sm:$0xff] }
 0x476   :  { %2009 = vmatmul.mubr.bf16.vlgmr.msra.gmra.mrb[36].mxu0 %v6226_v34  ;;  %2029 = vmatprep.subr.bf16.mxu1 %v8976_v62  ;;  %v8986_v34 = vld [vmem:[#allocation28_spill] sm:$0xff]  ;;  %v9024_v62 = vld [vmem:[#allocation17_spill] sm:$0xff] }
 0x477   :  { %2093 = vmatpush1.bf16.msra.mxu0 %v8977_v27 }
 0x478   :  { %2094 = vmatprep.subr.bf16.mxu0 %v8978_v54 }
 0x479   :  { %2030 = vmatpush1.bf16.msra.mxu1 %v8979_v31  ;;  %v9025_v31 = vld [vmem:[#allocation47_spill] sm:$0xff] }
 0x47a   :  { %2031 = vmatprep.subr.bf16.mxu1 %v8980_v57  ;;  %v9026_v57 = vld [vmem:[#allocation48_spill] sm:$0xff] }
 0x47b   :  { %2095 = vmatpush1.bf16.msra.mxu0 %v8981_v24 }
 0x47c   :  { %2096 = vmatprep.subr.bf16.mxu0 %v8982_v61 }
 0x47d   :  { %2032 = vmatpush1.bf16.msra.mxu1 %v8983_v63  ;;  %v9027_v63 = vld [vmem:[#allocation18_spill] sm:$0xff] }
 0x47e   :  { %2033 = vmatprep.subr.bf16.mxu1 %v8984_v29  ;;  %v9028_v29 = vld [vmem:[#allocation19_spill] sm:$0xff] }
 0x47f   :  { %2097 = vmatpush1.bf16.msra.mxu0 %v8985_v56 }
 0x480   :  { %2098 = vmatprep.subr.bf16.mxu0 %v8986_v34 }
 0x481   :  { %2034 = vmatpush1.bf16.msra.mxu1 %v8987_v35  ;;  %v9029_v35 = vld [vmem:[#allocation49_spill] sm:$0xff] }
 0x482   :  { %2035 = vmatprep.subr.bf16.mxu1 %v8988_v19  ;;  %v9030_v19 = vld [vmem:[#allocation50_spill] sm:$0xff] }
 0x483   :  { %2099 = vmatpush1.bf16.msra.mxu0 %v8989_v20 }
 0x484   :  { %2100 = vmatprep.subr.bf16.mxu0 %v8990_v59 }
 0x485   :  { %2036 = vmatpush1.bf16.msra.mxu1 %v8991_v17  ;;  %v9031_v17 = vld [vmem:[#allocation20_spill] sm:$0xff] }
 0x486   :  { %2037 = vmatprep.subr.bf16.mxu1 %v8992_v0  ;;  %v9032_v0 = vld [vmem:[#allocation51_spill] sm:$0xff] }
 0x487   :  { %2101 = vmatpush1.bf16.msra.mxu0 %v8993_v1 }
 0x488   :  { %2102 = vmatprep.subr.bf16.mxu0 %v8994_v2 }
 0x489   :  { %2038 = vmatpush1.bf16.msra.mxu1 %v8995_v3  ;;  %v9033_v3 = vld [vmem:[#allocation65_spill] sm:$0xff] }
 0x48a   :  { %2039 = vmatprep.subr.bf16.mxu1 %v8996_v4  ;;  %v9034_v4 = vld [vmem:[#allocation66_spill] sm:$0xff] }
 0x48b   :  { %2103 = vmatpush1.bf16.msra.mxu0 %v8997_v5 }
 0x48c   :  { %2104 = vmatprep.subr.bf16.mxu0 %v8998_v7 }
 0x48d   :  { %2040 = vmatpush1.bf16.msra.mxu1 %v8999_v8  ;;  %v9035_v8 = vld [vmem:[#allocation67_spill] sm:$0xff] }
 0x48e   :  { %2041 = vmatprep.subr.bf16.mxu1 %v9000_v9  ;;  %v6382_v9 = vld [vmem:[%s8229_s2 + $0x204] ss:$8 sps:$4 sm:$0xff]  }
 0x48f   :  { %2105 = vmatpush1.bf16.msra.mxu0 %v9001_v10  ;;  %9036 = vst [vmem:[#allocation52_spill] sm:$0xff] %v6382_v9 }
 0x490   :  { %2106 = vmatprep.subr.bf16.mxu0 %v9002_v11 }
 0x491   :  { %2042 = vmatpush1.bf16.msra.mxu1 %v9003_v12 }
 0x492   :  { %2043 = vmatprep.subr.bf16.mxu1 %v9004_v13 }
 0x493   :  { %2107 = vmatpush1.bf16.msra.mxu0 %v9005_v15 }
 0x494   :  { %2108 = vmatprep.subr.bf16.mxu0 %v9006_v40 }
 0x495   :  { %2044 = vmatpush1.bf16.msra.mxu1 %v9007_v41 }
 0x496   :  { %2045 = vmatprep.subr.bf16.mxu1 %v9008_v42 }
 0x497   :  { %2109 = vmatpush1.bf16.msra.mxu0 %v9009_v43 }
 0x498   :  { %2110 = vmatprep.subr.bf16.mxu0 %v9010_v44 }
 0x499   :  { %2046 = vmatpush1.bf16.msra.mxu1 %v9011_v49  ;;  %v3523_v49 = vld [vmem:[%s8227_s0 + $0x10] sm:$0xf] }
 0x49a   :  { %2047 = vmatprep.subr.bf16.mxu1 %v9012_v50 }
 0x49b   :  { %2111 = vmatpush1.bf16.msra.mxu0 %v9013_v52 }
 0x49c   :  { %2112 = vmatprep.subr.bf16.mxu0 %v9014_v47 }
 0x49d   :  { %2048 = vmatpush1.bf16.msra.mxu1 %v9015_v51 }
 0x49e   :  { %2049 = vmatprep.subr.bf16.mxu1 %v9016_v45 }
 0x49f   :  { %2113 = vmatpush1.bf16.msra.mxu0 %v9017_v46 }
 0x4a0   :  { %2114 = vmatprep.subr.bf16.mxu0 %v9018_v21 }
 0x4a1   :  { %2050 = vmatpush1.bf16.msra.mxu1 %v9019_v25 }
 0x4a2   :  { %2051 = vmatprep.subr.bf16.mxu1 %v9020_v32 }
 0x4a3   :  { %2115 = vmatpush1.bf16.msra.mxu0 %v9021_v23 }
 0x4a4   :  { %2116 = vmatprep.subr.bf16.mxu0 %v9022_v60 }
 0x4a5   :  { %2052 = vmatpush1.bf16.msra.mxu1 %v9023_v48 }
 0x4a6   :  { %2053 = vmatprep.subr.bf16.mxu1 %v9024_v62 }
 0x4a7   :  { %2117 = vmatpush1.bf16.msra.mxu0 %v9025_v31 }
 0x4a8   :  { %2118 = vmatprep.subr.bf16.mxu0 %v9026_v57 }
 0x4a9   :  { %2054 = vmatpush1.bf16.msra.mxu1 %v9027_v63 }
 0x4aa   :  { %2055 = vmatprep.subr.bf16.mxu1 %v9028_v29  ;;  %v9037_v29 = vld [vmem:[#allocation69_spill] sm:$0xff] }
 0x4ab   :  { %2119 = vmatpush1.bf16.msra.mxu0 %v9029_v35 }
 0x4ac   :  { %2120 = vmatprep.subr.bf16.mxu0 %v9030_v19 }
 0x4ad   :  { %2056 = vmatpush1.bf16.msra.mxu1 %v9031_v17  ;;  %v9038_v17 = vld [vmem:[#allocation75_spill] sm:$0xff] }
 0x4ae   :  { %2133 = vmatprep.subr.bf16.mxu1 %v9032_v0 }
 0x4af   :  { %2121 = vmatpush1.bf16.msra.mxu0 %v9033_v3 }
 0x4b0   :  { %2122 = vmatprep.subr.bf16.mxu0 %v9034_v4 }
 0x4b3   :  { %2123 = vmatpush1.bf16.msra.mxu0 %v9035_v8 }
 0x4b4   :  { %2180 = vmatprep.subr.bf16.mxu0 %v6382_v9 }
 0x4c9   :  { %v1814_v12 = vpop.f32.mrb[28].mxu0 }
 0x4ca   :  { %v1816_v13 = vpop.f32.mrb[29].mxu0 }
 0x4cb   :  { %v1823_v41 = vcombine.low %v1814_v12, %v1816_v13  ;;  %v1818_v42 = vpop.f32.mrb[30].mxu0  ;;  %v9039_v12 = vld [vmem:[#allocation76_spill] sm:$0xff]  ;;  %v9040_v13 = vld [vmem:[#allocation77_spill] sm:$0xff] }
 0x4cc   :  { %v1819_v50 = vpop.f32.mrb[31].mxu0  ;;  %v9042_v42 = vld [vmem:[#allocation80_spill] sm:$0xff] }
 0x4cd   :  { %v1830_v51 = vrot.slane %v1823_v41, %v4784_v6  ;;  %v9041_v41 = vld [vmem:[#allocation79_spill] sm:$0xff]  ;;  %v9044_v50 = vld [vmem:[#allocation84_spill] sm:$0xff] }
 0x4cf   :  { %v1832_v45 = vadd.f32 %v3523_v49, %v1830_v51  ;;  %v9043_v49 = vld [vmem:[#allocation82_spill] sm:$0xff] }
 0x4d0   :  { %v9045_v51 = vld [vmem:[#allocation102_spill] sm:$0xff] }
 0x4d1   :  { %3857 = vtanh.f32 %v1832_v45  ;;  %v9046_v45 = vld [vmem:[#allocation103_spill] sm:$0xff] }
 0x4db   :  { %v3858_v25 = vpop.eup %3857 }
 0x4dc   :  { %v1841_v32 = vrot.slane %v3858_v25, %v4784_v6  ;;  %v9047_v25 = vld [vmem:[#allocation104_spill] sm:$0xff] }
 0x4de   :  { %v1842_v48 = vcombine.high %v1841_v32, %v1841_v32  ;;  %v6390_v63 = vpack.c.bf16 %v1841_v32, %v1841_v32  ;;  %v9048_v32 = vld [vmem:[#allocation105_spill] sm:$0xff] }
 0x4e0   :  { %v1846_v62 = vpack.c.bf16 %v1842_v48, %v1842_v48  ;;  %v9049_v48 = vld [vmem:[#allocation106_spill] sm:$0xff] }
 0x4e2   :  { %2057 = vmatprep.mubr.bf16.mxu1 %v1846_v62 }
 0x4e3   :  { %2058 = vmatmul.mubr.bf16.vlgmr.msra.gmra.mrb[36].mxu1 %v6390_v63 }
 0x4e4   :  { %2134 = vmatpush1.bf16.msra.mxu1 %v6059_v18  ;;  %2165 = vmatprep.mubr.bf16.mxu1 %v1846_v62  ;;  %v9050_v62 = vld [vmem:[#allocation107_spill] sm:$0xff] }
 0x4e5   :  { %2135 = vmatprep.subr.bf16.mxu1 %v9037_v29 }
 0x4e8   :  { %2136 = vmatpush1.bf16.msra.mxu1 %v9038_v17  ;;  %v9054_v17 = vld [vmem:[#allocation111_spill] sm:$0xff] }
 0x4e9   :  { %2137 = vmatprep.subr.bf16.mxu1 %v9039_v12  ;;  %v9052_v12 = vld [vmem:[#allocation109_spill] sm:$0xff] }
 0x4ec   :  { %2138 = vmatpush1.bf16.msra.mxu1 %v9040_v13  ;;  %v9051_v13 = vld [vmem:[#allocation108_spill] sm:$0xff] }
 0x4ed   :  { %2139 = vmatprep.subr.bf16.mxu1 %v9041_v41 }
 0x4f0   :  { %2140 = vmatpush1.bf16.msra.mxu1 %v9042_v42 }
 0x4f1   :  { %2141 = vmatprep.subr.bf16.mxu1 %v9043_v49 }
 0x4f4   :  { %2142 = vmatpush1.bf16.msra.mxu1 %v9044_v50  ;;  %v9053_v50 = vld [vmem:[#allocation110_spill] sm:$0xff] }
 0x4f5   :  { %2143 = vmatprep.subr.bf16.mxu1 %v9045_v51 }
 0x4f8   :  { %2144 = vmatpush1.bf16.msra.mxu1 %v9046_v45 }
 0x4f9   :  { %2145 = vmatprep.subr.bf16.mxu1 %v9047_v25  ;;  %v9055_v25 = vld [vmem:[#allocation112_spill] sm:$0xff] }
 0x4fc   :  { %2146 = vmatpush1.bf16.msra.mxu1 %v9048_v32 }
 0x4fd   :  { %2147 = vmatprep.subr.bf16.mxu1 %v9049_v48 }
 0x500   :  { %2148 = vmatpush1.bf16.msra.mxu1 %v9050_v62 }
 0x501   :  { %2149 = vmatprep.subr.bf16.mxu1 %v9051_v13  ;;  %v6416_v13 = vld.sshfl [vmem:[%s8231_s4] sm:$0x33 pattern:$0x76325410] }
 0x503   :  { %v1881_v41 = vpop.f32.mrb[28].mxu1 }
 0x504   :  { %v1883_v42 = vpop.f32.mrb[29].mxu1  ;;  %2150 = vmatpush1.bf16.msra.mxu1 %v9052_v12 }
 0x505   :  { %v1885_v49 = vpop.f32.mrb[30].mxu1  ;;  %2151 = vmatprep.subr.bf16.mxu1 %v9053_v50 }
 0x506   :  { %v1886_v51 = vpop.f32.mrb[31].mxu1 }
 0x508   :  { %2152 = vmatpush1.bf16.msra.mxu1 %v9054_v17 }
 0x509   :  { %v1922_v45 = vpop.f32.mrb[32].mxu0  ;;  %2153 = vmatprep.subr.bf16.mxu1 %v9055_v25 }
 0x50a   :  { %v1923_v32 = vadd.f32 %v1922_v45, %v1881_v41  ;;  %v1924_v29 = vpop.f32.mrb[33].mxu0 }
 0x50b   :  { %v1925_v48 = vadd.f32 %v1924_v29, %v1883_v42  ;;  %v1926_v18 = vpop.f32.mrb[34].mxu0  ;;  %v9056_v29 = vld [vmem:[#allocation113_spill] sm:$0xff] }
 0x50c   :  { %v1929_v12 = vadd.f32 %v6416_v13, %v1923_v32  ;;  %v1927_v49 = vpop.f32.mrb[35].mxu0  ;;  %2154 = vmatpush1.bf16.msra.mxu1 %v6180_v36  ;;  %v6442_v32 = vld [vmem:[%s8229_s2 + $0x214] ss:$8 sps:$4 sm:$0xff]  }
 0x50d   :  { %v1930_v51 = vadd.f32 %v1925_v48, %v5067_v55  ;;  %2155 = vmatprep.subr.bf16.mxu1 %v6187_v39  ;;  %9058 = vst [vmem:[#allocation54_spill] sm:$0xff] %v6442_v32  ;;  %v6449_v48 = vld [vmem:[%s8230_s3 + $0x104] ss:$8 sps:$4 sm:$0xff]   ;;  %v6455_v49 = vld [vmem:[%s8229_s2 + $0x210] ss:$8 sps:$4 sm:$0xff]  }
 0x50e   :  { %3859 = vtanh.f32 %v1929_v12  ;;  %v6436_v12 = vld [vmem:[%s8229_s2 + $0x200] ss:$8 sps:$4 sm:$0xff]   ;;  %9059 = vst [vmem:[#allocation55_spill] sm:$0xff] %v6449_v48  ;;  %9060 = vst [vmem:[#allocation56_spill] sm:$0xff] %v6455_v49 }
 0x50f   :  { %3861 = vtanh.f32 %v1930_v51  ;;  %9057 = vst [vmem:[#allocation53_spill] sm:$0xff] %v6436_v12  ;;  %v6462_v51 = vld [vmem:[%s8229_s2 + $0x224] ss:$8 sps:$4 sm:$0xff]  }
 0x510   :  { %2156 = vmatpush1.bf16.msra.mxu1 %v6193_v37  ;;  %9061 = vst [vmem:[#allocation57_spill] sm:$0xff] %v6462_v51 }
 0x511   :  { %2157 = vmatprep.subr.bf16.mxu1 %v6199_v53 }
 0x514   :  { %2158 = vmatpush1.bf16.msra.mxu1 %v6205_v58 }
 0x515   :  { %2159 = vmatprep.subr.bf16.mxu1 %v6211_v22 }
 0x518   :  { %v3860_v18 = vpop.eup %3859  ;;  %2160 = vmatpush1.bf16.msra.mxu1 %v9056_v29 }
 0x519   :  { %v3862_v41 = vpop.eup %3861  ;;  %2161 = vmatprep.subr.bf16.mxu1 %v6223_v16  ;;  %v6428_v45 = vpack.c.bf16 %v3860_v18, %v3860_v18  ;;  %v6468_v18 = vld [vmem:[%s8230_s3 + $0x100] ss:$8 sps:$4 sm:$0xff]  }
 0x51a   :  { %v1934_v42 = vpack.c.bf16 %v3862_v41, %v3862_v41  ;;  %9062 = vst [vmem:[#allocation58_spill] sm:$0xff] %v6468_v18  ;;  %v6474_v41 = vld [vmem:[%s8230_s3 + $0x114] ss:$8 sps:$4 sm:$0xff]  }
 0x51b   :  { %9063 = vst [vmem:[#allocation59_spill] sm:$0xff] %v6474_v41 }
 0x51c   :  { %2124 = vmatprep.mubr.bf16.mxu0 %v1934_v42  ;;  %2162 = vmatpush1.bf16.msra.mxu1 %v6231_v38 }
 0x51d   :  { %2125 = vmatmul.mubr.bf16.vlgmr.msra.gmra.mrb[40].mxu0 %v6428_v45  ;;  %2163 = vmatprep.subr.bf16.mxu1 %v6238_v26 }
 0x51e   :  { %2181 = vmatpush1.bf16.msra.mxu0 %v6436_v12 }
 0x51f   :  { %2182 = vmatprep.subr.bf16.mxu0 %v6442_v32 }
 0x520   :  { %2164 = vmatpush1.bf16.msra.mxu1 %v6246_v14 }
 0x521   :  { %2221 = vmatprep.subr.bf16.mxu1 %v6449_v48 }
 0x522   :  { %2183 = vmatpush1.bf16.msra.mxu0 %v6455_v49 }
 0x523   :  { %2166 = vmatmul.mubr.bf16.vlgmr.msra.gmra.mrb[40].mxu1 %v6390_v63  ;;  %2184 = vmatprep.subr.bf16.mxu0 %v6462_v51  ;;  %v6480_v63 = vld [vmem:[%s8229_s2 + $0x220] ss:$8 sps:$4 sm:$0xff]   ;;  %v6486_v51 = vld [vmem:[%s8229_s2 + $0x234] ss:$8 sps:$4 sm:$0xff]  }
 0x524   :  { %2222 = vmatpush1.bf16.msra.mxu1 %v6468_v18  ;;  %2253 = vmatprep.mubr.bf16.mxu1 %v1934_v42  ;;  %9064 = vst [vmem:[#allocation60_spill] sm:$0xff] %v6480_v63  ;;  %9065 = vst [vmem:[#allocation61_spill] sm:$0xff] %v6486_v51  ;;  %v6492_v42 = vld [vmem:[%s8230_s3 + $0x110] ss:$8 sps:$4 sm:$0xff]   ;;  %v6654_v18 = vld [vmem:[%s8229_s2 + $0x2a4] ss:$8 sps:$4 sm:$0xff]  }
 0x525   :  { %2223 = vmatprep.subr.bf16.mxu1 %v6474_v41  ;;  %9066 = vst [vmem:[#allocation62_spill] sm:$0xff] %v6492_v42  ;;  %v6498_v41 = vld [vmem:[%s8230_s3 + $0x124] ss:$8 sps:$4 sm:$0xff]   ;;  %9093 = vst [vmem:[#allocation30_spill] sm:$0xff] %v6654_v18 }
 0x526   :  { %2185 = vmatpush1.bf16.msra.mxu0 %v6480_v63  ;;  %9067 = vst [vmem:[#allocation63_spill] sm:$0xff] %v6498_v41  ;;  %v6504_v63 = vld [vmem:[%s8229_s2 + $0x230] ss:$8 sps:$4 sm:$0xff]  }
 0x527   :  { %2186 = vmatprep.subr.bf16.mxu0 %v6486_v51  ;;  %9068 = vst [vmem:[#allocation64_spill] sm:$0xff] %v6504_v63  ;;  %v6510_v51 = vld [vmem:[%s8229_s2 + $0x244] ss:$8 sps:$4 sm:$0xff]  }
 0x528   :  { %2224 = vmatpush1.bf16.msra.mxu1 %v6492_v42  ;;  %9069 = vst [vmem:[#allocation70_spill] sm:$0xff] %v6510_v51  ;;  %v6516_v42 = vld [vmem:[%s8230_s3 + $0x120] ss:$8 sps:$4 sm:$0xff]  }
 0x529   :  { %2225 = vmatprep.subr.bf16.mxu1 %v6498_v41  ;;  %9070 = vst [vmem:[#allocation71_spill] sm:$0xff] %v6516_v42  ;;  %v6522_v41 = vld [vmem:[%s8230_s3 + $0x134] ss:$8 sps:$4 sm:$0xff]  }
 0x52a   :  { %2187 = vmatpush1.bf16.msra.mxu0 %v6504_v63  ;;  %9071 = vst [vmem:[#allocation72_spill] sm:$0xff] %v6522_v41  ;;  %v6528_v63 = vld [vmem:[%s8229_s2 + $0x240] ss:$8 sps:$4 sm:$0xff]  }
 0x52b   :  { %2188 = vmatprep.subr.bf16.mxu0 %v6510_v51  ;;  %9072 = vst [vmem:[#allocation73_spill] sm:$0xff] %v6528_v63  ;;  %v6534_v51 = vld [vmem:[%s8229_s2 + $0x254] ss:$8 sps:$4 sm:$0xff]  }
 0x52c   :  { %2226 = vmatpush1.bf16.msra.mxu1 %v6516_v42  ;;  %9073 = vst [vmem:[#allocation74_spill] sm:$0xff] %v6534_v51  ;;  %v6540_v42 = vld [vmem:[%s8230_s3 + $0x130] ss:$8 sps:$4 sm:$0xff]  }
 0x52d   :  { %2227 = vmatprep.subr.bf16.mxu1 %v6522_v41  ;;  %9074 = vst [vmem:[#allocation78_spill] sm:$0xff] %v6540_v42  ;;  %v6546_v41 = vld [vmem:[%s8230_s3 + $0x144] ss:$8 sps:$4 sm:$0xff]  }
 0x52e   :  { %2189 = vmatpush1.bf16.msra.mxu0 %v6528_v63  ;;  %9075 = vst [vmem:[#allocation81_spill] sm:$0xff] %v6546_v41  ;;  %v6552_v63 = vld [vmem:[%s8229_s2 + $0x250] ss:$8 sps:$4 sm:$0xff]  }
 0x52f   :  { %2190 = vmatprep.subr.bf16.mxu0 %v6534_v51  ;;  %9076 = vst [vmem:[#allocation83_spill] sm:$0xff] %v6552_v63  ;;  %v6558_v51 = vld [vmem:[%s8229_s2 + $0x264] ss:$8 sps:$4 sm:$0xff]  }
 0x530   :  { %2228 = vmatpush1.bf16.msra.mxu1 %v6540_v42  ;;  %9077 = vst [vmem:[#allocation21_spill] sm:$0xff] %v6558_v51  ;;  %v6564_v42 = vld [vmem:[%s8230_s3 + $0x140] ss:$8 sps:$4 sm:$0xff]  }
 0x531   :  { %2229 = vmatprep.subr.bf16.mxu1 %v6546_v41  ;;  %9078 = vst [vmem:[#allocation85_spill] sm:$0xff] %v6564_v42  ;;  %v6570_v41 = vld [vmem:[%s8230_s3 + $0x154] ss:$8 sps:$4 sm:$0xff]  }
 0x532   :  { %2191 = vmatpush1.bf16.msra.mxu0 %v6552_v63  ;;  %9079 = vst [vmem:[#allocation86_spill] sm:$0xff] %v6570_v41  ;;  %v6576_v63 = vld [vmem:[%s8229_s2 + $0x260] ss:$8 sps:$4 sm:$0xff]  }
 0x533   :  { %2192 = vmatprep.subr.bf16.mxu0 %v6558_v51  ;;  %9080 = vst [vmem:[#allocation8_spill] sm:$0xff] %v6576_v63  ;;  %v6582_v51 = vld [vmem:[%s8229_s2 + $0x274] ss:$8 sps:$4 sm:$0xff]  }
 0x534   :  { %2230 = vmatpush1.bf16.msra.mxu1 %v6564_v42  ;;  %9081 = vst [vmem:[#allocation22_spill] sm:$0xff] %v6582_v51  ;;  %v6588_v42 = vld [vmem:[%s8230_s3 + $0x150] ss:$8 sps:$4 sm:$0xff]  }
 0x535   :  { %2231 = vmatprep.subr.bf16.mxu1 %v6570_v41  ;;  %9082 = vst [vmem:[#allocation87_spill] sm:$0xff] %v6588_v42  ;;  %v6594_v41 = vld [vmem:[%s8230_s3 + $0x164] ss:$8 sps:$4 sm:$0xff]  }
 0x536   :  { %2193 = vmatpush1.bf16.msra.mxu0 %v6576_v63  ;;  %9083 = vst [vmem:[#allocation88_spill] sm:$0xff] %v6594_v41  ;;  %v6600_v63 = vld [vmem:[%s8229_s2 + $0x270] ss:$8 sps:$4 sm:$0xff]  }
 0x537   :  { %2194 = vmatprep.subr.bf16.mxu0 %v6582_v51  ;;  %9084 = vst [vmem:[#allocation23_spill] sm:$0xff] %v6600_v63  ;;  %v6606_v51 = vld [vmem:[%s8229_s2 + $0x284] ss:$8 sps:$4 sm:$0xff]  }
 0x538   :  { %2232 = vmatpush1.bf16.msra.mxu1 %v6588_v42  ;;  %9085 = vst [vmem:[#allocation24_spill] sm:$0xff] %v6606_v51  ;;  %v6612_v42 = vld [vmem:[%s8230_s3 + $0x160] ss:$8 sps:$4 sm:$0xff]  }
 0x539   :  { %2233 = vmatprep.subr.bf16.mxu1 %v6594_v41  ;;  %9086 = vst [vmem:[#allocation89_spill] sm:$0xff] %v6612_v42  ;;  %v6618_v41 = vld [vmem:[%s8230_s3 + $0x174] ss:$8 sps:$4 sm:$0xff]  }
 0x53a   :  { %2195 = vmatpush1.bf16.msra.mxu0 %v6600_v63  ;;  %9087 = vst [vmem:[#allocation90_spill] sm:$0xff] %v6618_v41  ;;  %v6624_v63 = vld [vmem:[%s8229_s2 + $0x280] ss:$8 sps:$4 sm:$0xff]  }
 0x53b   :  { %2196 = vmatprep.subr.bf16.mxu0 %v6606_v51  ;;  %9088 = vst [vmem:[#allocation27_spill] sm:$0xff] %v6624_v63  ;;  %v6630_v51 = vld [vmem:[%s8229_s2 + $0x294] ss:$8 sps:$4 sm:$0xff]  }
 0x53c   :  { %2234 = vmatpush1.bf16.msra.mxu1 %v6612_v42  ;;  %9089 = vst [vmem:[#allocation28_spill] sm:$0xff] %v6630_v51  ;;  %v6636_v42 = vld [vmem:[%s8230_s3 + $0x170] ss:$8 sps:$4 sm:$0xff]  }
 0x53d   :  { %2235 = vmatprep.subr.bf16.mxu1 %v6618_v41  ;;  %9090 = vst [vmem:[#allocation91_spill] sm:$0xff] %v6636_v42  ;;  %v6642_v41 = vld [vmem:[%s8230_s3 + $0x184] ss:$8 sps:$4 sm:$0xff]  }
 0x53e   :  { %2197 = vmatpush1.bf16.msra.mxu0 %v6624_v63  ;;  %9091 = vst [vmem:[#allocation92_spill] sm:$0xff] %v6642_v41  ;;  %v6648_v63 = vld [vmem:[%s8229_s2 + $0x290] ss:$8 sps:$4 sm:$0xff]  }
 0x53f   :  { %2198 = vmatprep.subr.bf16.mxu0 %v6630_v51  ;;  %9092 = vst [vmem:[#allocation29_spill] sm:$0xff] %v6648_v63 }
 0x540   :  { %2236 = vmatpush1.bf16.msra.mxu1 %v6636_v42 }
 0x541   :  { %2237 = vmatprep.subr.bf16.mxu1 %v6642_v41  ;;  %v6660_v41 = vld [vmem:[%s8230_s3 + $0x180] ss:$8 sps:$4 sm:$0xff]  }
 0x542   :  { %2199 = vmatpush1.bf16.msra.mxu0 %v6648_v63  ;;  %9094 = vst [vmem:[#allocation93_spill] sm:$0xff] %v6660_v41  ;;  %v6666_v63 = vld [vmem:[%s8230_s3 + $0x194] ss:$8 sps:$4 sm:$0xff]  }
 0x543   :  { %v1969_v51 = vpop.f32.mrb[32].mxu1  ;;  %2200 = vmatprep.subr.bf16.mxu0 %v6654_v18  ;;  %9095 = vst [vmem:[#allocation94_spill] sm:$0xff] %v6666_v63  ;;  %v6672_v18 = vld [vmem:[%s8229_s2 + $0x2a0] ss:$8 sps:$4 sm:$0xff]  }
 0x544   :  { %v1971_v42 = vpop.f32.mrb[33].mxu1  ;;  %2238 = vmatpush1.bf16.msra.mxu1 %v6660_v41  ;;  %9096 = vst [vmem:[#allocation31_spill] sm:$0xff] %v6672_v18  ;;  %v6678_v41 = vld [vmem:[%s8229_s2 + $0x2b4] ss:$8 sps:$4 sm:$0xff]  }
 0x545   :  { %v1973_v49 = vpop.f32.mrb[34].mxu1  ;;  %2239 = vmatprep.subr.bf16.mxu1 %v6666_v63  ;;  %9097 = vst [vmem:[#allocation32_spill] sm:$0xff] %v6678_v41  ;;  %v6690_v63 = vld [vmem:[%s8230_s3 + $0x1a4] ss:$8 sps:$4 sm:$0xff]  }
 0x546   :  { %v1974_v48 = vpop.f32.mrb[35].mxu1  ;;  %2201 = vmatpush1.bf16.msra.mxu0 %v6672_v18  ;;  %v6684_v49 = vld [vmem:[%s8230_s3 + $0x190] ss:$8 sps:$4 sm:$0xff]   ;;  %9099 = vst [vmem:[#allocation96_spill] sm:$0xff] %v6690_v63 }
 0x547   :  { %2202 = vmatprep.subr.bf16.mxu0 %v6678_v41  ;;  %9098 = vst [vmem:[#allocation95_spill] sm:$0xff] %v6684_v49  ;;  %v6696_v41 = vld [vmem:[%s8229_s2 + $0x2b0] ss:$8 sps:$4 sm:$0xff]  }
 0x548   :  { %2240 = vmatpush1.bf16.msra.mxu1 %v6684_v49  ;;  %v6702_v49 = vld [vmem:[%s8229_s2 + $0x2c4] ss:$8 sps:$4 sm:$0xff]  }
 0x549   :  { %v2010_v48 = vpop.f32.mrb[36].mxu0  ;;  %2241 = vmatprep.subr.bf16.mxu1 %v6690_v63 }
 0x54a   :  { %v2011_v18 = vadd.f32 %v2010_v48, %v1969_v51  ;;  %v2012_v14 = vpop.f32.mrb[37].mxu0  ;;  %2203 = vmatpush1.bf16.msra.mxu0 %v6696_v41  ;;  %v6709_v48 = vld [vmem:[%s8230_s3 + $0x1a0] ss:$8 sps:$4 sm:$0xff]  }
 0x54b   :  { %v2013_v32 = vadd.f32 %v2012_v14, %v1971_v42  ;;  %v2014_v12 = vpop.f32.mrb[38].mxu0  ;;  %2204 = vmatprep.subr.bf16.mxu0 %v6702_v49  ;;  %9100 = vst [vmem:[#allocation33_spill] sm:$0xff] %v6709_v48  ;;  %v6746_v42 = vld [vmem:[%s8229_s2 + $0x2d0] ss:$8 sps:$4 sm:$0xff]  }
 0x54c   :  { %v2017_v63 = vadd.f32 %v5785_v33, %v2011_v18  ;;  %v2015_v51 = vpop.f32.mrb[39].mxu0  ;;  %2242 = vmatpush1.bf16.msra.mxu1 %v6709_v48  ;;  %v6716_v12 = vld [vmem:[%s8230_s3 + $0x1b4] ss:$8 sps:$4 sm:$0xff]   ;;  %v6722_v33 = vld [vmem:[%s8229_s2 + $0x2c0] ss:$8 sps:$4 sm:$0xff]   ;;  %9106 = vst [vmem:[#allocation99_spill] sm:$0xff] %v6746_v42 }
 0x54d   :  { %v2018_v14 = vadd.f32 %v2013_v32, %v5791_v28  ;;  %9101 = vst [vmem:[#allocation34_spill] sm:$0xff] %v6716_v12  ;;  %2243 = vmatprep.subr.bf16.mxu1 %v6716_v12  ;;  %9102 = vst [vmem:[#allocation97_spill] sm:$0xff] %v6722_v33  ;;  %v6728_v32 = vld [vmem:[%s8229_s2 + $0x2d4] ss:$8 sps:$4 sm:$0xff]   ;;  %v6734_v18 = vld [vmem:[%s8230_s3 + $0x1b0] ss:$8 sps:$4 sm:$0xff]  }
 0x54e   :  { %3863 = vtanh.f32 %v2017_v63  ;;  %2205 = vmatpush1.bf16.msra.mxu0 %v6722_v33  ;;  %9103 = vst [vmem:[#allocation98_spill] sm:$0xff] %v6728_v32  ;;  %9104 = vst [vmem:[#allocation35_spill] sm:$0xff] %v6734_v18  ;;  %v6740_v63 = vld [vmem:[%s8230_s3 + $0x1c4] ss:$8 sps:$4 sm:$0xff]  }
 0x54f   :  { %3865 = vtanh.f32 %v2018_v14  ;;  %2206 = vmatprep.subr.bf16.mxu0 %v6728_v32  ;;  %9105 = vst [vmem:[#allocation36_spill] sm:$0xff] %v6740_v63  ;;  %v6752_v51 = vld [vmem:[%s8229_s2 + $0x2e4] ss:$8 sps:$4 sm:$0xff]   ;;  %v6758_v14 = vld [vmem:[%s8230_s3 + $0x1c0] ss:$8 sps:$4 sm:$0xff]  }
 0x550   :  { %2244 = vmatpush1.bf16.msra.mxu1 %v6734_v18  ;;  %9107 = vst [vmem:[#allocation100_spill] sm:$0xff] %v6752_v51  ;;  %9108 = vst [vmem:[#allocation37_spill] sm:$0xff] %v6758_v14  ;;  %v6782_v18 = vld [vmem:[%s8230_s3 + $0x1d0] ss:$8 sps:$4 sm:$0xff]  }
 0x551   :  { %2245 = vmatprep.subr.bf16.mxu1 %v6740_v63  ;;  %v6764_v63 = vld [vmem:[%s8230_s3 + $0x1d4] ss:$8 sps:$4 sm:$0xff]   ;;  %9112 = vst [vmem:[#allocation39_spill] sm:$0xff] %v6782_v18 }
 0x552   :  { %2207 = vmatpush1.bf16.msra.mxu0 %v6746_v42  ;;  %9109 = vst [vmem:[#allocation38_spill] sm:$0xff] %v6764_v63  ;;  %v6770_v42 = vld [vmem:[%s8229_s2 + $0x2e0] ss:$8 sps:$4 sm:$0xff]  }
 0x553   :  { %2208 = vmatprep.subr.bf16.mxu0 %v6752_v51  ;;  %9110 = vst [vmem:[#allocation9_spill] sm:$0xff] %v6770_v42  ;;  %v6776_v51 = vld [vmem:[%s8229_s2 + $0x2f4] ss:$8 sps:$4 sm:$0xff]  }
 0x554   :  { %2246 = vmatpush1.bf16.msra.mxu1 %v6758_v14  ;;  %9111 = vst [vmem:[#allocation101_spill] sm:$0xff] %v6776_v51 }
 0x555   :  { %2247 = vmatprep.subr.bf16.mxu1 %v6764_v63 }
 0x556   :  { %2209 = vmatpush1.bf16.msra.mxu0 %v6770_v42  ;;  %v6788_v42 = vld [vmem:[%s8230_s3 + $0x1e4] ss:$8 sps:$4 sm:$0xff]  }
 0x557   :  { %2210 = vmatprep.subr.bf16.mxu0 %v6776_v51  ;;  %9113 = vst [vmem:[#allocation40_spill] sm:$0xff] %v6788_v42  ;;  %v6794_v51 = vld [vmem:[%s8229_s2 + $0x2f0] ss:$8 sps:$4 sm:$0xff]  }
 0x558   :  { %v3864_v14 = vpop.eup %3863  ;;  %2248 = vmatpush1.bf16.msra.mxu1 %v6782_v18  ;;  %9114 = vst [vmem:[#allocation10_spill] sm:$0xff] %v6794_v51  ;;  %v6800_v18 = vld [vmem:[%s8229_s2 + $0x4] ss:$8 sps:$4 sm:$0xff]  }
 0x559   :  { %v3866_v63 = vpop.eup %3865  ;;  %2249 = vmatprep.subr.bf16.mxu1 %v6788_v42  ;;  %v2021_v33 = vpack.c.bf16 %v3864_v14, %v3864_v14  ;;  %v6806_v42 = vld [vmem:[%s8230_s3 + $0x1e0] ss:$8 sps:$4 sm:$0xff]  }
 0x55a   :  { %2211 = vmatpush1.bf16.msra.mxu0 %v6794_v51  ;;  %v2022_v32 = vpack.c.bf16 %v3866_v63, %v3866_v63  ;;  %v6812_v63 = vld [vmem:[%s8230_s3 + $0x1f4] ss:$8 sps:$4 sm:$0xff]   ;;  %v6818_v14 = vld [vmem:[%s8229_s2] ss:$8 sps:$4 sm:$0xff]  }
 0x55b   :  { %2270 = vmatprep.subr.bf16.mxu0 %v6800_v18  ;;  %9115 = vst [vmem:[#allocation11_spill] sm:$0xff] %v6818_v14 }
 0x55c   :  { %2212 = vmatprep.mubr.bf16.mxu0 %v2022_v32  ;;  %2250 = vmatpush1.bf16.msra.mxu1 %v6806_v42  ;;  %v6824_v32 = vld [vmem:[%s8229_s2 + $0x14] ss:$8 sps:$4 sm:$0xff]  }
 0x55d   :  { %2213 = vmatmul.mubr.bf16.vlgmr.msra.gmra.mrb[44].mxu0 %v2021_v33  ;;  %2251 = vmatprep.subr.bf16.mxu1 %v6812_v63  ;;  %9116 = vst [vmem:[#allocation41_spill] sm:$0xff] %v6824_v32  ;;  %v6830_v33 = vld [vmem:[%s8230_s3 + $0x1f0] ss:$8 sps:$4 sm:$0xff]  }
 0x55e   :  { %2271 = vmatpush1.bf16.msra.mxu0 %v6818_v14  ;;  %v6837_v14 = vld [vmem:[%s8229_s2 + $0x10] ss:$8 sps:$4 sm:$0xff]  }
 0x55f   :  { %2272 = vmatprep.subr.bf16.mxu0 %v6824_v32  ;;  %v6844_v32 = vld [vmem:[%s8229_s2 + $0x24] ss:$8 sps:$4 sm:$0xff]  }
 0x560   :  { %2252 = vmatpush1.bf16.msra.mxu1 %v6830_v33 }
 0x561   :  { %2337 = vmatprep.subr.bf16.mxu1 %v8974_v30  ;;  %v6852_v30 = vld [vmem:[%s8229_s2 + $0x20] ss:$8 sps:$4 sm:$0xff]  }
 0x562   :  { %2273 = vmatpush1.bf16.msra.mxu0 %v6837_v14 }
 0x563   :  { %2254 = vmatmul.mubr.bf16.vlgmr.msra.gmra.mrb[44].mxu1 %v6428_v45  ;;  %2274 = vmatprep.subr.bf16.mxu0 %v6844_v32  ;;  %v6858_v45 = vld [vmem:[%s8229_s2 + $0x34] ss:$8 sps:$4 sm:$0xff]  }
 0x564   :  { %2338 = vmatpush1.bf16.msra.mxu1 %v8977_v27  ;;  %v6866_v27 = vld [vmem:[%s8229_s2 + $0x30] ss:$8 sps:$4 sm:$0xff]  }
 0x565   :  { %2339 = vmatprep.subr.bf16.mxu1 %v8978_v54  ;;  %v6872_v54 = vld [vmem:[%s8229_s2 + $0x44] ss:$8 sps:$4 sm:$0xff]  }
 0x566   :  { %2275 = vmatpush1.bf16.msra.mxu0 %v6852_v30 }
 0x567   :  { %2276 = vmatprep.subr.bf16.mxu0 %v6858_v45 }
 0x568   :  { %2340 = vmatpush1.bf16.msra.mxu1 %v8981_v24  ;;  %v6880_v24 = vld [vmem:[%s8229_s2 + $0x40] ss:$8 sps:$4 sm:$0xff]  }
 0x569   :  { %2341 = vmatprep.subr.bf16.mxu1 %v8982_v61  ;;  %v6886_v61 = vld [vmem:[%s8229_s2 + $0x54] ss:$8 sps:$4 sm:$0xff]  }
 0x56a   :  { %2277 = vmatpush1.bf16.msra.mxu0 %v6866_v27 }
 0x56b   :  { %2278 = vmatprep.subr.bf16.mxu0 %v6872_v54 }
 0x56c   :  { %2342 = vmatpush1.bf16.msra.mxu1 %v8985_v56  ;;  %v6894_v56 = vld [vmem:[%s8229_s2 + $0x50] ss:$8 sps:$4 sm:$0xff]  }
 0x56d   :  { %2343 = vmatprep.subr.bf16.mxu1 %v8986_v34  ;;  %v6900_v34 = vld [vmem:[%s8229_s2 + $0x64] ss:$8 sps:$4 sm:$0xff]  }
 0x56e   :  { %2279 = vmatpush1.bf16.msra.mxu0 %v6880_v24 }
 0x56f   :  { %2280 = vmatprep.subr.bf16.mxu0 %v6886_v61 }
 0x570   :  { %2344 = vmatpush1.bf16.msra.mxu1 %v8989_v20  ;;  %v6908_v20 = vld [vmem:[%s8229_s2 + $0x60] ss:$8 sps:$4 sm:$0xff]  }
 0x571   :  { %2345 = vmatprep.subr.bf16.mxu1 %v8990_v59  ;;  %v6914_v59 = vld [vmem:[%s8229_s2 + $0x74] ss:$8 sps:$4 sm:$0xff]  }
 0x572   :  { %2281 = vmatpush1.bf16.msra.mxu0 %v6894_v56 }
 0x573   :  { %2282 = vmatprep.subr.bf16.mxu0 %v6900_v34 }
 0x574   :  { %2346 = vmatpush1.bf16.msra.mxu1 %v8993_v1  ;;  %v6922_v1 = vld [vmem:[%s8229_s2 + $0x70] ss:$8 sps:$4 sm:$0xff]  }
 0x575   :  { %2347 = vmatprep.subr.bf16.mxu1 %v8994_v2  ;;  %v6928_v2 = vld [vmem:[%s8229_s2 + $0x84] ss:$8 sps:$4 sm:$0xff]  }
 0x576   :  { %2283 = vmatpush1.bf16.msra.mxu0 %v6908_v20 }
 0x577   :  { %2284 = vmatprep.subr.bf16.mxu0 %v6914_v59 }
 0x578   :  { %2348 = vmatpush1.bf16.msra.mxu1 %v8997_v5  ;;  %v6936_v5 = vld [vmem:[%s8229_s2 + $0x80] ss:$8 sps:$4 sm:$0xff]  }
 0x579   :  { %2349 = vmatprep.subr.bf16.mxu1 %v8998_v7  ;;  %v6942_v7 = vld [vmem:[%s8229_s2 + $0x94] ss:$8 sps:$4 sm:$0xff]  }
 0x57a   :  { %2285 = vmatpush1.bf16.msra.mxu0 %v6922_v1 }
 0x57b   :  { %2286 = vmatprep.subr.bf16.mxu0 %v6928_v2 }
 0x57c   :  { %2350 = vmatpush1.bf16.msra.mxu1 %v9001_v10  ;;  %v6950_v10 = vld [vmem:[%s8229_s2 + $0x90] ss:$8 sps:$4 sm:$0xff]  }
 0x57d   :  { %2351 = vmatprep.subr.bf16.mxu1 %v9002_v11  ;;  %v6956_v11 = vld [vmem:[%s8229_s2 + $0xa4] ss:$8 sps:$4 sm:$0xff]  }
 0x57e   :  { %2287 = vmatpush1.bf16.msra.mxu0 %v6936_v5 }
 0x57f   :  { %2288 = vmatprep.subr.bf16.mxu0 %v6942_v7 }
 0x580   :  { %2352 = vmatpush1.bf16.msra.mxu1 %v9005_v15  ;;  %v6964_v15 = vld [vmem:[%s8229_s2 + $0xa0] ss:$8 sps:$4 sm:$0xff]  }
 0x581   :  { %2353 = vmatprep.subr.bf16.mxu1 %v9006_v40  ;;  %v6970_v40 = vld [vmem:[%s8229_s2 + $0xb4] ss:$8 sps:$4 sm:$0xff]  }
 0x582   :  { %2289 = vmatpush1.bf16.msra.mxu0 %v6950_v10 }
 0x583   :  { %2290 = vmatprep.subr.bf16.mxu0 %v6956_v11 }
 0x584   :  { %2354 = vmatpush1.bf16.msra.mxu1 %v9009_v43  ;;  %v6978_v43 = vld [vmem:[%s8229_s2 + $0xb0] ss:$8 sps:$4 sm:$0xff]  }
 0x585   :  { %2355 = vmatprep.subr.bf16.mxu1 %v9010_v44  ;;  %v6984_v44 = vld [vmem:[%s8229_s2 + $0xc4] ss:$8 sps:$4 sm:$0xff]  }
 0x586   :  { %2291 = vmatpush1.bf16.msra.mxu0 %v6964_v15 }
 0x587   :  { %2292 = vmatprep.subr.bf16.mxu0 %v6970_v40 }
 0x588   :  { %2356 = vmatpush1.bf16.msra.mxu1 %v9013_v52  ;;  %v6992_v52 = vld [vmem:[%s8229_s2 + $0xc0] ss:$8 sps:$4 sm:$0xff]  }
 0x589   :  { %2357 = vmatprep.subr.bf16.mxu1 %v9014_v47  ;;  %v6998_v47 = vld [vmem:[%s8229_s2 + $0xd4] ss:$8 sps:$4 sm:$0xff]  }
 0x58a   :  { %2293 = vmatpush1.bf16.msra.mxu0 %v6978_v43  ;;  %9117 = vst [vmem:[#allocation42_spill] sm:$0xff] %v6998_v47 }
 0x58b   :  { %2294 = vmatprep.subr.bf16.mxu0 %v6984_v44 }
 0x58c   :  { %2358 = vmatpush1.bf16.msra.mxu1 %v9017_v46  ;;  %v7006_v46 = vld [vmem:[%s8229_s2 + $0xd0] ss:$8 sps:$4 sm:$0xff]  }
 0x58d   :  { %2359 = vmatprep.subr.bf16.mxu1 %v9018_v21  ;;  %9118 = vst [vmem:[#allocation12_spill] sm:$0xff] %v7006_v46  ;;  %v7012_v21 = vld [vmem:[%s8229_s2 + $0xe4] ss:$8 sps:$4 sm:$0xff]  }
 0x58e   :  { %2295 = vmatpush1.bf16.msra.mxu0 %v6992_v52  ;;  %9119 = vst [vmem:[#allocation13_spill] sm:$0xff] %v7012_v21 }
 0x58f   :  { %2296 = vmatprep.subr.bf16.mxu0 %v6998_v47 }
 0x590   :  { %2360 = vmatpush1.bf16.msra.mxu1 %v9021_v23  ;;  %v7020_v23 = vld [vmem:[%s8229_s2 + $0xe0] ss:$8 sps:$4 sm:$0xff]  }
 0x591   :  { %2361 = vmatprep.subr.bf16.mxu1 %v9022_v60  ;;  %9120 = vst [vmem:[#allocation43_spill] sm:$0xff] %v7020_v23  ;;  %v7026_v60 = vld [vmem:[%s8229_s2 + $0xf4] ss:$8 sps:$4 sm:$0xff]  }
 0x592   :  { %2297 = vmatpush1.bf16.msra.mxu0 %v7006_v46  ;;  %9121 = vst [vmem:[#allocation44_spill] sm:$0xff] %v7026_v60 }
 0x593   :  { %2298 = vmatprep.subr.bf16.mxu0 %v7012_v21 }
 0x594   :  { %2362 = vmatpush1.bf16.msra.mxu1 %v9025_v31  ;;  %v7034_v31 = vld [vmem:[%s8229_s2 + $0xf0] ss:$8 sps:$4 sm:$0xff]  }
 0x595   :  { %2363 = vmatprep.subr.bf16.mxu1 %v9026_v57  ;;  %9122 = vst [vmem:[#allocation14_spill] sm:$0xff] %v7034_v31 }
 0x596   :  { %2299 = vmatpush1.bf16.msra.mxu0 %v7020_v23  ;;  %v3524_v23 = vld [vmem:[%s8227_s0 + $0x14] sm:$0xf] }
 0x597   :  { %2300 = vmatprep.subr.bf16.mxu0 %v7026_v60 }
 0x598   :  { %2364 = vmatpush1.bf16.msra.mxu1 %v9029_v35 }
 0x599   :  { %2365 = vmatprep.subr.bf16.mxu1 %v9030_v19 }
 0x59a   :  { %2301 = vmatpush1.bf16.msra.mxu0 %v7034_v31 }
 0x59b   :  { %2378 = vmatprep.subr.bf16.mxu0 %v9032_v0 }
 0x59c   :  { %2366 = vmatpush1.bf16.msra.mxu1 %v9033_v3 }
 0x59d   :  { %2367 = vmatprep.subr.bf16.mxu1 %v9034_v4 }
 0x5a0   :  { %2368 = vmatpush1.bf16.msra.mxu1 %v9035_v8 }
 0x5a1   :  { %2425 = vmatprep.subr.bf16.mxu1 %v6382_v9  ;;  %v9123_v9 = vld [vmem:[#allocation68_spill] sm:$0xff] }
 0x5b6   :  { %v2059_v57 = vpop.f32.mrb[36].mxu1 }
 0x5b7   :  { %v2061_v35 = vpop.f32.mrb[37].mxu1 }
 0x5b8   :  { %v2068_v19 = vcombine.low %v2059_v57, %v2061_v35  ;;  %v2063_v60 = vpop.f32.mrb[38].mxu1  ;;  %v9125_v57 = vld [vmem:[#allocation75_spill] sm:$0xff]  ;;  %v9127_v35 = vld [vmem:[#allocation77_spill] sm:$0xff] }
 0x5b9   :  { %v2064_v21 = vpop.f32.mrb[39].mxu1  ;;  %v9124_v60 = vld [vmem:[#allocation69_spill] sm:$0xff] }
 0x5ba   :  { %v2075_v31 = vrot.slane %v2068_v19, %v4784_v6  ;;  %v9126_v21 = vld [vmem:[#allocation76_spill] sm:$0xff]  ;;  %v9130_v19 = vld [vmem:[#allocation82_spill] sm:$0xff] }
 0x5bc   :  { %v2077_v0 = vadd.f32 %v3524_v23, %v2075_v31  ;;  %v9128_v23 = vld [vmem:[#allocation79_spill] sm:$0xff]  ;;  %v9129_v31 = vld [vmem:[#allocation80_spill] sm:$0xff] }
 0x5be   :  { %3867 = vtanh.f32 %v2077_v0  ;;  %v9132_v0 = vld [vmem:[#allocation102_spill] sm:$0xff] }
 0x5c8   :  { %v3868_v3 = vpop.eup %3867 }
 0x5c9   :  { %v2086_v4 = vrot.slane %v3868_v3, %v4784_v6  ;;  %v9134_v3 = vld [vmem:[#allocation104_spill] sm:$0xff] }
 0x5cb   :  { %v2087_v46 = vcombine.high %v2086_v4, %v2086_v4  ;;  %v2090_v47 = vpack.c.bf16 %v2086_v4, %v2086_v4  ;;  %v9135_v4 = vld [vmem:[#allocation105_spill] sm:$0xff] }
 0x5cd   :  { %v2091_v8 = vpack.c.bf16 %v2087_v46, %v2087_v46  ;;  %v9131_v46 = vld [vmem:[#allocation84_spill] sm:$0xff] }
 0x5cf   :  { %2302 = vmatprep.mubr.bf16.mxu0 %v2091_v8 }
 0x5d0   :  { %2303 = vmatmul.mubr.bf16.vlgmr.msra.gmra.mrb[48].mxu0 %v2090_v47 }
 0x5d1   :  { %2379 = vmatpush1.bf16.msra.mxu0 %v9123_v9  ;;  %2410 = vmatprep.mubr.bf16.mxu0 %v2091_v8  ;;  %v9133_v9 = vld [vmem:[#allocation103_spill] sm:$0xff]  ;;  %v9136_v8 = vld [vmem:[#allocation106_spill] sm:$0xff] }
 0x5d2   :  { %2380 = vmatprep.subr.bf16.mxu0 %v9124_v60  ;;  %v9137_v60 = vld [vmem:[#allocation108_spill] sm:$0xff] }
 0x5d5   :  { %2381 = vmatpush1.bf16.msra.mxu0 %v9125_v57 }
 0x5d6   :  { %2382 = vmatprep.subr.bf16.mxu0 %v9126_v21 }
 0x5d9   :  { %2383 = vmatpush1.bf16.msra.mxu0 %v9127_v35  ;;  %v9138_v35 = vld [vmem:[#allocation109_spill] sm:$0xff] }
 0x5da   :  { %2384 = vmatprep.subr.bf16.mxu0 %v9128_v23 }
 0x5dd   :  { %2385 = vmatpush1.bf16.msra.mxu0 %v9129_v31 }
 0x5de   :  { %2386 = vmatprep.subr.bf16.mxu0 %v9130_v19 }
 0x5e1   :  { %2387 = vmatpush1.bf16.msra.mxu0 %v9131_v46 }
 0x5e2   :  { %2388 = vmatprep.subr.bf16.mxu0 %v9132_v0 }
 0x5e5   :  { %2389 = vmatpush1.bf16.msra.mxu0 %v9133_v9 }
 0x5e6   :  { %2390 = vmatprep.subr.bf16.mxu0 %v9134_v3 }
 0x5e9   :  { %2391 = vmatpush1.bf16.msra.mxu0 %v9135_v4 }
 0x5ea   :  { %2392 = vmatprep.subr.bf16.mxu0 %v9136_v8 }
 0x5ed   :  { %2393 = vmatpush1.bf16.msra.mxu0 %v9050_v62 }
 0x5ee   :  { %2394 = vmatprep.subr.bf16.mxu0 %v9137_v60  ;;  %v9147_v60 = vld [vmem:[#allocation60_spill] sm:$0xff] }
 0x5f0   :  { %v2126_v57 = vpop.f32.mrb[40].mxu0 }
 0x5f1   :  { %v2128_v21 = vpop.f32.mrb[41].mxu0  ;;  %2395 = vmatpush1.bf16.msra.mxu0 %v9138_v35  ;;  %v9151_v35 = vld [vmem:[#allocation64_spill] sm:$0xff] }
 0x5f2   :  { %v2130_v23 = vpop.f32.mrb[42].mxu0  ;;  %2396 = vmatprep.subr.bf16.mxu0 %v9053_v50 }
 0x5f3   :  { %v2131_v31 = vpop.f32.mrb[43].mxu0  ;;  %v9152_v23 = vld [vmem:[#allocation70_spill] sm:$0xff] }
 0x5f4   :  { %v9154_v31 = vld [vmem:[#allocation72_spill] sm:$0xff] }
 0x5f5   :  { %2397 = vmatpush1.bf16.msra.mxu0 %v9054_v17 }
 0x5f6   :  { %v2167_v19 = vpop.f32.mrb[40].mxu1  ;;  %2398 = vmatprep.subr.bf16.mxu0 %v9055_v25 }
 0x5f7   :  { %v2168_v46 = vadd.f32 %v2167_v19, %v2126_v57  ;;  %v2169_v0 = vpop.f32.mrb[41].mxu1  ;;  %v9149_v57 = vld [vmem:[#allocation62_spill] sm:$0xff]  ;;  %v9155_v19 = vld [vmem:[#allocation73_spill] sm:$0xff] }
 0x5f8   :  { %v2170_v9 = vadd.f32 %v2169_v0, %v2128_v21  ;;  %v2171_v3 = vpop.f32.mrb[42].mxu1  ;;  %v9150_v21 = vld [vmem:[#allocation63_spill] sm:$0xff]  ;;  %v9157_v0 = vld [vmem:[#allocation78_spill] sm:$0xff] }
 0x5f9   :  { %v2174_v62 = vadd.f32 %v6416_v13, %v2168_v46  ;;  %v2172_v4 = vpop.f32.mrb[43].mxu1  ;;  %2399 = vmatpush1.bf16.msra.mxu0 %v6180_v36  ;;  %v9156_v46 = vld [vmem:[#allocation74_spill] sm:$0xff]  ;;  %v9159_v3 = vld [vmem:[#allocation83_spill] sm:$0xff] }
 0x5fa   :  { %v2175_v8 = vadd.f32 %v2170_v9, %v5067_v55  ;;  %2400 = vmatprep.subr.bf16.mxu0 %v6187_v39  ;;  %v9139_v39 = vld [vmem:[#allocation53_spill] sm:$0xff] }
 0x5fb   :  { %3869 = vtanh.f32 %v2174_v62  ;;  %v9158_v9 = vld [vmem:[#allocation81_spill] sm:$0xff] }
 0x5fc   :  { %3871 = vtanh.f32 %v2175_v8  ;;  %v9160_v62 = vld [vmem:[#allocation21_spill] sm:$0xff]  ;;  %v9162_v8 = vld [vmem:[#allocation86_spill] sm:$0xff] }
 0x5fd   :  { %2401 = vmatpush1.bf16.msra.mxu0 %v6193_v37  ;;  %v9140_v37 = vld [vmem:[#allocation54_spill] sm:$0xff]  ;;  %v9161_v4 = vld [vmem:[#allocation85_spill] sm:$0xff] }
 0x5fe   :  { %2402 = vmatprep.subr.bf16.mxu0 %v6199_v53  ;;  %v9141_v53 = vld [vmem:[#allocation114_spill] sm:$0xff] }
 0x601   :  { %2403 = vmatpush1.bf16.msra.mxu0 %v6205_v58  ;;  %v9142_v58 = vld [vmem:[#allocation55_spill] sm:$0xff] }
 0x602   :  { %2404 = vmatprep.subr.bf16.mxu0 %v6211_v22  ;;  %v9143_v22 = vld [vmem:[#allocation56_spill] sm:$0xff] }
 0x605   :  { %v3870_v17 = vpop.eup %3869  ;;  %2405 = vmatpush1.bf16.msra.mxu0 %v9056_v29  ;;  %v9145_v29 = vld [vmem:[#allocation58_spill] sm:$0xff] }
 0x606   :  { %v3872_v50 = vpop.eup %3871  ;;  %2406 = vmatprep.subr.bf16.mxu0 %v6223_v16  ;;  %v7077_v25 = vpack.c.bf16 %v3870_v17, %v3870_v17  ;;  %v9144_v16 = vld [vmem:[#allocation57_spill] sm:$0xff]  ;;  %v9163_v17 = vld [vmem:[#allocation8_spill] sm:$0xff] }
 0x607   :  { %v2179_v36 = vpack.c.bf16 %v3872_v50, %v3872_v50  ;;  %v9164_v50 = vld [vmem:[#allocation22_spill] sm:$0xff] }
 0x609   :  { %2369 = vmatprep.mubr.bf16.mxu1 %v2179_v36  ;;  %2407 = vmatpush1.bf16.msra.mxu0 %v6231_v38  ;;  %v9146_v38 = vld [vmem:[#allocation59_spill] sm:$0xff] }
 0x60a   :  { %2370 = vmatmul.mubr.bf16.vlgmr.msra.gmra.mrb[48].mxu1 %v7077_v25  ;;  %2408 = vmatprep.subr.bf16.mxu0 %v6238_v26  ;;  %v9148_v26 = vld [vmem:[#allocation61_spill] sm:$0xff] }
 0x60b   :  { %2426 = vmatpush1.bf16.msra.mxu1 %v9139_v39 }
 0x60c   :  { %2427 = vmatprep.subr.bf16.mxu1 %v9140_v37 }
 0x60d   :  { %2409 = vmatpush1.bf16.msra.mxu0 %v9141_v53  ;;  %v9166_v53 = vld [vmem:[#allocation88_spill] sm:$0xff] }
 0x60e   :  { %2466 = vmatprep.subr.bf16.mxu0 %v9142_v58 }
 0x60f   :  { %2428 = vmatpush1.bf16.msra.mxu1 %v9143_v22 }
 0x610   :  { %2411 = vmatmul.mubr.bf16.vlgmr.msra.gmra.mrb[52].mxu0 %v2090_v47  ;;  %2429 = vmatprep.subr.bf16.mxu1 %v9144_v16  ;;  %v9153_v47 = vld [vmem:[#allocation71_spill] sm:$0xff] }
 0x611   :  { %2467 = vmatpush1.bf16.msra.mxu0 %v9145_v29  ;;  %2498 = vmatprep.mubr.bf16.mxu0 %v2179_v36  ;;  %v9165_v36 = vld [vmem:[#allocation87_spill] sm:$0xff] }
 0x612   :  { %2468 = vmatprep.subr.bf16.mxu0 %v9146_v38 }
 0x613   :  { %2430 = vmatpush1.bf16.msra.mxu1 %v9147_v60 }
 0x614   :  { %2431 = vmatprep.subr.bf16.mxu1 %v9148_v26 }
 0x615   :  { %2469 = vmatpush1.bf16.msra.mxu0 %v9149_v57 }
 0x616   :  { %2470 = vmatprep.subr.bf16.mxu0 %v9150_v21 }
 0x617   :  { %2432 = vmatpush1.bf16.msra.mxu1 %v9151_v35 }
 0x618   :  { %2433 = vmatprep.subr.bf16.mxu1 %v9152_v23 }
 0x619   :  { %2471 = vmatpush1.bf16.msra.mxu0 %v9153_v47 }
 0x61a   :  { %2472 = vmatprep.subr.bf16.mxu0 %v9154_v31  ;;  %v9179_v31 = vld [vmem:[#allocation31_spill] sm:$0xff] }
 0x61b   :  { %2434 = vmatpush1.bf16.msra.mxu1 %v9155_v19  ;;  %v9177_v19 = vld [vmem:[#allocation93_spill] sm:$0xff] }
 0x61c   :  { %2435 = vmatprep.subr.bf16.mxu1 %v9156_v46  ;;  %v9167_v46 = vld [vmem:[#allocation23_spill] sm:$0xff] }
 0x61d   :  { %2473 = vmatpush1.bf16.msra.mxu0 %v9157_v0  ;;  %v9168_v0 = vld [vmem:[#allocation24_spill] sm:$0xff] }
 0x61e   :  { %2474 = vmatprep.subr.bf16.mxu0 %v9158_v9  ;;  %v9169_v9 = vld [vmem:[#allocation89_spill] sm:$0xff] }
 0x61f   :  { %2436 = vmatpush1.bf16.msra.mxu1 %v9159_v3  ;;  %v9170_v3 = vld [vmem:[#allocation90_spill] sm:$0xff] }
 0x620   :  { %2437 = vmatprep.subr.bf16.mxu1 %v9160_v62  ;;  %v9171_v62 = vld [vmem:[#allocation27_spill] sm:$0xff] }
 0x621   :  { %2475 = vmatpush1.bf16.msra.mxu0 %v9161_v4  ;;  %v9172_v4 = vld [vmem:[#allocation28_spill] sm:$0xff] }
 0x622   :  { %2476 = vmatprep.subr.bf16.mxu0 %v9162_v8  ;;  %v9173_v8 = vld [vmem:[#allocation91_spill] sm:$0xff] }
 0x623   :  { %2438 = vmatpush1.bf16.msra.mxu1 %v9163_v17  ;;  %v9174_v17 = vld [vmem:[#allocation92_spill] sm:$0xff] }
 0x624   :  { %2439 = vmatprep.subr.bf16.mxu1 %v9164_v50  ;;  %v9175_v50 = vld [vmem:[#allocation29_spill] sm:$0xff] }
 0x625   :  { %2477 = vmatpush1.bf16.msra.mxu0 %v9165_v36 }
 0x626   :  { %2478 = vmatprep.subr.bf16.mxu0 %v9166_v53  ;;  %v9176_v53 = vld [vmem:[#allocation30_spill] sm:$0xff] }
 0x627   :  { %2440 = vmatpush1.bf16.msra.mxu1 %v9167_v46 }
 0x628   :  { %2441 = vmatprep.subr.bf16.mxu1 %v9168_v0 }
 0x629   :  { %2479 = vmatpush1.bf16.msra.mxu0 %v9169_v9  ;;  %v9178_v9 = vld [vmem:[#allocation94_spill] sm:$0xff] }
 0x62a   :  { %2480 = vmatprep.subr.bf16.mxu0 %v9170_v3 }
 0x62b   :  { %2442 = vmatpush1.bf16.msra.mxu1 %v9171_v62  ;;  %v9180_v62 = vld [vmem:[#allocation32_spill] sm:$0xff] }
 0x62c   :  { %2443 = vmatprep.subr.bf16.mxu1 %v9172_v4  ;;  %v9181_v4 = vld [vmem:[#allocation95_spill] sm:$0xff] }
 0x62d   :  { %2481 = vmatpush1.bf16.msra.mxu0 %v9173_v8 }
 0x62e   :  { %2482 = vmatprep.subr.bf16.mxu0 %v9174_v17  ;;  %v9182_v17 = vld [vmem:[#allocation96_spill] sm:$0xff] }
 0x62f   :  { %2444 = vmatpush1.bf16.msra.mxu1 %v9175_v50 }
 0x630   :  { %v2214_v36 = vpop.f32.mrb[44].mxu0  ;;  %2445 = vmatprep.subr.bf16.mxu1 %v9176_v53 }
 0x631   :  { %v2216_v46 = vpop.f32.mrb[45].mxu0  ;;  %2483 = vmatpush1.bf16.msra.mxu0 %v9177_v19 }
 0x632   :  { %v2218_v0 = vpop.f32.mrb[46].mxu0  ;;  %2484 = vmatprep.subr.bf16.mxu0 %v9178_v9 }
 0x633   :  { %v2219_v3 = vpop.f32.mrb[47].mxu0  ;;  %2446 = vmatpush1.bf16.msra.mxu1 %v9179_v31  ;;  %v7131_v0 = vld.sshfl [vmem:[%s8231_s4 + $0x4] sm:$0x33 pattern:$0x76325410] }
 0x634   :  { %2447 = vmatprep.subr.bf16.mxu1 %v9180_v62 }
 0x635   :  { %2485 = vmatpush1.bf16.msra.mxu0 %v9181_v4 }
 0x636   :  { %v2255_v8 = vpop.f32.mrb[44].mxu1  ;;  %2486 = vmatprep.subr.bf16.mxu0 %v9182_v17 }
 0x637   :  { %v2256_v50 = vadd.f32 %v2255_v8, %v2214_v36  ;;  %v2257_v47 = vpop.f32.mrb[45].mxu1  ;;  %2448 = vmatpush1.bf16.msra.mxu1 %v6696_v41  ;;  %v9183_v8 = vld [vmem:[#allocation97_spill] sm:$0xff]  ;;  %v9187_v36 = vld [vmem:[#allocation99_spill] sm:$0xff] }
 0x638   :  { %v2258_v53 = vadd.f32 %v2257_v47, %v2216_v46  ;;  %v2259_v23 = vpop.f32.mrb[46].mxu1  ;;  %2449 = vmatprep.subr.bf16.mxu1 %v6702_v49  ;;  %v9185_v47 = vld [vmem:[#allocation35_spill] sm:$0xff]  ;;  %v9186_v46 = vld [vmem:[#allocation36_spill] sm:$0xff] }
 0x639   :  { %v2262_v3 = vadd.f32 %v7131_v0, %v2256_v50  ;;  %v2260_v62 = vpop.f32.mrb[47].mxu1  ;;  %2487 = vmatpush1.bf16.msra.mxu0 %v6709_v48  ;;  %v9184_v23 = vld [vmem:[#allocation98_spill] sm:$0xff]  ;;  %v9188_v50 = vld [vmem:[#allocation100_spill] sm:$0xff] }
 0x63a   :  { %v2263_v17 = vadd.f32 %v2258_v53, %v5791_v28  ;;  %2488 = vmatprep.subr.bf16.mxu0 %v6716_v12  ;;  %v9189_v62 = vld [vmem:[#allocation37_spill] sm:$0xff]  ;;  %v9190_v48 = vld [vmem:[#allocation38_spill] sm:$0xff]  ;;  %v9194_v12 = vld [vmem:[#allocation40_spill] sm:$0xff] }
 0x63b   :  { %3873 = vtanh.f32 %v2262_v3  ;;  %2450 = vmatpush1.bf16.msra.mxu1 %v9183_v8  ;;  %v9191_v53 = vld [vmem:[#allocation9_spill] sm:$0xff] }
 0x63c   :  { %3875 = vtanh.f32 %v2263_v17  ;;  %2451 = vmatprep.subr.bf16.mxu1 %v9184_v23  ;;  %v9192_v3 = vld [vmem:[#allocation101_spill] sm:$0xff]  ;;  %v9193_v17 = vld [vmem:[#allocation39_spill] sm:$0xff] }
 0x63d   :  { %2489 = vmatpush1.bf16.msra.mxu0 %v9185_v47 }
 0x63e   :  { %2490 = vmatprep.subr.bf16.mxu0 %v9186_v46 }
 0x63f   :  { %2452 = vmatpush1.bf16.msra.mxu1 %v9187_v36 }
 0x640   :  { %2453 = vmatprep.subr.bf16.mxu1 %v9188_v50 }
 0x641   :  { %2491 = vmatpush1.bf16.msra.mxu0 %v9189_v62 }
 0x642   :  { %2492 = vmatprep.subr.bf16.mxu0 %v9190_v48 }
 0x643   :  { %2454 = vmatpush1.bf16.msra.mxu1 %v9191_v53  ;;  %v9195_v53 = vld [vmem:[#allocation11_spill] sm:$0xff] }
 0x644   :  { %2455 = vmatprep.subr.bf16.mxu1 %v9192_v3  ;;  %v9196_v3 = vld [vmem:[#allocation41_spill] sm:$0xff] }
 0x645   :  { %v3874_v8 = vpop.eup %3873  ;;  %2493 = vmatpush1.bf16.msra.mxu0 %v9193_v17 }
 0x646   :  { %v3876_v23 = vpop.eup %3875  ;;  %2494 = vmatprep.subr.bf16.mxu0 %v9194_v12  ;;  %v2266_v36 = vpack.c.bf16 %v3874_v8, %v3874_v8  ;;  %v7174_v8 = vld [vmem:[%s8229_s2 + $0x114] ss:$8 sps:$4 sm:$0xff]  }
 0x647   :  { %2456 = vmatpush1.bf16.msra.mxu1 %v6794_v51  ;;  %v2267_v46 = vpack.c.bf16 %v3876_v23, %v3876_v23  ;;  %v7159_v51 = vld [vmem:[%s8229_s2 + $0x104] ss:$8 sps:$4 sm:$0xff]  }
 0x648   :  { %2515 = vmatprep.subr.bf16.mxu1 %v6800_v18  ;;  %v7168_v18 = vld [vmem:[%s8229_s2 + $0x100] ss:$8 sps:$4 sm:$0xff]   ;;  %v9212_v23 = vld [vmem:[#allocation12_spill] sm:$0xff] }
 0x649   :  { %2457 = vmatprep.mubr.bf16.mxu1 %v2267_v46  ;;  %2495 = vmatpush1.bf16.msra.mxu0 %v6806_v42  ;;  %v9213_v46 = vld [vmem:[#allocation13_spill] sm:$0xff] }
 0x64a   :  { %2458 = vmatmul.mubr.bf16.vlgmr.msra.gmra.mrb[52].mxu1 %v2266_v36  ;;  %2496 = vmatprep.subr.bf16.mxu0 %v6812_v63  ;;  %v7342_v36 = vld [vmem:[%s8229_s2 + $0x1d4] ss:$8 sps:$4 sm:$0xff]  }
 0x64b   :  { %2516 = vmatpush1.bf16.msra.mxu1 %v9195_v53  ;;  %9215 = vst [vmem:[#allocation67_spill] sm:$0xff] %v7342_v36  ;;  %v9216_v53 = vld [vmem:[#allocation43_spill] sm:$0xff] }
 0x64c   :  { %2517 = vmatprep.subr.bf16.mxu1 %v9196_v3  ;;  %v9217_v3 = vld [vmem:[#allocation44_spill] sm:$0xff] }
 0x64d   :  { %2497 = vmatpush1.bf16.msra.mxu0 %v6830_v33 }
 0x64e   :  { %2582 = vmatprep.subr.bf16.mxu0 %v7159_v51 }
 0x64f   :  { %2518 = vmatpush1.bf16.msra.mxu1 %v6837_v14  ;;  %v7182_v14 = vld [vmem:[%s8229_s2 + $0x110] ss:$8 sps:$4 sm:$0xff]  }
 0x650   :  { %2499 = vmatmul.mubr.bf16.vlgmr.msra.gmra.mrb[56].mxu0 %v7077_v25  ;;  %2519 = vmatprep.subr.bf16.mxu1 %v6844_v32  ;;  %v7188_v32 = vld [vmem:[%s8229_s2 + $0x124] ss:$8 sps:$4 sm:$0xff]  }
 0x651   :  { %2583 = vmatpush1.bf16.msra.mxu0 %v7168_v18  ;;  %v9209_v25 = vld [vmem:[#allocation42_spill] sm:$0xff] }
 0x652   :  { %2584 = vmatprep.subr.bf16.mxu0 %v7174_v8 }
 0x653   :  { %2520 = vmatpush1.bf16.msra.mxu1 %v6852_v30  ;;  %v7196_v30 = vld [vmem:[%s8229_s2 + $0x120] ss:$8 sps:$4 sm:$0xff]  }
 0x654   :  { %2521 = vmatprep.subr.bf16.mxu1 %v6858_v45  ;;  %v7202_v45 = vld [vmem:[%s8229_s2 + $0x134] ss:$8 sps:$4 sm:$0xff]  }
 0x655   :  { %2585 = vmatpush1.bf16.msra.mxu0 %v7182_v14 }
 0x656   :  { %2586 = vmatprep.subr.bf16.mxu0 %v7188_v32 }
 0x657   :  { %2522 = vmatpush1.bf16.msra.mxu1 %v6866_v27  ;;  %v7210_v27 = vld [vmem:[%s8229_s2 + $0x130] ss:$8 sps:$4 sm:$0xff]  }
 0x658   :  { %2523 = vmatprep.subr.bf16.mxu1 %v6872_v54  ;;  %v7216_v54 = vld [vmem:[%s8229_s2 + $0x144] ss:$8 sps:$4 sm:$0xff]  }
 0x659   :  { %2587 = vmatpush1.bf16.msra.mxu0 %v7196_v30 }
 0x65a   :  { %2588 = vmatprep.subr.bf16.mxu0 %v7202_v45 }
 0x65b   :  { %2524 = vmatpush1.bf16.msra.mxu1 %v6880_v24  ;;  %v7224_v24 = vld [vmem:[%s8229_s2 + $0x140] ss:$8 sps:$4 sm:$0xff]  }
 0x65c   :  { %2525 = vmatprep.subr.bf16.mxu1 %v6886_v61  ;;  %v7230_v61 = vld [vmem:[%s8229_s2 + $0x154] ss:$8 sps:$4 sm:$0xff]  }
 0x65d   :  { %2589 = vmatpush1.bf16.msra.mxu0 %v7210_v27 }
 0x65e   :  { %2590 = vmatprep.subr.bf16.mxu0 %v7216_v54 }
 0x65f   :  { %2526 = vmatpush1.bf16.msra.mxu1 %v6894_v56  ;;  %v7238_v56 = vld [vmem:[%s8229_s2 + $0x150] ss:$8 sps:$4 sm:$0xff]  }
 0x660   :  { %2527 = vmatprep.subr.bf16.mxu1 %v6900_v34  ;;  %9197 = vst [vmem:[#allocation15_spill] sm:$0xff] %v7238_v56  ;;  %v7244_v34 = vld [vmem:[%s8229_s2 + $0x164] ss:$8 sps:$4 sm:$0xff]  }
 0x661   :  { %2591 = vmatpush1.bf16.msra.mxu0 %v7224_v24  ;;  %9198 = vst [vmem:[#allocation45_spill] sm:$0xff] %v7244_v34 }
 0x662   :  { %2592 = vmatprep.subr.bf16.mxu0 %v7230_v61 }
 0x663   :  { %2528 = vmatpush1.bf16.msra.mxu1 %v6908_v20  ;;  %v7252_v20 = vld [vmem:[%s8229_s2 + $0x160] ss:$8 sps:$4 sm:$0xff]  }
 0x664   :  { %2529 = vmatprep.subr.bf16.mxu1 %v6914_v59  ;;  %9199 = vst [vmem:[#allocation46_spill] sm:$0xff] %v7252_v20  ;;  %v7258_v59 = vld [vmem:[%s8229_s2 + $0x174] ss:$8 sps:$4 sm:$0xff]  }
 0x665   :  { %2593 = vmatpush1.bf16.msra.mxu0 %v7238_v56  ;;  %9200 = vst [vmem:[#allocation16_spill] sm:$0xff] %v7258_v59  ;;  %v7517_v56 = vld [vmem:[%s8230_s3 + $0xa0] ss:$8 sps:$4 sm:$0xff]  }
 0x666   :  { %2594 = vmatprep.subr.bf16.mxu0 %v7244_v34 }
 0x667   :  { %2530 = vmatpush1.bf16.msra.mxu1 %v6922_v1  ;;  %v7266_v1 = vld [vmem:[%s8229_s2 + $0x170] ss:$8 sps:$4 sm:$0xff]  }
 0x668   :  { %2531 = vmatprep.subr.bf16.mxu1 %v6928_v2  ;;  %9201 = vst [vmem:[#allocation17_spill] sm:$0xff] %v7266_v1  ;;  %v7272_v2 = vld [vmem:[%s8229_s2 + $0x184] ss:$8 sps:$4 sm:$0xff]  }
 0x669   :  { %2595 = vmatpush1.bf16.msra.mxu0 %v7252_v20  ;;  %9202 = vst [vmem:[#allocation47_spill] sm:$0xff] %v7272_v2 }
 0x66a   :  { %2596 = vmatprep.subr.bf16.mxu0 %v7258_v59 }
 0x66b   :  { %2532 = vmatpush1.bf16.msra.mxu1 %v6936_v5  ;;  %v7280_v5 = vld [vmem:[%s8229_s2 + $0x180] ss:$8 sps:$4 sm:$0xff]  }
 0x66c   :  { %2533 = vmatprep.subr.bf16.mxu1 %v6942_v7  ;;  %9203 = vst [vmem:[#allocation48_spill] sm:$0xff] %v7280_v5  ;;  %v7286_v7 = vld [vmem:[%s8229_s2 + $0x194] ss:$8 sps:$4 sm:$0xff]  }
 0x66d   :  { %2597 = vmatpush1.bf16.msra.mxu0 %v7266_v1  ;;  %9204 = vst [vmem:[#allocation18_spill] sm:$0xff] %v7286_v7  ;;  %v7486_v1 = vld [vmem:[%s8230_s3 + $0x84] ss:$8 sps:$4 sm:$0xff]  }
 0x66e   :  { %2598 = vmatprep.subr.bf16.mxu0 %v7272_v2  ;;  %v7480_v2 = vld [vmem:[%s8230_s3 + $0x70] ss:$8 sps:$4 sm:$0xff]   ;;  %9232 = vst [vmem:[#allocation82_spill] sm:$0xff] %v7486_v1 }
 0x66f   :  { %2534 = vmatpush1.bf16.msra.mxu1 %v6950_v10  ;;  %v7294_v10 = vld [vmem:[%s8229_s2 + $0x190] ss:$8 sps:$4 sm:$0xff]   ;;  %9231 = vst [vmem:[#allocation80_spill] sm:$0xff] %v7480_v2 }
 0x670   :  { %2535 = vmatprep.subr.bf16.mxu1 %v6956_v11  ;;  %9205 = vst [vmem:[#allocation19_spill] sm:$0xff] %v7294_v10  ;;  %v7300_v11 = vld [vmem:[%s8229_s2 + $0x1a4] ss:$8 sps:$4 sm:$0xff]  }
 0x671   :  { %2599 = vmatpush1.bf16.msra.mxu0 %v7280_v5  ;;  %9206 = vst [vmem:[#allocation49_spill] sm:$0xff] %v7300_v11 }
 0x672   :  { %2600 = vmatprep.subr.bf16.mxu0 %v7286_v7 }
 0x673   :  { %2536 = vmatpush1.bf16.msra.mxu1 %v6964_v15  ;;  %v7308_v15 = vld [vmem:[%s8229_s2 + $0x1a0] ss:$8 sps:$4 sm:$0xff]  }
 0x674   :  { %2537 = vmatprep.subr.bf16.mxu1 %v6970_v40  ;;  %9207 = vst [vmem:[#allocation50_spill] sm:$0xff] %v7308_v15  ;;  %v7314_v40 = vld [vmem:[%s8229_s2 + $0x1b4] ss:$8 sps:$4 sm:$0xff]  }
 0x675   :  { %2601 = vmatpush1.bf16.msra.mxu0 %v7294_v10  ;;  %9208 = vst [vmem:[#allocation20_spill] sm:$0xff] %v7314_v40 }
 0x676   :  { %2602 = vmatprep.subr.bf16.mxu0 %v7300_v11 }
 0x677   :  { %2538 = vmatpush1.bf16.msra.mxu1 %v6978_v43  ;;  %v7322_v43 = vld [vmem:[%s8229_s2 + $0x1b0] ss:$8 sps:$4 sm:$0xff]  }
 0x678   :  { %2539 = vmatprep.subr.bf16.mxu1 %v6984_v44  ;;  %9210 = vst [vmem:[#allocation51_spill] sm:$0xff] %v7322_v43  ;;  %v7328_v44 = vld [vmem:[%s8229_s2 + $0x1c4] ss:$8 sps:$4 sm:$0xff]  }
 0x679   :  { %2603 = vmatpush1.bf16.msra.mxu0 %v7308_v15  ;;  %9211 = vst [vmem:[#allocation65_spill] sm:$0xff] %v7328_v44 }
 0x67a   :  { %2604 = vmatprep.subr.bf16.mxu0 %v7314_v40 }
 0x67b   :  { %2540 = vmatpush1.bf16.msra.mxu1 %v6992_v52  ;;  %v7336_v52 = vld [vmem:[%s8229_s2 + $0x1c0] ss:$8 sps:$4 sm:$0xff]  }
 0x67c   :  { %2541 = vmatprep.subr.bf16.mxu1 %v9209_v25  ;;  %9214 = vst [vmem:[#allocation66_spill] sm:$0xff] %v7336_v52  ;;  %v7350_v25 = vld [vmem:[%s8229_s2 + $0x1d0] ss:$8 sps:$4 sm:$0xff]  }
 0x67d   :  { %2605 = vmatpush1.bf16.msra.mxu0 %v7322_v43  ;;  %9218 = vst [vmem:[#allocation107_spill] sm:$0xff] %v7350_v25  ;;  %v3525_v43 = vld [vmem:[%s8227_s0 + $0x18] sm:$0xf] }
 0x67e   :  { %2606 = vmatprep.subr.bf16.mxu0 %v7328_v44 }
 0x67f   :  { %2542 = vmatpush1.bf16.msra.mxu1 %v9212_v23  ;;  %v7356_v23 = vld [vmem:[%s8229_s2 + $0x1e4] ss:$8 sps:$4 sm:$0xff]  }
 0x680   :  { %2543 = vmatprep.subr.bf16.mxu1 %v9213_v46  ;;  %9219 = vst [vmem:[#allocation110_spill] sm:$0xff] %v7356_v23  ;;  %v9220_v46 = vld [vmem:[#allocation14_spill] sm:$0xff] }
 0x681   :  { %2607 = vmatpush1.bf16.msra.mxu0 %v7336_v52 }
 0x682   :  { %2608 = vmatprep.subr.bf16.mxu0 %v7342_v36 }
 0x683   :  { %2544 = vmatpush1.bf16.msra.mxu1 %v9216_v53  ;;  %v7363_v53 = vld [vmem:[%s8230_s3 + $0x4] ss:$8 sps:$4 sm:$0xff]  }
 0x684   :  { %2545 = vmatprep.subr.bf16.mxu1 %v9217_v3  ;;  %v7369_v3 = vld [vmem:[%s8229_s2 + $0x1e0] ss:$8 sps:$4 sm:$0xff]  }
 0x685   :  { %2609 = vmatpush1.bf16.msra.mxu0 %v7350_v25  ;;  %9221 = vst [vmem:[#allocation111_spill] sm:$0xff] %v7369_v3  ;;  %v9224_v25 = vld [vmem:[#allocation52_spill] sm:$0xff] }
 0x686   :  { %2610 = vmatprep.subr.bf16.mxu0 %v7356_v23  ;;  %v7375_v23 = vld [vmem:[%s8229_s2 + $0x1f4] ss:$8 sps:$4 sm:$0xff]  }
 0x687   :  { %2546 = vmatpush1.bf16.msra.mxu1 %v9220_v46  ;;  %9222 = vst [vmem:[#allocation112_spill] sm:$0xff] %v7375_v23  ;;  %v7381_v46 = vld [vmem:[%s8229_s2 + $0x1f0] ss:$8 sps:$4 sm:$0xff]  }
 0x688   :  { %2623 = vmatprep.subr.bf16.mxu1 %v7363_v53  ;;  %9223 = vst [vmem:[#allocation113_spill] sm:$0xff] %v7381_v46 }
 0x689   :  { %2611 = vmatpush1.bf16.msra.mxu0 %v7369_v3 }
 0x68a   :  { %2612 = vmatprep.subr.bf16.mxu0 %v7375_v23 }
 0x68d   :  { %2613 = vmatpush1.bf16.msra.mxu0 %v7381_v46 }
 0x68e   :  { %2670 = vmatprep.subr.bf16.mxu0 %v9224_v25  ;;  %v7450_v25 = vld [vmem:[%s8230_s3 + $0x54] ss:$8 sps:$4 sm:$0xff]  }
 0x68f   :  { %9226 = vst [vmem:[#allocation69_spill] sm:$0xff] %v7450_v25 }
 0x6a3   :  { %v2304_v36 = vpop.f32.mrb[48].mxu0 }
 0x6a4   :  { %v2306_v52 = vpop.f32.mrb[49].mxu0 }
 0x6a5   :  { %v2313_v44 = vcombine.low %v2304_v36, %v2306_v52  ;;  %v2308_v3 = vpop.f32.mrb[50].mxu0  ;;  %v7396_v52 = vld [vmem:[%s8230_s3] ss:$8 sps:$4 sm:$0xff]  }
 0x6a6   :  { %v2309_v40 = vpop.f32.mrb[51].mxu0  ;;  %v7444_v36 = vld [vmem:[%s8230_s3 + $0x40] ss:$8 sps:$4 sm:$0xff]   ;;  %v7462_v3 = vld [vmem:[%s8230_s3 + $0x64] ss:$8 sps:$4 sm:$0xff]  }
 0x6a7   :  { %v2320_v23 = vrot.slane %v2313_v44, %v4784_v6  ;;  %v7426_v40 = vld [vmem:[%s8230_s3 + $0x34] ss:$8 sps:$4 sm:$0xff]   ;;  %v7438_v44 = vld [vmem:[%s8230_s3 + $0x44] ss:$8 sps:$4 sm:$0xff]   ;;  %9225 = vst [vmem:[#allocation68_spill] sm:$0xff] %v7444_v36  ;;  %9228 = vst [vmem:[#allocation76_spill] sm:$0xff] %v7462_v3 }
 0x6a9   :  { %v2322_v15 = vadd.f32 %v3525_v43, %v2320_v23  ;;  %v7432_v43 = vld [vmem:[%s8230_s3 + $0x30] ss:$8 sps:$4 sm:$0xff]  }
 0x6aa   :  { %v7456_v23 = vld [vmem:[%s8230_s3 + $0x50] ss:$8 sps:$4 sm:$0xff]  }
 0x6ab   :  { %3877 = vtanh.f32 %v2322_v15  ;;  %v7402_v15 = vld [vmem:[%s8230_s3 + $0x14] ss:$8 sps:$4 sm:$0xff]   ;;  %9227 = vst [vmem:[#allocation75_spill] sm:$0xff] %v7456_v23 }
 0x6b5   :  { %v3878_v11 = vpop.eup %3877 }
 0x6b6   :  { %v2331_v10 = vrot.slane %v3878_v11, %v4784_v6  ;;  %v7420_v11 = vld [vmem:[%s8230_s3 + $0x20] ss:$8 sps:$4 sm:$0xff]   ;;  %v7474_v6 = vld [vmem:[%s8230_s3 + $0x74] ss:$8 sps:$4 sm:$0xff]  }
 0x6b7   :  { %9230 = vst [vmem:[#allocation79_spill] sm:$0xff] %v7474_v6 }
 0x6b8   :  { %v2332_v7 = vcombine.high %v2331_v10, %v2331_v10  ;;  %v7390_v5 = vpack.c.bf16 %v2331_v10, %v2331_v10  ;;  %v7414_v10 = vld [vmem:[%s8230_s3 + $0x24] ss:$8 sps:$4 sm:$0xff]  }
 0x6ba   :  { %v2336_v46 = vpack.c.bf16 %v2332_v7, %v2332_v7  ;;  %v7408_v7 = vld [vmem:[%s8230_s3 + $0x10] ss:$8 sps:$4 sm:$0xff]  }
 0x6bc   :  { %2547 = vmatprep.mubr.bf16.mxu1 %v2336_v46 }
 0x6bd   :  { %2548 = vmatmul.mubr.bf16.vlgmr.msra.gmra.mrb[56].mxu1 %v7390_v5 }
 0x6be   :  { %2624 = vmatpush1.bf16.msra.mxu1 %v7396_v52  ;;  %2655 = vmatprep.mubr.bf16.mxu1 %v2336_v46  ;;  %v7468_v46 = vld [vmem:[%s8230_s3 + $0x60] ss:$8 sps:$4 sm:$0xff]  }
 0x6bf   :  { %2625 = vmatprep.subr.bf16.mxu1 %v7402_v15  ;;  %9229 = vst [vmem:[#allocation77_spill] sm:$0xff] %v7468_v46 }
 0x6c2   :  { %2626 = vmatpush1.bf16.msra.mxu1 %v7408_v7 }
 0x6c3   :  { %2627 = vmatprep.subr.bf16.mxu1 %v7414_v10 }
 0x6c6   :  { %2628 = vmatpush1.bf16.msra.mxu1 %v7420_v11 }
 0x6c7   :  { %2629 = vmatprep.subr.bf16.mxu1 %v7426_v40 }
 0x6ca   :  { %2630 = vmatpush1.bf16.msra.mxu1 %v7432_v43 }
 0x6cb   :  { %2631 = vmatprep.subr.bf16.mxu1 %v7438_v44 }
 0x6ce   :  { %2632 = vmatpush1.bf16.msra.mxu1 %v7444_v36 }
 0x6cf   :  { %2633 = vmatprep.subr.bf16.mxu1 %v7450_v25 }
 0x6d2   :  { %2634 = vmatpush1.bf16.msra.mxu1 %v7456_v23 }
 0x6d3   :  { %2635 = vmatprep.subr.bf16.mxu1 %v7462_v3 }
 0x6d6   :  { %2636 = vmatpush1.bf16.msra.mxu1 %v7468_v46 }
 0x6d7   :  { %2637 = vmatprep.subr.bf16.mxu1 %v7474_v6  ;;  %v7492_v6 = vld [vmem:[%s8230_s3 + $0x80] ss:$8 sps:$4 sm:$0xff]  }
 0x6d8   :  { %9233 = vst [vmem:[#allocation84_spill] sm:$0xff] %v7492_v6 }
 0x6da   :  { %2638 = vmatpush1.bf16.msra.mxu1 %v7480_v2  ;;  %v7498_v2 = vld [vmem:[%s8230_s3 + $0x94] ss:$8 sps:$4 sm:$0xff]  }
 0x6db   :  { %2639 = vmatprep.subr.bf16.mxu1 %v7486_v1  ;;  %9234 = vst [vmem:[#allocation102_spill] sm:$0xff] %v7498_v2  ;;  %v7504_v1 = vld [vmem:[%s8230_s3 + $0x90] ss:$8 sps:$4 sm:$0xff]  }
 0x6dc   :  { %9235 = vst [vmem:[#allocation103_spill] sm:$0xff] %v7504_v1 }
 0x6dd   :  { %v2371_v46 = vpop.f32.mrb[48].mxu1 }
 0x6de   :  { %v2373_v3 = vpop.f32.mrb[49].mxu1  ;;  %2640 = vmatpush1.bf16.msra.mxu1 %v7492_v6 }
 0x6df   :  { %v2375_v23 = vpop.f32.mrb[50].mxu1  ;;  %2641 = vmatprep.subr.bf16.mxu1 %v7498_v2 }
 0x6e0   :  { %v2376_v59 = vpop.f32.mrb[51].mxu1  ;;  %v7510_v23 = vld [vmem:[%s8230_s3 + $0xa4] ss:$8 sps:$4 sm:$0xff]  }
 0x6e1   :  { %9236 = vst [vmem:[#allocation104_spill] sm:$0xff] %v7510_v23 }
 0x6e2   :  { %2642 = vmatpush1.bf16.msra.mxu1 %v7504_v1 }
 0x6e3   :  { %v2412_v20 = vpop.f32.mrb[52].mxu0  ;;  %2643 = vmatprep.subr.bf16.mxu1 %v7510_v23  ;;  %v7524_v23 = vld [vmem:[%s8230_s3 + $0xb4] ss:$8 sps:$4 sm:$0xff]  }
 0x6e4   :  { %v2413_v6 = vadd.f32 %v2412_v20, %v2371_v46  ;;  %v2414_v25 = vpop.f32.mrb[53].mxu0  ;;  %v7548_v20 = vld [vmem:[%s8230_s3 + $0xd4] ss:$8 sps:$4 sm:$0xff]  }
 0x6e5   :  { %v2415_v36 = vadd.f32 %v2414_v25, %v2373_v3  ;;  %v2416_v2 = vpop.f32.mrb[54].mxu0  ;;  %v7560_v25 = vld [vmem:[%s8230_s3 + $0xe4] ss:$8 sps:$4 sm:$0xff]  }
 0x6e6   :  { %v2419_v59 = vadd.f32 %v6416_v13, %v2413_v6  ;;  %v2417_v34 = vpop.f32.mrb[55].mxu0  ;;  %2644 = vmatpush1.bf16.msra.mxu1 %v7517_v56  ;;  %v7530_v6 = vld [vmem:[%s8230_s3 + $0xb0] ss:$8 sps:$4 sm:$0xff]   ;;  %v7536_v13 = vld [vmem:[%s8230_s3 + $0xc4] ss:$8 sps:$4 sm:$0xff]  }
 0x6e7   :  { %v2420_v1 = vadd.f32 %v2415_v36, %v5067_v55  ;;  %2645 = vmatprep.subr.bf16.mxu1 %v7524_v23  ;;  %v7542_v34 = vld [vmem:[%s8230_s3 + $0xc0] ss:$8 sps:$4 sm:$0xff]   ;;  %v7554_v2 = vld [vmem:[%s8230_s3 + $0xd0] ss:$8 sps:$4 sm:$0xff]   ;;  %v7575_v55 = vld [vmem:[%s8230_s3 + $0xf4] ss:$8 sps:$4 sm:$0xff]  }
 0x6e8   :  { %3879 = vtanh.f32 %v2419_v59  ;;  %v7568_v59 = vld [vmem:[%s8230_s3 + $0xe0] ss:$8 sps:$4 sm:$0xff]  }
 0x6e9   :  { %3881 = vtanh.f32 %v2420_v1 }
 0x6ea   :  { %2646 = vmatpush1.bf16.msra.mxu1 %v7530_v6 }
 0x6eb   :  { %2647 = vmatprep.subr.bf16.mxu1 %v7536_v13 }
 0x6ee   :  { %2648 = vmatpush1.bf16.msra.mxu1 %v7542_v34 }
 0x6ef   :  { %2649 = vmatprep.subr.bf16.mxu1 %v7548_v20 }
 0x6f2   :  { %v3880_v1 = vpop.eup %3879  ;;  %2650 = vmatpush1.bf16.msra.mxu1 %v7554_v2 }
 0x6f3   :  { %v3882_v36 = vpop.eup %3881  ;;  %2651 = vmatprep.subr.bf16.mxu1 %v7560_v25  ;;  %v7563_v46 = vpack.c.bf16 %v3880_v1, %v3880_v1  ;;  %v7583_v1 = vld [vmem:[%s8230_s3 + $0xf0] ss:$8 sps:$4 sm:$0xff]  }
 0x6f4   :  { %v2424_v3 = vpack.c.bf16 %v3882_v36, %v3882_v36  ;;  %v9250_v36 = vld [vmem:[#allocation87_spill] sm:$0xff] }
 0x6f6   :  { %2614 = vmatprep.mubr.bf16.mxu0 %v2424_v3  ;;  %2652 = vmatpush1.bf16.msra.mxu1 %v7568_v59 }
 0x6f7   :  { %2615 = vmatmul.mubr.bf16.vlgmr.msra.gmra.mrb[60].mxu0 %v7563_v46  ;;  %2653 = vmatprep.subr.bf16.mxu1 %v7575_v55 }
 0x6f8   :  { %2671 = vmatpush1.bf16.msra.mxu0 %v9139_v39  ;;  %v9237_v39 = vld [vmem:[#allocation70_spill] sm:$0xff] }
 0x6f9   :  { %2672 = vmatprep.subr.bf16.mxu0 %v9140_v37  ;;  %v9238_v37 = vld [vmem:[#allocation71_spill] sm:$0xff] }
 0x6fa   :  { %2654 = vmatpush1.bf16.msra.mxu1 %v7583_v1 }
 0x6fb   :  { %2711 = vmatprep.subr.bf16.mxu1 %v9142_v58  ;;  %v9239_v58 = vld [vmem:[#allocation72_spill] sm:$0xff] }
 0x6fc   :  { %2673 = vmatpush1.bf16.msra.mxu0 %v9143_v22  ;;  %v9240_v22 = vld [vmem:[#allocation73_spill] sm:$0xff] }
 0x6fd   :  { %2656 = vmatmul.mubr.bf16.vlgmr.msra.gmra.mrb[60].mxu1 %v7390_v5  ;;  %2674 = vmatprep.subr.bf16.mxu0 %v9144_v16  ;;  %v9241_v16 = vld [vmem:[#allocation74_spill] sm:$0xff] }
 0x6fe   :  { %2712 = vmatpush1.bf16.msra.mxu1 %v9145_v29  ;;  %2743 = vmatprep.mubr.bf16.mxu1 %v2424_v3  ;;  %v9242_v29 = vld [vmem:[#allocation78_spill] sm:$0xff]  ;;  %v9251_v3 = vld [vmem:[#allocation88_spill] sm:$0xff] }
 0x6ff   :  { %2713 = vmatprep.subr.bf16.mxu1 %v9146_v38  ;;  %v9243_v38 = vld [vmem:[#allocation81_spill] sm:$0xff]  ;;  %v9249_v5 = vld [vmem:[#allocation22_spill] sm:$0xff] }
 0x700   :  { %2675 = vmatpush1.bf16.msra.mxu0 %v9147_v60  ;;  %v9244_v60 = vld [vmem:[#allocation83_spill] sm:$0xff] }
 0x701   :  { %2676 = vmatprep.subr.bf16.mxu0 %v9148_v26  ;;  %v9245_v26 = vld [vmem:[#allocation21_spill] sm:$0xff] }
 0x702   :  { %2714 = vmatpush1.bf16.msra.mxu1 %v9149_v57  ;;  %v9246_v57 = vld [vmem:[#allocation85_spill] sm:$0xff] }
 0x703   :  { %2715 = vmatprep.subr.bf16.mxu1 %v9150_v21  ;;  %v9247_v21 = vld [vmem:[#allocation86_spill] sm:$0xff] }
 0x704   :  { %2677 = vmatpush1.bf16.msra.mxu0 %v9151_v35  ;;  %v9248_v35 = vld [vmem:[#allocation8_spill] sm:$0xff] }
 0x705   :  { %2678 = vmatprep.subr.bf16.mxu0 %v9237_v39  ;;  %v9252_v39 = vld [vmem:[#allocation23_spill] sm:$0xff] }
 0x706   :  { %2716 = vmatpush1.bf16.msra.mxu1 %v9238_v37  ;;  %v9253_v37 = vld [vmem:[#allocation24_spill] sm:$0xff] }
 0x707   :  { %2717 = vmatprep.subr.bf16.mxu1 %v9239_v58  ;;  %v9254_v58 = vld [vmem:[#allocation89_spill] sm:$0xff] }
 0x708   :  { %2679 = vmatpush1.bf16.msra.mxu0 %v9240_v22  ;;  %v9255_v22 = vld [vmem:[#allocation90_spill] sm:$0xff] }
 0x709   :  { %2680 = vmatprep.subr.bf16.mxu0 %v9241_v16  ;;  %v9256_v16 = vld [vmem:[#allocation27_spill] sm:$0xff] }
 0x70a   :  { %2718 = vmatpush1.bf16.msra.mxu1 %v9242_v29  ;;  %v9257_v29 = vld [vmem:[#allocation28_spill] sm:$0xff] }
 0x70b   :  { %2719 = vmatprep.subr.bf16.mxu1 %v9243_v38  ;;  %v9258_v38 = vld [vmem:[#allocation91_spill] sm:$0xff] }
 0x70c   :  { %2681 = vmatpush1.bf16.msra.mxu0 %v9244_v60  ;;  %v9259_v60 = vld [vmem:[#allocation92_spill] sm:$0xff] }
 0x70d   :  { %2682 = vmatprep.subr.bf16.mxu0 %v9245_v26  ;;  %v9260_v26 = vld [vmem:[#allocation29_spill] sm:$0xff] }
 0x70e   :  { %2720 = vmatpush1.bf16.msra.mxu1 %v9246_v57 }
 0x70f   :  { %2721 = vmatprep.subr.bf16.mxu1 %v9247_v21  ;;  %v9261_v21 = vld [vmem:[#allocation30_spill] sm:$0xff] }
 0x710   :  { %2683 = vmatpush1.bf16.msra.mxu0 %v9248_v35 }
 0x711   :  { %2684 = vmatprep.subr.bf16.mxu0 %v9249_v5 }
 0x712   :  { %2722 = vmatpush1.bf16.msra.mxu1 %v9250_v36 }
 0x713   :  { %2723 = vmatprep.subr.bf16.mxu1 %v9251_v3  ;;  %v9262_v3 = vld [vmem:[#allocation32_spill] sm:$0xff] }
 0x714   :  { %2685 = vmatpush1.bf16.msra.mxu0 %v9252_v39 }
 0x715   :  { %2686 = vmatprep.subr.bf16.mxu0 %v9253_v37  ;;  %v9263_v37 = vld [vmem:[#allocation96_spill] sm:$0xff] }
 0x716   :  { %2724 = vmatpush1.bf16.msra.mxu1 %v9254_v58 }
 0x717   :  { %2725 = vmatprep.subr.bf16.mxu1 %v9255_v22 }
 0x718   :  { %2687 = vmatpush1.bf16.msra.mxu0 %v9256_v16 }
 0x719   :  { %2688 = vmatprep.subr.bf16.mxu0 %v9257_v29 }
 0x71a   :  { %2726 = vmatpush1.bf16.msra.mxu1 %v9258_v38  ;;  %v9264_v38 = vld [vmem:[#allocation33_spill] sm:$0xff] }
 0x71b   :  { %2727 = vmatprep.subr.bf16.mxu1 %v9259_v60  ;;  %v9265_v60 = vld [vmem:[#allocation34_spill] sm:$0xff] }
 0x71c   :  { %2689 = vmatpush1.bf16.msra.mxu0 %v9260_v26  ;;  %v9267_v26 = vld [vmem:[#allocation98_spill] sm:$0xff] }
 0x71d   :  { %v2459_v57 = vpop.f32.mrb[52].mxu1  ;;  %2690 = vmatprep.subr.bf16.mxu0 %v9261_v21  ;;  %v9271_v21 = vld [vmem:[#allocation101_spill] sm:$0xff] }
 0x71e   :  { %v2461_v35 = vpop.f32.mrb[53].mxu1  ;;  %2728 = vmatpush1.bf16.msra.mxu1 %v9177_v19 }
 0x71f   :  { %v2463_v5 = vpop.f32.mrb[54].mxu1  ;;  %2729 = vmatprep.subr.bf16.mxu1 %v9178_v9 }
 0x720   :  { %v2464_v36 = vpop.f32.mrb[55].mxu1  ;;  %2691 = vmatpush1.bf16.msra.mxu0 %v9179_v31 }
 0x721   :  { %2692 = vmatprep.subr.bf16.mxu0 %v9262_v3 }
 0x722   :  { %2730 = vmatpush1.bf16.msra.mxu1 %v9181_v4  ;;  %v9266_v4 = vld [vmem:[#allocation97_spill] sm:$0xff] }
 0x723   :  { %v2500_v39 = vpop.f32.mrb[56].mxu0  ;;  %2731 = vmatprep.subr.bf16.mxu1 %v9263_v37  ;;  %v9303_v37 = vld [vmem:[#allocation111_spill] sm:$0xff] }
 0x724   :  { %v2501_v58 = vadd.f32 %v2500_v39, %v2459_v57  ;;  %v2502_v22 = vpop.f32.mrb[57].mxu0  ;;  %2693 = vmatpush1.bf16.msra.mxu0 %v6696_v41  ;;  %v9268_v41 = vld [vmem:[#allocation36_spill] sm:$0xff]  ;;  %v9270_v57 = vld [vmem:[#allocation9_spill] sm:$0xff]  ;;  %v9302_v39 = vld [vmem:[#allocation110_spill] sm:$0xff] }
 0x725   :  { %v2503_v16 = vadd.f32 %v2502_v22, %v2461_v35  ;;  %v2504_v29 = vpop.f32.mrb[58].mxu0  ;;  %2694 = vmatprep.subr.bf16.mxu0 %v6702_v49  ;;  %v9269_v49 = vld [vmem:[#allocation99_spill] sm:$0xff]  ;;  %v9306_v22 = vld [vmem:[#allocation25_spill] sm:$0xff] }
 0x726   :  { %v2507_v19 = vadd.f32 %v7131_v0, %v2501_v58  ;;  %v2505_v9 = vpop.f32.mrb[59].mxu0  ;;  %2732 = vmatpush1.bf16.msra.mxu1 %v9264_v38  ;;  %v3526_v58 = vld [vmem:[%s8227_s0 + $0x1c] sm:$0xf] }
 0x727   :  { %v2508_v31 = vadd.f32 %v2503_v16, %v5791_v28  ;;  %2733 = vmatprep.subr.bf16.mxu1 %v9265_v60  ;;  %v7741_v60 = vld [vmem:[%s8230_s3 + $0x114] ss:$8 sps:$4 sm:$0xff]  }
 0x728   :  { %3883 = vtanh.f32 %v2507_v19  ;;  %2695 = vmatpush1.bf16.msra.mxu0 %v9266_v4  ;;  %v7747_v4 = vld [vmem:[%s8230_s3 + $0x110] ss:$8 sps:$4 sm:$0xff]  }
 0x729   :  { %3885 = vtanh.f32 %v2508_v31  ;;  %2696 = vmatprep.subr.bf16.mxu0 %v9267_v26  ;;  %v7735_v31 = vld [vmem:[%s8230_s3 + $0x100] ss:$8 sps:$4 sm:$0xff]   ;;  %v7753_v26 = vld [vmem:[%s8230_s3 + $0x124] ss:$8 sps:$4 sm:$0xff]  }
 0x72a   :  { %2734 = vmatpush1.bf16.msra.mxu1 %v9185_v47  ;;  %v9272_v47 = vld [vmem:[#allocation10_spill] sm:$0xff] }
 0x72b   :  { %2735 = vmatprep.subr.bf16.mxu1 %v9268_v41  ;;  %v7759_v41 = vld [vmem:[%s8230_s3 + $0x120] ss:$8 sps:$4 sm:$0xff]  }
 0x72c   :  { %2697 = vmatpush1.bf16.msra.mxu0 %v9269_v49  ;;  %v7765_v49 = vld [vmem:[%s8230_s3 + $0x134] ss:$8 sps:$4 sm:$0xff]  }
 0x72d   :  { %2698 = vmatprep.subr.bf16.mxu0 %v9188_v50  ;;  %v9279_v50 = vld [vmem:[#allocation75_spill] sm:$0xff] }
 0x72e   :  { %2736 = vmatpush1.bf16.msra.mxu1 %v9189_v62  ;;  %v9280_v62 = vld [vmem:[#allocation76_spill] sm:$0xff] }
 0x72f   :  { %2737 = vmatprep.subr.bf16.mxu1 %v9190_v48  ;;  %v9273_v48 = vld [vmem:[#allocation15_spill] sm:$0xff] }
 0x730   :  { %2699 = vmatpush1.bf16.msra.mxu0 %v9270_v57  ;;  %v7771_v57 = vld [vmem:[%s8230_s3 + $0x130] ss:$8 sps:$4 sm:$0xff]  }
 0x731   :  { %2700 = vmatprep.subr.bf16.mxu0 %v9271_v21  ;;  %v7777_v21 = vld [vmem:[%s8230_s3 + $0x144] ss:$8 sps:$4 sm:$0xff]  }
 0x732   :  { %v3884_v35 = vpop.eup %3883  ;;  %2738 = vmatpush1.bf16.msra.mxu1 %v9193_v17  ;;  %v9281_v17 = vld [vmem:[#allocation17_spill] sm:$0xff] }
 0x733   :  { %v3886_v5 = vpop.eup %3885  ;;  %2739 = vmatprep.subr.bf16.mxu1 %v9194_v12  ;;  %v2511_v3 = vpack.c.bf16 %v3884_v35, %v3884_v35  ;;  %v9274_v12 = vld [vmem:[#allocation45_spill] sm:$0xff]  ;;  %v7783_v35 = vld [vmem:[%s8230_s3 + $0x140] ss:$8 sps:$4 sm:$0xff]  }
 0x734   :  { %2701 = vmatpush1.bf16.msra.mxu0 %v9272_v47  ;;  %v2512_v36 = vpack.c.bf16 %v3886_v5, %v3886_v5  ;;  %v7789_v5 = vld [vmem:[%s8230_s3 + $0x154] ss:$8 sps:$4 sm:$0xff]   ;;  %v7795_v47 = vld [vmem:[%s8230_s3 + $0x150] ss:$8 sps:$4 sm:$0xff]  }
 0x735   :  { %2758 = vmatprep.subr.bf16.mxu0 %v7159_v51  ;;  %v9276_v51 = vld [vmem:[#allocation69_spill] sm:$0xff] }
 0x736   :  { %2702 = vmatprep.mubr.bf16.mxu0 %v2512_v36  ;;  %2740 = vmatpush1.bf16.msra.mxu1 %v6806_v42  ;;  %v9275_v42 = vld [vmem:[#allocation68_spill] sm:$0xff] }
 0x737   :  { %2703 = vmatmul.mubr.bf16.vlgmr.msra.gmra.mrb[64].mxu0 %v2511_v3  ;;  %2741 = vmatprep.subr.bf16.mxu1 %v6812_v63  ;;  %v9277_v63 = vld [vmem:[#allocation46_spill] sm:$0xff] }
 0x738   :  { %2759 = vmatpush1.bf16.msra.mxu0 %v7168_v18  ;;  %v9282_v18 = vld [vmem:[#allocation47_spill] sm:$0xff] }
 0x739   :  { %2760 = vmatprep.subr.bf16.mxu0 %v7174_v8  ;;  %v9283_v8 = vld [vmem:[#allocation77_spill] sm:$0xff]  ;;  %v7801_v36 = vld [vmem:[%s8230_s3 + $0x164] ss:$8 sps:$4 sm:$0xff]   ;;  %v7807_v3 = vld [vmem:[%s8230_s3 + $0x160] ss:$8 sps:$4 sm:$0xff]  }
 0x73a   :  { %2742 = vmatpush1.bf16.msra.mxu1 %v6830_v33  ;;  %v9278_v33 = vld [vmem:[#allocation16_spill] sm:$0xff] }
 0x73b   :  { %2799 = vmatprep.subr.bf16.mxu1 %v7363_v53  ;;  %v9292_v53 = vld [vmem:[#allocation102_spill] sm:$0xff] }
 0x73c   :  { %2761 = vmatpush1.bf16.msra.mxu0 %v7182_v14  ;;  %v9284_v14 = vld [vmem:[#allocation79_spill] sm:$0xff] }
 0x73d   :  { %2744 = vmatmul.mubr.bf16.vlgmr.msra.gmra.mrb[64].mxu1 %v7563_v46  ;;  %2762 = vmatprep.subr.bf16.mxu0 %v7188_v32  ;;  %v9285_v32 = vld [vmem:[#allocation48_spill] sm:$0xff]  ;;  %v9301_v46 = vld [vmem:[#allocation107_spill] sm:$0xff] }
 0x73e   :  { %2800 = vmatpush1.bf16.msra.mxu1 %v7396_v52  ;;  %v9293_v52 = vld [vmem:[#allocation50_spill] sm:$0xff] }
 0x73f   :  { %2801 = vmatprep.subr.bf16.mxu1 %v7402_v15  ;;  %v9294_v15 = vld [vmem:[#allocation20_spill] sm:$0xff] }
 0x740   :  { %2763 = vmatpush1.bf16.msra.mxu0 %v7196_v30  ;;  %v9286_v30 = vld [vmem:[#allocation18_spill] sm:$0xff] }
 0x741   :  { %2764 = vmatprep.subr.bf16.mxu0 %v7202_v45  ;;  %v9287_v45 = vld [vmem:[#allocation80_spill] sm:$0xff] }
 0x742   :  { %2802 = vmatpush1.bf16.msra.mxu1 %v7408_v7  ;;  %v9295_v7 = vld [vmem:[#allocation103_spill] sm:$0xff] }
 0x743   :  { %2803 = vmatprep.subr.bf16.mxu1 %v7414_v10  ;;  %v9296_v10 = vld [vmem:[#allocation104_spill] sm:$0xff] }
 0x744   :  { %2765 = vmatpush1.bf16.msra.mxu0 %v7210_v27  ;;  %v9288_v27 = vld [vmem:[#allocation82_spill] sm:$0xff] }
 0x745   :  { %2766 = vmatprep.subr.bf16.mxu0 %v7216_v54  ;;  %v9289_v54 = vld [vmem:[#allocation19_spill] sm:$0xff] }
 0x746   :  { %2804 = vmatpush1.bf16.msra.mxu1 %v7420_v11  ;;  %v9297_v11 = vld [vmem:[#allocation51_spill] sm:$0xff] }
 0x747   :  { %2805 = vmatprep.subr.bf16.mxu1 %v7426_v40  ;;  %v9298_v40 = vld [vmem:[#allocation65_spill] sm:$0xff] }
 0x748   :  { %2767 = vmatpush1.bf16.msra.mxu0 %v7224_v24  ;;  %v9290_v24 = vld [vmem:[#allocation49_spill] sm:$0xff] }
 0x749   :  { %2768 = vmatprep.subr.bf16.mxu0 %v7230_v61  ;;  %v9291_v61 = vld [vmem:[#allocation84_spill] sm:$0xff] }
 0x74a   :  { %2806 = vmatpush1.bf16.msra.mxu1 %v7432_v43  ;;  %v9299_v43 = vld [vmem:[#allocation66_spill] sm:$0xff] }
 0x74b   :  { %2807 = vmatprep.subr.bf16.mxu1 %v7438_v44  ;;  %v9300_v44 = vld [vmem:[#allocation67_spill] sm:$0xff] }
 0x74c   :  { %2769 = vmatpush1.bf16.msra.mxu0 %v9273_v48  ;;  %v7813_v48 = vld [vmem:[%s8230_s3 + $0x174] ss:$8 sps:$4 sm:$0xff]  }
 0x74d   :  { %2770 = vmatprep.subr.bf16.mxu0 %v9274_v12  ;;  %v7819_v12 = vld [vmem:[%s8230_s3 + $0x170] ss:$8 sps:$4 sm:$0xff]  }
 0x74e   :  { %2808 = vmatpush1.bf16.msra.mxu1 %v9275_v42  ;;  %v7825_v42 = vld [vmem:[%s8230_s3 + $0x184] ss:$8 sps:$4 sm:$0xff]  }
 0x74f   :  { %2809 = vmatprep.subr.bf16.mxu1 %v9276_v51 }
 0x750   :  { %2771 = vmatpush1.bf16.msra.mxu0 %v9277_v63 }
 0x751   :  { %2772 = vmatprep.subr.bf16.mxu0 %v9278_v33  ;;  %v7831_v33 = vld [vmem:[%s8230_s3 + $0x180] ss:$8 sps:$4 sm:$0xff]  }
 0x752   :  { %2810 = vmatpush1.bf16.msra.mxu1 %v9279_v50 }
 0x753   :  { %2811 = vmatprep.subr.bf16.mxu1 %v9280_v62  ;;  %v7837_v62 = vld [vmem:[%s8230_s3 + $0x194] ss:$8 sps:$4 sm:$0xff]  }
 0x754   :  { %2773 = vmatpush1.bf16.msra.mxu0 %v9281_v17 }
 0x755   :  { %2774 = vmatprep.subr.bf16.mxu0 %v9282_v18  ;;  %v7843_v18 = vld [vmem:[%s8230_s3 + $0x190] ss:$8 sps:$4 sm:$0xff]  }
 0x756   :  { %2812 = vmatpush1.bf16.msra.mxu1 %v9283_v8 }
 0x757   :  { %2813 = vmatprep.subr.bf16.mxu1 %v9284_v14  ;;  %v7849_v14 = vld [vmem:[%s8230_s3 + $0x1a4] ss:$8 sps:$4 sm:$0xff]  }
 0x758   :  { %2775 = vmatpush1.bf16.msra.mxu0 %v9285_v32 }
 0x759   :  { %2776 = vmatprep.subr.bf16.mxu0 %v9286_v30 }
 0x75a   :  { %2814 = vmatpush1.bf16.msra.mxu1 %v9287_v45 }
 0x75b   :  { %2815 = vmatprep.subr.bf16.mxu1 %v9288_v27 }
 0x75c   :  { %2777 = vmatpush1.bf16.msra.mxu0 %v9289_v54  ;;  %v7855_v54 = vld.sshfl [vmem:[%s8231_s4] sm:$0x33 pattern:$0x76325410] }
 0x75d   :  { %2778 = vmatprep.subr.bf16.mxu0 %v9290_v24 }
 0x75e   :  { %2816 = vmatpush1.bf16.msra.mxu1 %v9291_v61 }
 0x75f   :  { %2817 = vmatprep.subr.bf16.mxu1 %v9292_v53  ;;  %v7861_v53 = vld [vmem:[%s8230_s3 + $0x1a0] ss:$8 sps:$4 sm:$0xff]  }
 0x760   :  { %2779 = vmatpush1.bf16.msra.mxu0 %v9293_v52  ;;  %v9307_v52 = vld [vmem:[#allocation26_spill] sm:$0xff] }
 0x761   :  { %2780 = vmatprep.subr.bf16.mxu0 %v9294_v15 }
 0x762   :  { %2818 = vmatpush1.bf16.msra.mxu1 %v9295_v7  ;;  %v7868_v7 = vld [vmem:[%s8230_s3 + $0x1b4] ss:$8 sps:$4 sm:$0xff]  }
 0x763   :  { %2819 = vmatprep.subr.bf16.mxu1 %v9296_v10  ;;  %v7874_v10 = vld [vmem:[%s8230_s3 + $0x1b0] ss:$8 sps:$4 sm:$0xff]  }
 0x764   :  { %2781 = vmatpush1.bf16.msra.mxu0 %v9297_v11  ;;  %v7880_v11 = vld [vmem:[%s8230_s3 + $0x1c4] ss:$8 sps:$4 sm:$0xff]  }
 0x765   :  { %2782 = vmatprep.subr.bf16.mxu0 %v9298_v40  ;;  %v7886_v40 = vld [vmem:[%s8230_s3 + $0x1c0] ss:$8 sps:$4 sm:$0xff]  }
 0x766   :  { %2820 = vmatpush1.bf16.msra.mxu1 %v7517_v56  ;;  %v9304_v56 = vld [vmem:[#allocation112_spill] sm:$0xff] }
 0x767   :  { %2821 = vmatprep.subr.bf16.mxu1 %v7524_v23  ;;  %v9305_v23 = vld [vmem:[#allocation113_spill] sm:$0xff] }
 0x768   :  { %2783 = vmatpush1.bf16.msra.mxu0 %v9299_v43  ;;  %v7892_v43 = vld [vmem:[%s8230_s3 + $0x1d4] ss:$8 sps:$4 sm:$0xff]  }
 0x769   :  { %2784 = vmatprep.subr.bf16.mxu0 %v9300_v44 }
 0x76a   :  { %2822 = vmatpush1.bf16.msra.mxu1 %v7530_v6  ;;  %v7715_v6 = vld [vmem:[%s8229_s2 + $0x204] ss:$8 sps:$4 sm:$0xff]  }
 0x76b   :  { %2823 = vmatprep.subr.bf16.mxu1 %v7536_v13  ;;  %v7724_v13 = vld [vmem:[%s8230_s3 + $0x104] ss:$8 sps:$4 sm:$0xff]  }
 0x76c   :  { %2785 = vmatpush1.bf16.msra.mxu0 %v9301_v46  ;;  %v7898_v46 = vld [vmem:[%s8230_s3 + $0x1d0] ss:$8 sps:$4 sm:$0xff]  }
 0x76d   :  { %2786 = vmatprep.subr.bf16.mxu0 %v9302_v39 }
 0x76e   :  { %2824 = vmatpush1.bf16.msra.mxu1 %v7542_v34 }
 0x76f   :  { %2825 = vmatprep.subr.bf16.mxu1 %v7548_v20 }
 0x770   :  { %2787 = vmatpush1.bf16.msra.mxu0 %v9303_v37  ;;  %v7904_v37 = vld [vmem:[%s8230_s3 + $0x1e4] ss:$8 sps:$4 sm:$0xff]  }
 0x771   :  { %2788 = vmatprep.subr.bf16.mxu0 %v9304_v56 }
 0x772   :  { %2826 = vmatpush1.bf16.msra.mxu1 %v7554_v2 }
 0x773   :  { %2827 = vmatprep.subr.bf16.mxu1 %v7560_v25 }
 0x774   :  { %2789 = vmatpush1.bf16.msra.mxu0 %v9305_v23 }
 0x775   :  { %2846 = vmatprep.subr.bf16.mxu0 %v7715_v6 }
 0x776   :  { %2828 = vmatpush1.bf16.msra.mxu1 %v7568_v59 }
 0x777   :  { %2829 = vmatprep.subr.bf16.mxu1 %v7575_v55 }
 0x77a   :  { %2830 = vmatpush1.bf16.msra.mxu1 %v7583_v1 }
 0x77b   :  { %2887 = vmatprep.subr.bf16.mxu1 %v7724_v13 }
 0x790   :  { %v2549_v34 = vpop.f32.mrb[56].mxu1 }
 0x791   :  { %v2551_v20 = vpop.f32.mrb[57].mxu1 }
 0x792   :  { %v2558_v2 = vcombine.low %v2549_v34, %v2551_v20  ;;  %v2553_v25 = vpop.f32.mrb[58].mxu1  ;;  %v7910_v34 = vld [vmem:[%s8230_s3 + $0x1e0] ss:$8 sps:$4 sm:$0xff]  }
 0x793   :  { %v2554_v59 = vpop.f32.mrb[59].mxu1  ;;  %v7916_v20 = vld [vmem:[%s8229_s2 + $0x200] ss:$8 sps:$4 sm:$0xff]   ;;  %v7928_v25 = vld [vmem:[%s8229_s2 + $0x214] ss:$8 sps:$4 sm:$0xff]  }
 0x794   :  { %v2565_v55 = vrot.slane %v2558_v2, %v9306_v22  ;;  %v7922_v2 = vld [vmem:[%s8230_s3 + $0x1f4] ss:$8 sps:$4 sm:$0xff]   ;;  %v7941_v59 = vld [vmem:[%s8229_s2 + $0x210] ss:$8 sps:$4 sm:$0xff]  }
 0x796   :  { %v2567_v16 = vadd.f32 %v3526_v58, %v2565_v55  ;;  %v7934_v58 = vld [vmem:[%s8230_s3 + $0x1f0] ss:$8 sps:$4 sm:$0xff]   ;;  %v7961_v55 = vld [vmem:[%s8229_s2 + $0x234] ss:$8 sps:$4 sm:$0xff]  }
 0x798   :  { %3887 = vtanh.f32 %v2567_v16  ;;  %v7969_v16 = vld [vmem:[%s8229_s2 + $0x230] ss:$8 sps:$4 sm:$0xff]  }
 0x7a2   :  { %v3888_v1 = vpop.eup %3887 }
 0x7a3   :  { %3022 = vst [vmem:[#allocation4] sm:$0xf] %v3888_v1  ;;  %v2576_v29 = vrot.slane %v3888_v1, %v9306_v22  ;;  %v7947_v22 = vld [vmem:[%s8229_s2 + $0x224] ss:$8 sps:$4 sm:$0xff]  }
 0x7a4   :  { %v7975_v1 = vld [vmem:[%s8229_s2 + $0x244] ss:$8 sps:$4 sm:$0xff]  }
 0x7a5   :  { %v2577_v19 = vcombine.high %v2576_v29, %v2576_v29  ;;  %v2580_v38 = vpack.c.bf16 %v2576_v29, %v2576_v29  ;;  %v7983_v29 = vld [vmem:[%s8229_s2 + $0x240] ss:$8 sps:$4 sm:$0xff]  }
 0x7a7   :  { %v2581_v9 = vpack.c.bf16 %v2577_v19, %v2577_v19  ;;  %v7989_v19 = vld [vmem:[%s8229_s2 + $0x254] ss:$8 sps:$4 sm:$0xff]  }
 0x7a9   :  { %2831 = vmatprep.mubr.bf16.mxu1 %v2581_v9  ;;  %v7997_v9 = vld [vmem:[%s8229_s2 + $0x250] ss:$8 sps:$4 sm:$0xff]  }
 0x7aa   :  { %2832 = vmatmul.mubr.bf16.vlgmr.msra.gmra.mrb[68].mxu1 %v2580_v38  ;;  %v8003_v38 = vld [vmem:[%s8229_s2 + $0x264] ss:$8 sps:$4 sm:$0xff]  }
 0x7ab   :  { %2888 = vmatpush1.bf16.msra.mxu1 %v7735_v31 }
 0x7ac   :  { %2889 = vmatprep.subr.bf16.mxu1 %v7741_v60 }
 0x7af   :  { %2890 = vmatpush1.bf16.msra.mxu1 %v7747_v4 }
 0x7b0   :  { %2891 = vmatprep.subr.bf16.mxu1 %v7753_v26 }
 0x7b3   :  { %2892 = vmatpush1.bf16.msra.mxu1 %v7759_v41 }
 0x7b4   :  { %2893 = vmatprep.subr.bf16.mxu1 %v7765_v49 }
 0x7b7   :  { %2894 = vmatpush1.bf16.msra.mxu1 %v7771_v57 }
 0x7b8   :  { %2895 = vmatprep.subr.bf16.mxu1 %v7777_v21 }
 0x7bb   :  { %2896 = vmatpush1.bf16.msra.mxu1 %v7783_v35 }
 0x7bc   :  { %2897 = vmatprep.subr.bf16.mxu1 %v7789_v5 }
 0x7bf   :  { %2898 = vmatpush1.bf16.msra.mxu1 %v7795_v47 }
 0x7c0   :  { %2899 = vmatprep.subr.bf16.mxu1 %v7801_v36 }
 0x7c3   :  { %2900 = vmatpush1.bf16.msra.mxu1 %v7807_v3 }
 0x7c4   :  { %2901 = vmatprep.subr.bf16.mxu1 %v7813_v48 }
 0x7c7   :  { %2902 = vmatpush1.bf16.msra.mxu1 %v7819_v12 }
 0x7c8   :  { %2903 = vmatprep.subr.bf16.mxu1 %v7825_v42 }
 0x7ca   :  { %v2616_v51 = vpop.f32.mrb[60].mxu0 }
 0x7cb   :  { %v2618_v63 = vpop.f32.mrb[61].mxu0  ;;  %2904 = vmatpush1.bf16.msra.mxu1 %v7831_v33 }
 0x7cc   :  { %v2620_v50 = vpop.f32.mrb[62].mxu0  ;;  %2905 = vmatprep.subr.bf16.mxu1 %v7837_v62 }
 0x7cd   :  { %v2621_v17 = vpop.f32.mrb[63].mxu0 }
 0x7cf   :  { %2906 = vmatpush1.bf16.msra.mxu1 %v7843_v18 }
 0x7d0   :  { %v2657_v8 = vpop.f32.mrb[60].mxu1  ;;  %2907 = vmatprep.subr.bf16.mxu1 %v7849_v14 }
 0x7d1   :  { %v2658_v32 = vadd.f32 %v2657_v8, %v2616_v51  ;;  %v2659_v30 = vpop.f32.mrb[61].mxu1 }
 0x7d2   :  { %v2660_v45 = vadd.f32 %v2659_v30, %v2618_v63  ;;  %v2661_v27 = vpop.f32.mrb[62].mxu1  ;;  %v8081_v63 = vld [vmem:[%s8229_s2 + $0x2b0] ss:$8 sps:$4 sm:$0xff]   ;;  %v4228_v30 = vld [vmem:[%s8229_s2 + $0x2e4] ss:$8 sps:$4 sm:$0xff]  }
 0x7d3   :  { %v2664_v24 = vadd.f32 %v7855_v54, %v2658_v32  ;;  %v2662_v61 = vpop.f32.mrb[63].mxu1  ;;  %2908 = vmatpush1.bf16.msra.mxu1 %v7861_v53  ;;  %v4226_v32 = vld [vmem:[%s8229_s2 + $0x2d4] ss:$8 sps:$4 sm:$0xff]  }
 0x7d4   :  { %v2665_v15 = vadd.f32 %v2660_v45, %v9307_v52  ;;  %2909 = vmatprep.subr.bf16.mxu1 %v7868_v7  ;;  %v4229_v45 = vld [vmem:[%s8229_s2 + $0x2e0] ss:$8 sps:$4 sm:$0xff]   ;;  %v4230_v27 = vld [vmem:[%s8229_s2 + $0x2f4] ss:$8 sps:$4 sm:$0xff]  }
 0x7d5   :  { %3889 = vtanh.f32 %v2664_v24 }
 0x7d6   :  { %3891 = vtanh.f32 %v2665_v15 }
 0x7d7   :  { %2910 = vmatpush1.bf16.msra.mxu1 %v7874_v10 }
 0x7d8   :  { %2911 = vmatprep.subr.bf16.mxu1 %v7880_v11 }
 0x7db   :  { %2912 = vmatpush1.bf16.msra.mxu1 %v7886_v40 }
 0x7dc   :  { %2913 = vmatprep.subr.bf16.mxu1 %v7892_v43 }
 0x7df   :  { %v3890_v44 = vpop.eup %3889  ;;  %2914 = vmatpush1.bf16.msra.mxu1 %v7898_v46 }
 0x7e0   :  { %v3892_v39 = vpop.eup %3891  ;;  %2915 = vmatprep.subr.bf16.mxu1 %v7904_v37  ;;  %v2668_v23 = vpack.c.bf16 %v3890_v44, %v3890_v44 }
 0x7e1   :  { %v2669_v56 = vpack.c.bf16 %v3892_v39, %v3892_v39 }
 0x7e3   :  { %2790 = vmatprep.mubr.bf16.mxu0 %v2669_v56  ;;  %2916 = vmatpush1.bf16.msra.mxu1 %v7910_v34 }
 0x7e4   :  { %2919 = vmatprep.mubr.bf16.mxu1 %v2669_v56  ;;  %2791 = vmatmul.mubr.bf16.vlgmr.msra.gmra.mrb[68].mxu0 %v2668_v23 }
 0x7e5   :  { %2847 = vmatpush1.bf16.msra.mxu0 %v7916_v20  ;;  %2917 = vmatprep.subr.bf16.mxu1 %v7922_v2 }
 0x7e6   :  { %2848 = vmatprep.subr.bf16.mxu0 %v7928_v25 }
 0x7e7   :  { %2918 = vmatpush1.bf16.msra.mxu1 %v7934_v58 }
 0x7e8   :  { %2975 = vmatprep.subr.bf16.mxu1 %v7724_v13  ;;  %v7955_v13 = vld [vmem:[%s8229_s2 + $0x220] ss:$8 sps:$4 sm:$0xff]  }
 0x7e9   :  { %2849 = vmatpush1.bf16.msra.mxu0 %v7941_v59 }
 0x7ea   :  { %2920 = vmatmul.mubr.bf16.vlgmr.msra.gmra.mrb[72].mxu1 %v2668_v23  ;;  %2850 = vmatprep.subr.bf16.mxu0 %v7947_v22 }
 0x7eb   :  { %2976 = vmatpush1.bf16.msra.mxu1 %v7735_v31  ;;  %v8011_v31 = vld [vmem:[%s8229_s2 + $0x260] ss:$8 sps:$4 sm:$0xff]  }
 0x7ec   :  { %2977 = vmatprep.subr.bf16.mxu1 %v7741_v60  ;;  %v8017_v60 = vld [vmem:[%s8229_s2 + $0x274] ss:$8 sps:$4 sm:$0xff]  }
 0x7ed   :  { %2851 = vmatpush1.bf16.msra.mxu0 %v7955_v13 }
 0x7ee   :  { %2852 = vmatprep.subr.bf16.mxu0 %v7961_v55 }
 0x7ef   :  { %2978 = vmatpush1.bf16.msra.mxu1 %v7747_v4  ;;  %v8025_v4 = vld [vmem:[%s8229_s2 + $0x270] ss:$8 sps:$4 sm:$0xff]  }
 0x7f0   :  { %2979 = vmatprep.subr.bf16.mxu1 %v7753_v26  ;;  %v8031_v26 = vld [vmem:[%s8229_s2 + $0x284] ss:$8 sps:$4 sm:$0xff]  }
 0x7f1   :  { %2853 = vmatpush1.bf16.msra.mxu0 %v7969_v16 }
 0x7f2   :  { %2854 = vmatprep.subr.bf16.mxu0 %v7975_v1 }
 0x7f3   :  { %2980 = vmatpush1.bf16.msra.mxu1 %v7759_v41  ;;  %v8039_v41 = vld [vmem:[%s8229_s2 + $0x280] ss:$8 sps:$4 sm:$0xff]  }
 0x7f4   :  { %2981 = vmatprep.subr.bf16.mxu1 %v7765_v49  ;;  %v8045_v49 = vld [vmem:[%s8229_s2 + $0x294] ss:$8 sps:$4 sm:$0xff]  }
 0x7f5   :  { %2855 = vmatpush1.bf16.msra.mxu0 %v7983_v29 }
 0x7f6   :  { %2856 = vmatprep.subr.bf16.mxu0 %v7989_v19 }
 0x7f7   :  { %2982 = vmatpush1.bf16.msra.mxu1 %v7771_v57  ;;  %v8053_v57 = vld [vmem:[%s8229_s2 + $0x290] ss:$8 sps:$4 sm:$0xff]  }
 0x7f8   :  { %2983 = vmatprep.subr.bf16.mxu1 %v7777_v21 }
 0x7f9   :  { %2857 = vmatpush1.bf16.msra.mxu0 %v7997_v9 }
 0x7fa   :  { %2858 = vmatprep.subr.bf16.mxu0 %v8003_v38 }
 0x7fb   :  { %2984 = vmatpush1.bf16.msra.mxu1 %v7783_v35  ;;  %v8059_v35 = vld [vmem:[%s8229_s2 + $0x2a4] ss:$8 sps:$4 sm:$0xff]  }
 0x7fc   :  { %2985 = vmatprep.subr.bf16.mxu1 %v7789_v5 }
 0x7fd   :  { %2859 = vmatpush1.bf16.msra.mxu0 %v8011_v31 }
 0x7fe   :  { %2860 = vmatprep.subr.bf16.mxu0 %v8017_v60 }
 0x7ff   :  { %2986 = vmatpush1.bf16.msra.mxu1 %v7795_v47 }
 0x800   :  { %2987 = vmatprep.subr.bf16.mxu1 %v7801_v36 }
 0x801   :  { %2861 = vmatpush1.bf16.msra.mxu0 %v8025_v4 }
 0x802   :  { %2862 = vmatprep.subr.bf16.mxu0 %v8031_v26 }
 0x803   :  { %2988 = vmatpush1.bf16.msra.mxu1 %v7807_v3  ;;  %v8067_v3 = vld [vmem:[%s8229_s2 + $0x2a0] ss:$8 sps:$4 sm:$0xff]  }
 0x804   :  { %2989 = vmatprep.subr.bf16.mxu1 %v7813_v48  ;;  %v8073_v48 = vld [vmem:[%s8229_s2 + $0x2b4] ss:$8 sps:$4 sm:$0xff]  }
 0x805   :  { %2863 = vmatpush1.bf16.msra.mxu0 %v8039_v41 }
 0x806   :  { %2864 = vmatprep.subr.bf16.mxu0 %v8045_v49 }
 0x807   :  { %2990 = vmatpush1.bf16.msra.mxu1 %v7819_v12 }
 0x808   :  { %2991 = vmatprep.subr.bf16.mxu1 %v7825_v42 }
 0x809   :  { %2865 = vmatpush1.bf16.msra.mxu0 %v8053_v57 }
 0x80a   :  { %v2704_v21 = vpop.f32.mrb[64].mxu0  ;;  %2866 = vmatprep.subr.bf16.mxu0 %v8059_v35 }
 0x80b   :  { %v2706_v5 = vpop.f32.mrb[65].mxu0  ;;  %2992 = vmatpush1.bf16.msra.mxu1 %v7831_v33 }
 0x80c   :  { %v2708_v47 = vpop.f32.mrb[66].mxu0  ;;  %2993 = vmatprep.subr.bf16.mxu1 %v7837_v62  ;;  %v4224_v62 = vld [vmem:[%s8229_s2 + $0x2c4] ss:$8 sps:$4 sm:$0xff]  }
 0x80d   :  { %v2709_v36 = vpop.f32.mrb[67].mxu0  ;;  %2867 = vmatpush1.bf16.msra.mxu0 %v8067_v3  ;;  %v3817_v47 = vld [vmem:[%s8232_s5 + $0x50] sm:$0xff]  }
 0x80e   :  { %2868 = vmatprep.subr.bf16.mxu0 %v8073_v48  ;;  %v3818_v36 = vld [vmem:[%s8232_s5 + $0x10] sm:$0xff]  }
 0x80f   :  { %2994 = vmatpush1.bf16.msra.mxu1 %v7843_v18 }
 0x810   :  { %v2745_v12 = vpop.f32.mrb[64].mxu1  ;;  %2995 = vmatprep.subr.bf16.mxu1 %v7849_v14  ;;  %v4225_v14 = vld [vmem:[%s8229_s2 + $0x2c0] ss:$8 sps:$4 sm:$0xff]  }
 0x811   :  { %v2746_v42 = vadd.f32 %v2745_v12, %v2704_v21  ;;  %v2747_v51 = vpop.f32.mrb[65].mxu1  ;;  %2869 = vmatpush1.bf16.msra.mxu0 %v8081_v63  ;;  %v3814_v21 = vld [vmem:[%s8232_s5] sm:$0xff]  }
 0x812   :  { %v2748_v33 = vadd.f32 %v2747_v51, %v2706_v5  ;;  %v2749_v50 = vpop.f32.mrb[66].mxu1  ;;  %2870 = vmatprep.subr.bf16.mxu0 %v4224_v62  ;;  %v3816_v5 = vld [vmem:[%s8232_s5 + $0x8] sm:$0xff]   ;;  %v3821_v12 = vld [vmem:[%s8232_s5 + $0x60] sm:$0xff]  }
 0x813   :  { %v2752_v17 = vadd.f32 %v7131_v0, %v2746_v42  ;;  %v2750_v18 = vpop.f32.mrb[67].mxu1  ;;  %2996 = vmatpush1.bf16.msra.mxu1 %v7861_v53  ;;  %v4227_v0 = vld [vmem:[%s8229_s2 + $0x2d0] ss:$8 sps:$4 sm:$0xff]   ;;  %v3822_v42 = vld [vmem:[%s8232_s5 + $0x20] sm:$0xff]   ;;  %v3823_v51 = vld [vmem:[%s8232_s5 + $0x68] sm:$0xff]  }
 0x814   :  { %v2753_v8 = vadd.f32 %v2748_v33, %v5791_v28  ;;  %2997 = vmatprep.subr.bf16.mxu1 %v7868_v7  ;;  %v4231_v53 = vld [vmem:[%s8229_s2 + $0x2f0] ss:$8 sps:$4 sm:$0xff]  }
 0x815   :  { %3893 = vtanh.f32 %v2752_v17  ;;  %2871 = vmatpush1.bf16.msra.mxu0 %v4225_v14  ;;  %v3825_v33 = vld [vmem:[%s8232_s5 + $0x70] sm:$0xff]   ;;  %v3828_v17 = vld [vmem:[%s8232_s5 + $0x38] sm:$0xff]  }
 0x816   :  { %3895 = vtanh.f32 %v2753_v8  ;;  %2872 = vmatprep.subr.bf16.mxu0 %v4226_v32  ;;  %v3826_v50 = vld [vmem:[%s8232_s5 + $0x30] sm:$0xff]  }
 0x817   :  { %2998 = vmatpush1.bf16.msra.mxu1 %v7874_v10 }
 0x818   :  { %2999 = vmatprep.subr.bf16.mxu1 %v7880_v11 }
 0x819   :  { %2873 = vmatpush1.bf16.msra.mxu0 %v4227_v0 }
 0x81a   :  { %2874 = vmatprep.subr.bf16.mxu0 %v4228_v30 }
 0x81b   :  { %3000 = vmatpush1.bf16.msra.mxu1 %v7886_v40 }
 0x81c   :  { %3001 = vmatprep.subr.bf16.mxu1 %v7892_v43 }
 0x81d   :  { %2875 = vmatpush1.bf16.msra.mxu0 %v4229_v45 }
 0x81e   :  { %2876 = vmatprep.subr.bf16.mxu0 %v4230_v27 }
 0x81f   :  { %v3894_v24 = vpop.eup %3893  ;;  %3002 = vmatpush1.bf16.msra.mxu1 %v7898_v46 }
 0x820   :  { %v3896_v61 = vpop.eup %3895  ;;  %3003 = vmatprep.subr.bf16.mxu1 %v7904_v37  ;;  %v2756_v7 = vpack.c.bf16 %v3894_v24, %v3894_v24 }
 0x821   :  { %2877 = vmatpush1.bf16.msra.mxu0 %v4231_v53  ;;  %v2757_v15 = vpack.c.bf16 %v3896_v61, %v3896_v61 }
 0x822   :  { %2934 = vmatprep.subr.bf16.mxu0 %v7715_v6 }
 0x823   :  { %2878 = vmatprep.mubr.bf16.mxu0 %v2757_v15  ;;  %3004 = vmatpush1.bf16.msra.mxu1 %v7910_v34 }
 0x824   :  { %2879 = vmatmul.mubr.bf16.vlgmr.msra.gmra.mrb[72].mxu0 %v2756_v7  ;;  %3005 = vmatprep.subr.bf16.mxu1 %v7922_v2 }
 0x825   :  { %2935 = vmatpush1.bf16.msra.mxu0 %v7916_v20 }
 0x826   :  { %2936 = vmatprep.subr.bf16.mxu0 %v7928_v25 }
 0x827   :  { %3006 = vmatpush1.bf16.msra.mxu1 %v7934_v58 }
 0x829   :  { %2937 = vmatpush1.bf16.msra.mxu0 %v7941_v59 }
 0x82a   :  { %2938 = vmatprep.subr.bf16.mxu0 %v7947_v22 }
 0x82d   :  { %2939 = vmatpush1.bf16.msra.mxu0 %v7955_v13 }
 0x82e   :  { %2940 = vmatprep.subr.bf16.mxu0 %v7961_v55 }
 0x831   :  { %2941 = vmatpush1.bf16.msra.mxu0 %v7969_v16 }
 0x832   :  { %2942 = vmatprep.subr.bf16.mxu0 %v7975_v1 }
 0x835   :  { %2943 = vmatpush1.bf16.msra.mxu0 %v7983_v29 }
 0x836   :  { %2944 = vmatprep.subr.bf16.mxu0 %v7989_v19 }
 0x839   :  { %2945 = vmatpush1.bf16.msra.mxu0 %v7997_v9 }
 0x83a   :  { %2946 = vmatprep.subr.bf16.mxu0 %v8003_v38 }
 0x83d   :  { %2947 = vmatpush1.bf16.msra.mxu0 %v8011_v31 }
 0x83e   :  { %2948 = vmatprep.subr.bf16.mxu0 %v8017_v60 }
 0x841   :  { %2949 = vmatpush1.bf16.msra.mxu0 %v8025_v4 }
 0x842   :  { %2950 = vmatprep.subr.bf16.mxu0 %v8031_v26 }
 0x845   :  { %2951 = vmatpush1.bf16.msra.mxu0 %v8039_v41 }
 0x846   :  { %2952 = vmatprep.subr.bf16.mxu0 %v8045_v49 }
 0x849   :  { %2953 = vmatpush1.bf16.msra.mxu0 %v8053_v57  ;;  %v3813_v57 = vld [vmem:[%s8232_s5 + $0x40] sm:$0xff]  }
 0x84a   :  { %2954 = vmatprep.subr.bf16.mxu0 %v8059_v35  ;;  %v3815_v35 = vld [vmem:[%s8232_s5 + $0x48] sm:$0xff]  }
 0x84d   :  { %2955 = vmatpush1.bf16.msra.mxu0 %v8067_v3  ;;  %v3819_v3 = vld [vmem:[%s8232_s5 + $0x58] sm:$0xff]  }
 0x84e   :  { %2956 = vmatprep.subr.bf16.mxu0 %v8073_v48  ;;  %v3820_v48 = vld [vmem:[%s8232_s5 + $0x18] sm:$0xff]  }
 0x851   :  { %2957 = vmatpush1.bf16.msra.mxu0 %v8081_v63  ;;  %v3824_v63 = vld [vmem:[%s8232_s5 + $0x28] sm:$0xff]  }
 0x852   :  { %2958 = vmatprep.subr.bf16.mxu0 %v4224_v62  ;;  %v3827_v62 = vld [vmem:[%s8232_s5 + $0x78] sm:$0xff]   ;;  %s4282_s5 = smov [#allocation4]  }
 0x853   :  { %s3241_s13 = sshll.u32 %s4282_s5, 4  ;;  %s3242_s13 = int_to_ptr.vmem [resolvable:$true] %s3241_s13 }
 0x854   :  { %s4233_s14 = scalar_lea.vmem %s3242_s13, 192  ;;  %p4238_p1 = scmp.lt.s32.totalorder %s3242_s13, %s3242_s13 }
 0x855   :  { %2959 = vmatpush1.bf16.msra.mxu0 %v4225_v14  ;;  %p4234_p0 = scmp.ne.s32.totalorder %s3242_s13, %s4233_s14  ;;  %p4239_p2 = scmp.lt.s32.totalorder %s4233_s14, %s4233_s14 }
 0x856   :  { %2960 = vmatprep.subr.bf16.mxu0 %v4226_v32 }
 0x857   :  { %p4240_p3 = por %p4239_p2, %p4238_p1 }
 0x859   :  { %2961 = vmatpush1.bf16.msra.mxu0 %v4227_v0  ;;  %p4241_p4 = pnand %p4240_p3, %p4234_p0 }
 0x85a   :  { %2962 = vmatprep.subr.bf16.mxu0 %v4228_v30 }
 0x85d   :  { %2963 = vmatpush1.bf16.msra.mxu0 %v4229_v45 }
 0x85e   :  { %2964 = vmatprep.subr.bf16.mxu0 %v4230_v27 }
 0x861   :  { %2965 = vmatpush1.bf16.msra.mxu0 %v4231_v53 }
 0x862   :  { %3546 = vmatprep.subr.bf16.mxu0 %v3813_v57 }
 0x87d   :  { %v2833_v6 = vpop.f32.mrb[68].mxu1 }
 0x87e   :  { %v2835_v10 = vpop.f32.mrb[69].mxu1 }
 0x87f   :  { %v2837_v11 = vpop.f32.mrb[70].mxu1 }
 0x880   :  { %v2838_v40 = vpop.f32.mrb[71].mxu1 }
 0x8b7   :  { %v2792_v43 = vpop.f32.mrb[68].mxu0 }
 0x8b8   :  { %v2834_v44 = vadd.f32 %v2833_v6, %v2792_v43  ;;  %v2794_v46 = vpop.f32.mrb[69].mxu0 }
 0x8b9   :  { %v2836_v39 = vadd.f32 %v2835_v10, %v2794_v46  ;;  %v2796_v37 = vpop.f32.mrb[70].mxu0 }
 0x8ba   :  { %v2840_v56 = vadd.f32 %v7855_v54, %v2834_v44  ;;  %v2797_v23 = vpop.f32.mrb[71].mxu0 }
 0x8bb   :  { %v2841_v34 = vadd.f32 %v2836_v39, %v9307_v52  ;;  %v4232_v52 = vld.sshfl [vmem:[%s8231_s4 + $0x4] sm:$0x33 pattern:$0x76325410] }
 0x8bc   :  { %3897 = vtanh.f32 %v2840_v56 }
 0x8bd   :  { %3899 = vtanh.f32 %v2841_v34  ;;  %v2921_v20 = vpop.f32.mrb[72].mxu1 }
 0x8be   :  { %v2923_v2 = vpop.f32.mrb[73].mxu1 }
 0x8bf   :  { %v2925_v25 = vpop.f32.mrb[74].mxu1 }
 0x8c0   :  { %v2926_v58 = vpop.f32.mrb[75].mxu1 }
 0x8c6   :  { %v3898_v59 = vpop.eup %3897 }
 0x8c7   :  { %v3900_v22 = vpop.eup %3899  ;;  %v2844_v16 = vpack.c.bf16 %v3898_v59, %v3898_v59 }
 0x8c8   :  { %v2845_v13 = vpack.c.bf16 %v3900_v22, %v3900_v22  ;;  %v3025_v55 = vcombine.low %v3898_v59, %v3900_v22 }
 0x8ca   :  { %3007 = vmatprep.mubr.bf16.mxu1 %v2845_v13  ;;  %3527 = vst.sshfl [vmem:[#allocation4 + $0x4] sm:$0x33 pattern:$0x76325410] %v3025_v55 }
 0x8cb   :  { %3008 = vmatmul.mubr.bf16.vlgmr.msra.gmra.mrb[76].mxu1 %v2844_v16 }
 0x8f7   :  { %v2880_v1 = vpop.f32.mrb[72].mxu0 }
 0x8f8   :  { %v2922_v29 = vadd.f32 %v2921_v20, %v2880_v1  ;;  %v2882_v54 = vpop.f32.mrb[73].mxu0 }
 0x8f9   :  { %v2924_v19 = vadd.f32 %v2923_v2, %v2882_v54  ;;  %v2884_v9 = vpop.f32.mrb[74].mxu0 }
 0x8fa   :  { %v2928_v38 = vadd.f32 %v4232_v52, %v2922_v29  ;;  %v2885_v31 = vpop.f32.mrb[75].mxu0 }
 0x8fb   :  { %v2929_v60 = vadd.f32 %v2924_v19, %v5791_v28 }
 0x8fc   :  { %3901 = vtanh.f32 %v2928_v38 }
 0x8fd   :  { %3903 = vtanh.f32 %v2929_v60 }
 0x906   :  { %v3902_v4 = vpop.eup %3901 }
 0x907   :  { %v3904_v26 = vpop.eup %3903  ;;  %v2932_v49 = vpack.c.bf16 %v3902_v4, %v3902_v4 }
 0x908   :  { %v2933_v41 = vpack.c.bf16 %v3904_v26, %v3904_v26 }
 0x90a   :  { %2966 = vmatprep.mubr.bf16.mxu0 %v2933_v41 }
 0x90b   :  { %2967 = vmatmul.mubr.bf16.vlgmr.msra.gmra.mrb[76].mxu0 %v2932_v49 }
 0x90c   :  { %3547 = vmatpush3.bf16.msra.mxu0 %v3814_v21 }
 0x90d   :  { %3548 = vmatprep.subr.bf16.mxu0 %v3815_v35 }
 0x910   :  { %3549 = vmatpush3.bf16.msra.mxu0 %v3816_v5 }
 0x911   :  { %3550 = vmatprep.subr.bf16.mxu0 %v3817_v47 }
 0x914   :  { %3551 = vmatpush3.bf16.msra.mxu0 %v3818_v36 }
 0x915   :  { %3552 = vmatprep.subr.bf16.mxu0 %v3819_v3 }
 0x918   :  { %3553 = vmatpush3.bf16.msra.mxu0 %v3820_v48 }
 0x919   :  { %3554 = vmatprep.subr.bf16.mxu0 %v3821_v12 }
 0x91c   :  { %3555 = vmatpush3.bf16.msra.mxu0 %v3822_v42 }
 0x91d   :  { %3556 = vmatprep.subr.bf16.mxu0 %v3823_v51 }
 0x920   :  { %3557 = vmatpush3.bf16.msra.mxu0 %v3824_v63 }
 0x921   :  { %3558 = vmatprep.subr.bf16.mxu0 %v3825_v33 }
 0x924   :  { %3559 = vmatpush3.bf16.msra.mxu0 %v3826_v50 }
 0x925   :  { %3560 = vmatprep.subr.bf16.mxu0 %v3827_v62 }
 0x928   :  { %3561 = vmatpush3.bf16.msra.mxu0 %v3828_v17 }
 0x99e   :  { %v3009_v18 = vpop.f32.mrb[76].mxu1 }
 0x99f   :  { %v3011_v8 = vpop.f32.mrb[77].mxu1 }
 0x9a0   :  { %v3013_v14 = vpop.f32.mrb[78].mxu1 }
 0x9a1   :  { %v3014_v32 = vpop.f32.mrb[79].mxu1 }
 0x9de   :  { %v2968_v0 = vpop.f32.mrb[76].mxu0 }
 0x9df   :  { %v3010_v30 = vadd.f32 %v3009_v18, %v2968_v0  ;;  %v2970_v45 = vpop.f32.mrb[77].mxu0 }
 0x9e0   :  { %v3012_v27 = vadd.f32 %v3011_v8, %v2970_v45  ;;  %v2972_v24 = vpop.f32.mrb[78].mxu0 }
 0x9e1   :  { %v3016_v61 = vadd.f32 %v4232_v52, %v3010_v30  ;;  %v2973_v53 = vpop.f32.mrb[79].mxu0 }
 0x9e2   :  { %v3017_v15 = vadd.f32 %v3012_v27, %v5791_v28 }
 0x9e3   :  { %3905 = vtanh.f32 %v3016_v61 }
 0x9e4   :  { %3907 = vtanh.f32 %v3017_v15 }
 0x9ed   :  { %v3906_v7 = vpop.eup %3905 }
 0x9ee   :  { %v3908_v6 = vpop.eup %3907  ;;  %v3020_v40 = vpack.c.bf16 %v3906_v7, %v3906_v7 }
 0x9ef   :  { %v3021_v10 = vpack.c.bf16 %v3908_v6, %v3908_v6  ;;  %v3038_v11 = vcombine.low %v3906_v7, %v3908_v6 }
 0x9f1   :  { %3216 = vmatprep.mubr.bf16.mxu0 %v3021_v10  ;;  %3528 = vst.sshfl [vmem:[#allocation4 + $0x8] sm:$0x33 pattern:$0x76325410] %v3038_v11 }
 0x9f2   :  { %3217 = vmatmul.mubr.bf16.vlgmr.msra.gmra.mrb[80].mxu0 %v3020_v40 }
 0x9f3   :  { %4244 = shalt.err (!%p4241_p4)
}
 0x9f4   :  { %s4245_s16 = scalar_lea.hbm %s8235_s8, 192 }
 0x9f5   :  { %p4246_p5 = scmp.ne.s32.totalorder %s8235_s8, %s4245_s16  ;;  %p4249_p6 = scmp.lt.u32.totalorder %s4245_s16, %s8235_s8 }
 0x9f7   :  { %p4251_p7 = pnand %p4249_p6, %p4246_p5 }
 0x9f9   :  { %4254 = shalt.err (!%p4251_p7)
}
 0x9fa   :  { %s4283_s21 = smov 64   ;;  %s4284_s22 = smov 4   ;;  %v3529_v44 = vld [vmem:[%s8233_s6] ss:$0 sm:$0xff]  ;;  %vm3224_vm0 = vcmask 17408  }
 0x9fb   :  { %3247 = dma.vmem_to_hbm [thread:$0]  %s3242_s13, 192, %s8235_s8, [#allocation5], %s4283_s21, %s4283_s21, %s4284_s22  }
 0x9fc   :  { %s4285_s27 = smov [#allocation2]  }
 0x9fd   :  { %s3232_s3 = sshll.u32 %s4285_s27, 4  ;;  %s3233_s3 = int_to_ptr.vmem [resolvable:$true] %s3232_s3 }
 0x9fe   :  { %s4255_s28 = scalar_lea.vmem %s3233_s3, 32  ;;  %p4260_p9 = scmp.lt.s32.totalorder %s3233_s3, %s3233_s3 }
 0x9ff   :  { %p4256_p8 = scmp.ne.s32.totalorder %s3233_s3, %s4255_s28  ;;  %p4261_p10 = scmp.lt.s32.totalorder %s4255_s28, %s4255_s28 }
 0xa01   :  { %p4262_p11 = por %p4261_p10, %p4260_p9 }
 0xa03   :  { %p4263_p12 = pnand %p4262_p11, %p4256_p8 }
 0xac5   :  { %v3562_v28 = vpop.f32.mrb[80].mxu0 }
 0xac6   :  { %v3563_v43 = vpop.f32.mrb[81].mxu0 }
 0xac7   :  { %v3564_v46 = vadd.f32 %v3563_v43, %v3562_v28  ;;  %v3565_v39 = vpop.f32.mrb[82].mxu0 }
 0xac8   :  { %v3566_v37 = vpop.f32.mrb[83].mxu0 }
 0xac9   :  { %v3219_v56 = vadd.f32 %v3564_v46, %v3529_v44 }
 0xacb   :  { %3225 = vst.msk [vmem:[#allocation2] sm:$0x3] %vm3224_vm0, %v3219_v56 }
 0xacc   :  { %4266 = shalt.err (!%p4263_p12)
}
 0xacd   :  { %s4267_s6 = scalar_lea.hbm %s8234_s7, 32 }
 0xace   :  { %p4268_p13 = scmp.ne.s32.totalorder %s8234_s7, %s4267_s6  ;;  %p4271_p0 = scmp.lt.u32.totalorder %s4267_s6, %s8234_s7 }
 0xad0   :  { %p4273_p1 = pnand %p4271_p0, %p4268_p13 }
 0xad2   :  { %4276 = shalt.err (!%p4273_p1)
}
 0xad3   :  { %3235 = dma.vmem_to_hbm [thread:$0]  %s3233_s3, 32, %s8234_s7, [#allocation3]  }
 0xad4   :  { %4277 = dma.done.wait [#allocation3], 32  }
 0xad5   :  { %4278 = vsyncadd [#allocation3], 4294967264 }
 0xad6   :  { %4279 = dma.done.wait [#allocation5], 192  }
 0xad7   :  { %4280 = vsyncadd [#allocation5], 4294967104 }
 0xad8   :  { %3254 = vsyncpa [#allocation3], 1 }
 0xad9   :  { %3255 = vsyncpa [#allocation5], 1 }

</bundles_post_ra>
